<compile_context>
chip_gen: v6e
topology: v6e:2x2x1
jax: 0.10.0
libtpu: 0.0.40
codegen_flags: <defaults>
</compile_context>

<pallas_src>
import functools

import jax
import jax.numpy as jnp
import numpy as np
from jax.experimental import pallas as pl
from jax.experimental.pallas import tpu as pltpu


# -----------------------------------------------------------------------------
# Fused kernel: bbox mask + conv1(1->C1, s2, p1)+ReLU + conv2(C1->C2, s2, p1)+ReLU
#
# Shapes (S = image size, H2 = S//4, L2 = H2*H2):
#   bounds_ref : (B, 4) int32 SMEM (scalar prefetch)   [ltx, rbx, lty, rby]
#   base_ref   : (2, L2) int32  -- per conv2-output lane: 4*p (row), 4*q (col)
#   w1_ref     : (9, C1, 1) f32, b1_ref: (C1, 1) f32
#   w2_ref     : (9, C1, C2) f32, b2_ref: (C2, 1) f32
#   mask_ref   : (1, S, S) f32 out block
#   emb_ref    : (1, C2, L2) f32 out block
# -----------------------------------------------------------------------------
def _fused_bbox_conv_kernel(bounds_ref, base_ref, w1_ref, b1_ref, w2_ref, b2_ref,
                            mask_ref, emb_ref, *, size):
    bidx = pl.program_id(0)
    ltx = bounds_ref[bidx, 0]
    rbx = bounds_ref[bidx, 1]
    lty = bounds_ref[bidx, 2]
    rby = bounds_ref[bidx, 3]

    # ---- bbox mask output (separable row/col indicators) --------------------
    rows = jax.lax.broadcasted_iota(jnp.int32, (size, 1), 0)
    cols = jax.lax.broadcasted_iota(jnp.int32, (1, size), 1)
    row_in = (rows >= lty) & (rows <= rby)
    col_in = (cols >= ltx) & (cols <= rbx)
    mask_ref[0] = (row_in & col_in).astype(jnp.float32)

    # ---- fused Face_loc_Encoder ---------------------------------------------
    C1 = w1_ref.shape[1]
    C2 = w2_ref.shape[2]
    L2 = base_ref.shape[1]

    rbase = base_ref[0:1, :]          # (1, L2) int32 : 4*p
    cbase = base_ref[1:2, :]          # (1, L2) int32 : 4*q

    # Analytic zero-padded bbox-mask indicators at every needed row/col offset.
    # Input pixel sampled by (conv2 tap ky, conv1 tap ty) at lane (p, q):
    #   row = 4p + (2*ky + ty - 3), offset d in {-3..3}; same for columns.
    Rind, Cind = [], []
    for d in range(-3, 4):
        rr = rbase + d
        cc = cbase + d
        Rind.append(((rr >= lty) & (rr <= rby) &
                     (rr >= 0) & (rr < size)).astype(jnp.float32))
        Cind.append(((cc >= ltx) & (cc <= rbx) &
                     (cc >= 0) & (cc < size)).astype(jnp.float32))

    # 49 separable tap-patch products, each (1, L2); reused across conv taps.
    P = [[Rind[i] * Cind[j] for j in range(7)] for i in range(7)]

    # conv2 zero-padding validity of the conv1 activation (only top / left taps)
    rv = (rbase > 0).astype(jnp.float32)      # [p > 0]
    cv = (cbase > 0).astype(jnp.float32)      # [q > 0]
    rvcv = rv * cv

    w1 = w1_ref[...]                  # (9, C1, 1)   hoisted once
    b1 = b1_ref[...]                  # (C1, 1)
    w2 = w2_ref[...]                  # (9, C1, C2)
    b2 = b2_ref[...]                  # (C2, 1)

    acc2 = jnp.zeros((C2, L2), jnp.float32)
    for ky in range(3):
        for kx in range(3):
            # conv1 activation sampled at padded y1 position (2p+ky-1, 2q+kx-1)
            acc1 = jnp.zeros((C1, L2), jnp.float32)
            for ty in range(3):
                dr = 2 * ky + ty          # offset (-3..3) shifted by +3
                for tx in range(3):
                    dc = 2 * kx + tx
                    acc1 = acc1 + w1[ty * 3 + tx] * P[dr][dc]   # (C1,1)*(1,L2)
            y1 = jnp.maximum(acc1 + b1, 0.0)
            if ky == 0 and kx == 0:
                y1 = y1 * rvcv
            elif ky == 0:
                y1 = y1 * rv
            elif kx == 0:
                y1 = y1 * cv
            w2t = w2[ky * 3 + kx]                               # (C1, C2)
            # vectorized Cin contraction on the VPU (channel counts are tiny)
            acc2 = acc2 + jnp.sum(w2t[:, :, None] * y1[:, None, :], axis=0)

    emb_ref[0] = jnp.maximum(acc2 + b2, 0.0).astype(emb_ref.dtype)


def fused_bbox_mask_encoder(bbox, params, size):
    """bbox: (B, 6, F) float32.  Returns (mask (B,1,S,S), emb (B,C2,S/4,S/4))."""
    assert size % 4 == 0, "image size must be divisible by 4"
    B = bbox.shape[0]
    C1 = params["w1"].shape[-1]        # 8
    C2 = params["w2"].shape[-1]        # 16
    H2 = W2 = size // 4
    L2 = H2 * W2

    # bbox -> integer bounds (matches PyTorch int32 truncation semantics)
    bb = bbox[:, :, 0]
    x0 = bb[:, 0] / bb[:, 4] * size
    x1 = bb[:, 1] / bb[:, 4] * size
    y0 = bb[:, 2] / bb[:, 5] * size
    y1 = bb[:, 3] / bb[:, 5] * size
    bounds = jnp.stack(
        [x0.astype(jnp.int32), (x1 + 1.0).astype(jnp.int32),
         y0.astype(jnp.int32), (y1 + 1.0).astype(jnp.int32)], axis=1)   # (B, 4)

    # static per-lane coordinate table (trace-time numpy; tiny VMEM input)
    ll = np.arange(L2)
    base_tab = np.stack([4 * (ll // W2), 4 * (ll % W2)],
                        axis=0).astype(np.int32)                        # (2, L2)

    # weights reshaped once to tap-major, kernel-friendly shapes (HWIO source)
    w1p = params["w1"].reshape(9, C1)[:, :, None]      # (9, C1, 1)
    b1p = params["b1"].reshape(C1, 1)
    w2p = params["w2"].reshape(9, C1, C2)              # (9, C1, C2)
    b2p = params["b2"].reshape(C2, 1)

    kernel = functools.partial(_fused_bbox_conv_kernel, size=size)
    mask, emb = pl.pallas_call(
        kernel,
        out_shape=(jax.ShapeDtypeStruct((B, size, size), jnp.float32),
                   jax.ShapeDtypeStruct((B, C2, L2), jnp.float32)),
        grid_spec=pltpu.PrefetchScalarGridSpec(
            num_scalar_prefetch=1,
            grid=(B,),
            in_specs=[
                pl.BlockSpec((2, L2), lambda i, bnd: (0, 0)),
                pl.BlockSpec((9, C1, 1), lambda i, bnd: (0, 0, 0)),
                pl.BlockSpec((C1, 1), lambda i, bnd: (0, 0)),
                pl.BlockSpec((9, C1, C2), lambda i, bnd: (0, 0, 0)),
                pl.BlockSpec((C2, 1), lambda i, bnd: (0, 0)),
            ],
            out_specs=[
                pl.BlockSpec((1, size, size), lambda i, bnd: (i, 0, 0)),
                pl.BlockSpec((1, C2, L2), lambda i, bnd: (i, 0, 0)),
            ],
        ),
        compiler_params=pltpu.CompilerParams(dimension_semantics=("parallel",)),
    )(bounds, jnp.asarray(base_tab), w1p, b1p, w2p, b2p)

    bbox_mask = mask[:, None, :, :]                 # (B, 1, S, S)        NCHW
    bbox_mask_emb = emb.reshape(B, C2, H2, W2)      # (B, C2, S/4, S/4)   NCHW
    return bbox_mask, bbox_mask_emb


# -----------------------------------------------------------------------------
# FlowDiffusion forward (translatable portion)
# -----------------------------------------------------------------------------
@functools.partial(jax.jit, static_argnames=("ref_id",))
def flow_diffusion_forward(real_vid, ref_pose, ref_eye_blink, ref_text_aud,
                           bbox, params, ref_id=0):
    b, c, nf, H, W = real_vid.shape
    # TODO(synk): ColorJitter photometric augmentation (random, torchvision) omitted.
    real_vid = real_vid / 255.0
    ref_img = real_vid[:, :, ref_id, :, :]

    ref_pose_p = jnp.transpose(jnp.squeeze(ref_pose, 1), (0, 2, 1))      # (b, nf, pose)
    ref_eye_p = jnp.transpose(jnp.squeeze(ref_eye_blink, 1), (0, 2, 1))  # (b, nf, 2)
    init_pose = jnp.repeat(ref_pose_p[:, ref_id][:, None, :], nf, axis=1)
    init_eye = jnp.repeat(ref_eye_p[:, ref_id][:, None, :], nf, axis=1)
    ref_text = jnp.concatenate(
        [ref_text_aud, ref_pose_p - init_pose, ref_eye_p - init_eye], axis=-1)

    # single fused Pallas kernel: bbox mask + Face_loc_Encoder (conv+relu x2)
    bbox_mask, bbox_mask_emb = fused_bbox_mask_encoder(bbox, params, size=H)

    # TODO(synk): generator / region_predictor / bg_predictor / DynamicNfUnet3D /
    # DynamicNfGaussianDiffusion require external pretrained checkpoints + yaml
    # configs and have no self-contained definition here; not implemented.
    return {
        "ref_img": ref_img,
        "ref_text": ref_text,
        "bbox_mask": bbox_mask,
        "bbox_mask_emb": bbox_mask_emb,
    }


# -----------------------------------------------------------------------------
# deterministic parameter init + pure-JAX references for verification
# -----------------------------------------------------------------------------
def init_face_loc_encoder_params(key):
    k1, k2, k3, k4 = jax.random.split(key, 4)
    return {
        "w1": jax.random.normal(k1, (3, 3, 1, 8), jnp.float32) * 0.1,    # HWIO
        "b1": jax.random.normal(k2, (8,), jnp.float32) * 0.1,
        "w2": jax.random.normal(k3, (3, 3, 8, 16), jnp.float32) * 0.1,   # HWIO
        "b2": jax.random.normal(k4, (16,), jnp.float32) * 0.1,
    }


def _ref_bbox_mask(bbox, size):
    bb = bbox[:, :, 0]
    x0 = bb[:, 0] / bb[:, 4] * size
    x1 = bb[:, 1] / bb[:, 4] * size
    y0 = bb[:, 2] / bb[:, 5] * size
    y1 = bb[:, 3] / bb[:, 5] * size
    ltx = x0.astype(jnp.int32)[:, None, None]
    lty = y0.astype(jnp.int32)[:, None, None]
    rbx = (x1 + 1.0).astype(jnp.int32)[:, None, None]
    rby = (y1 + 1.0).astype(jnp.int32)[:, None, None]
    rows = jnp.arange(size)[None, :, None]
    cols = jnp.arange(size)[None, None, :]
    m = (rows >= lty) & (rows <= rby) & (cols >= ltx) & (cols <= rbx)
    return m.astype(jnp.float32)[:, None]


def _ref_face_loc(x_nchw, params):
    w1 = jnp.transpose(params["w1"], (3, 2, 0, 1))   # HWIO -> OIHW
    w2 = jnp.transpose(params["w2"], (3, 2, 0, 1))
    y = jax.lax.conv_general_dilated(
        x_nchw, w1, (2, 2), ((1, 1), (1, 1)),
        dimension_numbers=("NCHW", "OIHW", "NCHW"))
    y = jnp.maximum(y + params["b1"][None, :, None, None], 0.0)
    y = jax.lax.conv_general_dilated(
        y, w2, (2, 2), ((1, 1), (1, 1)),
        dimension_numbers=("NCHW", "OIHW", "NCHW"))
    y = jnp.maximum(y + params["b2"][None, :, None, None], 0.0)
    return y


if __name__ == "__main__":
    key = jax.random.PRNGKey(0)
    ks = jax.random.split(key, 6)

    b, c, nf, H, W = 2, 3, 8, 32, 32
    pose_dim, eye_dim, aud_dim = 7, 2, 32

    real_vid = jax.random.uniform(ks[0], (b, c, nf, H, W), jnp.float32) * 255.0
    ref_pose = jax.random.normal(ks[1], (b, 1, pose_dim, nf), jnp.float32)
    ref_eye_blink = jax.random.normal(ks[2], (b, 1, eye_dim, nf), jnp.float32)
    ref_text_aud = jax.random.normal(ks[3], (b, nf, aud_dim), jnp.float32)

    # bbox: (B, 6, F) = [x0, x1, y0, y1, orig_W, orig_H] per frame (constant here)
    bbox_single = jnp.array([[20.0, 90.0, 30.0, 100.0, 128.0, 128.0],
                             [10.0, 60.0, 15.0, 80.0, 128.0, 128.0]], jnp.float32)
    bbox = jnp.repeat(bbox_single[:, :, None], nf, axis=2)

    params = init_face_loc_encoder_params(ks[4])

    out = flow_diffusion_forward(real_vid, ref_pose, ref_eye_blink,
                                 ref_text_aud, bbox, params, ref_id=0)
    out = jax.tree_util.tree_map(jax.block_until_ready, out)

    # ---- verification against pure-JAX references ----
    ref_mask = _ref_bbox_mask(bbox, H)
    np.testing.assert_allclose(np.asarray(out["bbox_mask"]), np.asarray(ref_mask),
                               rtol=1e-5, atol=1e-5)
    ref_emb = _ref_face_loc(ref_mask, params)
    np.testing.assert_allclose(np.asarray(out["bbox_mask_emb"]), np.asarray(ref_emb),
                               rtol=1e-4, atol=1e-4)

    assert out["bbox_mask"].shape == (b, 1, H, W)
    assert out["bbox_mask_emb"].shape == (b, 16, H // 4, W // 4)
    assert out["ref_text"].shape == (b, nf, aud_dim + pose_dim + eye_dim)

    print("KERNEL_OK")
</pallas_src>

<mosaic_0001>
module attributes {stable_mosaic.version = 11 : i64} {
  func.func @_fused_bbox_conv_kernel(%arg0: i32, %arg1: memref<2x4xi32, #tpu.memory_space<smem>>, %arg2: memref<2x64xi32, #tpu.memory_space<vmem>>, %arg3: memref<9x8x1xf32, #tpu.memory_space<vmem>>, %arg4: memref<8x1xf32, #tpu.memory_space<vmem>>, %arg5: memref<9x8x16xf32, #tpu.memory_space<vmem>>, %arg6: memref<16x1xf32, #tpu.memory_space<vmem>>, %arg7: memref<1x32x32xf32, #tpu.memory_space<vmem>>, %arg8: memref<1x16x64xf32, #tpu.memory_space<vmem>>) attributes {dimension_semantics = [#tpu.dimension_semantics<parallel>], iteration_bounds = array<i64: 2>, scalar_prefetch = 1 : i64, scratch_operands = 0 : i64, tpu.core_type = #tpu.core_type<tc>, window_params = [{pipeline_mode = #tpu.pipeline_mode<synchronous>, transform_indices = @transform_0, window_bounds = array<i64: 2, 64>}, {pipeline_mode = #tpu.pipeline_mode<synchronous>, transform_indices = @transform_1, window_bounds = array<i64: 9, 8, 1>}, {pipeline_mode = #tpu.pipeline_mode<synchronous>, transform_indices = @transform_2, window_bounds = array<i64: 8, 1>}, {pipeline_mode = #tpu.pipeline_mode<synchronous>, transform_indices = @transform_3, window_bounds = array<i64: 9, 8, 16>}, {pipeline_mode = #tpu.pipeline_mode<synchronous>, transform_indices = @transform_4, window_bounds = array<i64: 16, 1>}, {transform_indices = @transform_5, window_bounds = array<i64: 1, 32, 32>}, {transform_indices = @transform_6, window_bounds = array<i64: 1, 16, 64>}]} {
    %0 = arith.index_cast %arg0 : i32 to index
    %c0 = arith.constant 0 : index
    %1 = memref.load %arg1[%0, %c0] : memref<2x4xi32, #tpu.memory_space<smem>>
    %2 = arith.index_cast %arg0 : i32 to index
    %c1 = arith.constant 1 : index
    %3 = memref.load %arg1[%2, %c1] : memref<2x4xi32, #tpu.memory_space<smem>>
    %4 = arith.index_cast %arg0 : i32 to index
    %c2 = arith.constant 2 : index
    %5 = memref.load %arg1[%4, %c2] : memref<2x4xi32, #tpu.memory_space<smem>>
    %6 = arith.index_cast %arg0 : i32 to index
    %c3 = arith.constant 3 : index
    %7 = memref.load %arg1[%6, %c3] : memref<2x4xi32, #tpu.memory_space<smem>>
    %8 = tpu.iota {dimensions = array<i32: 0>} : vector<32x1xi32>
    %9 = tpu.iota {dimensions = array<i32: 1>} : vector<1x32xi32>
    %10 = vector.broadcast %5 : i32 to vector<32x1xi32>
    %11 = arith.cmpi sge, %8, %10 : vector<32x1xi32>
    %12 = vector.broadcast %7 : i32 to vector<32x1xi32>
    %13 = arith.cmpi sle, %8, %12 : vector<32x1xi32>
    %14 = arith.andi %11, %13 : vector<32x1xi1>
    %15 = vector.broadcast %1 : i32 to vector<1x32xi32>
    %16 = arith.cmpi sge, %9, %15 : vector<1x32xi32>
    %17 = vector.broadcast %3 : i32 to vector<1x32xi32>
    %18 = arith.cmpi sle, %9, %17 : vector<1x32xi32>
    %19 = arith.andi %16, %18 : vector<1x32xi1>
    %20 = vector.broadcast %14 : vector<32x1xi1> to vector<32x32xi1>
    %21 = vector.broadcast %19 : vector<1x32xi1> to vector<32x32xi1>
    %22 = arith.andi %20, %21 : vector<32x32xi1>
    %23 = arith.extui %22 : vector<32x32xi1> to vector<32x32xi32>
    %24 = arith.sitofp %23 : vector<32x32xi32> to vector<32x32xf32>
    %c0_0 = arith.constant 0 : index
    %c0_1 = arith.constant 0 : index
    %c0_2 = arith.constant 0 : index
    %25 = vector.load %arg7[%c0_0, %c0_1, %c0_2] : memref<1x32x32xf32, #tpu.memory_space<vmem>>, vector<1x32x32xf32>
    %26 = vector.shape_cast %25 : vector<1x32x32xf32> to vector<32x32xf32>
    %27 = vector.shape_cast %24 : vector<32x32xf32> to vector<1x32x32xf32>
    tpu.vector_store %arg7[%c0_0, %c0_1, %c0_2], %27 {strides = array<i32>} : memref<1x32x32xf32, #tpu.memory_space<vmem>>, vector<1x32x32xf32>,
    %c0_3 = arith.constant 0 : index
    %c0_4 = arith.constant 0 : index
    %28 = vector.load %arg2[%c0_3, %c0_4] : memref<2x64xi32, #tpu.memory_space<vmem>>, vector<1x64xi32>
    %c1_5 = arith.constant 1 : index
    %c0_6 = arith.constant 0 : index
    %29 = vector.load %arg2[%c1_5, %c0_6] : memref<2x64xi32, #tpu.memory_space<vmem>>, vector<1x64xi32>
    %c-3_i32 = arith.constant -3 : i32
    %30 = vector.broadcast %c-3_i32 : i32 to vector<1x64xi32>
    %31 = arith.addi %28, %30 : vector<1x64xi32>
    %c-3_i32_7 = arith.constant -3 : i32
    %32 = vector.broadcast %c-3_i32_7 : i32 to vector<1x64xi32>
    %33 = arith.addi %29, %32 : vector<1x64xi32>
    %34 = vector.broadcast %5 : i32 to vector<1x64xi32>
    %35 = arith.cmpi sge, %31, %34 : vector<1x64xi32>
    %36 = vector.broadcast %7 : i32 to vector<1x64xi32>
    %37 = arith.cmpi sle, %31, %36 : vector<1x64xi32>
    %38 = arith.andi %35, %37 : vector<1x64xi1>
    %c0_i32 = arith.constant 0 : i32
    %39 = vector.broadcast %c0_i32 : i32 to vector<1x64xi32>
    %40 = arith.cmpi sge, %31, %39 : vector<1x64xi32>
    %41 = arith.andi %38, %40 : vector<1x64xi1>
    %c32_i32 = arith.constant 32 : i32
    %42 = vector.broadcast %c32_i32 : i32 to vector<1x64xi32>
    %43 = arith.cmpi slt, %31, %42 : vector<1x64xi32>
    %44 = arith.andi %41, %43 : vector<1x64xi1>
    %45 = arith.extui %44 : vector<1x64xi1> to vector<1x64xi32>
    %46 = arith.sitofp %45 : vector<1x64xi32> to vector<1x64xf32>
    %47 = vector.broadcast %1 : i32 to vector<1x64xi32>
    %48 = arith.cmpi sge, %33, %47 : vector<1x64xi32>
    %49 = vector.broadcast %3 : i32 to vector<1x64xi32>
    %50 = arith.cmpi sle, %33, %49 : vector<1x64xi32>
    %51 = arith.andi %48, %50 : vector<1x64xi1>
    %c0_i32_8 = arith.constant 0 : i32
    %52 = vector.broadcast %c0_i32_8 : i32 to vector<1x64xi32>
    %53 = arith.cmpi sge, %33, %52 : vector<1x64xi32>
    %54 = arith.andi %51, %53 : vector<1x64xi1>
    %c32_i32_9 = arith.constant 32 : i32
    %55 = vector.broadcast %c32_i32_9 : i32 to vector<1x64xi32>
    %56 = arith.cmpi slt, %33, %55 : vector<1x64xi32>
    %57 = arith.andi %54, %56 : vector<1x64xi1>
    %58 = arith.extui %57 : vector<1x64xi1> to vector<1x64xi32>
    %59 = arith.sitofp %58 : vector<1x64xi32> to vector<1x64xf32>
    %c-2_i32 = arith.constant -2 : i32
    %60 = vector.broadcast %c-2_i32 : i32 to vector<1x64xi32>
    %61 = arith.addi %28, %60 : vector<1x64xi32>
    %c-2_i32_10 = arith.constant -2 : i32
    %62 = vector.broadcast %c-2_i32_10 : i32 to vector<1x64xi32>
    %63 = arith.addi %29, %62 : vector<1x64xi32>
    %64 = vector.broadcast %5 : i32 to vector<1x64xi32>
    %65 = arith.cmpi sge, %61, %64 : vector<1x64xi32>
    %66 = vector.broadcast %7 : i32 to vector<1x64xi32>
    %67 = arith.cmpi sle, %61, %66 : vector<1x64xi32>
    %68 = arith.andi %65, %67 : vector<1x64xi1>
    %c0_i32_11 = arith.constant 0 : i32
    %69 = vector.broadcast %c0_i32_11 : i32 to vector<1x64xi32>
    %70 = arith.cmpi sge, %61, %69 : vector<1x64xi32>
    %71 = arith.andi %68, %70 : vector<1x64xi1>
    %c32_i32_12 = arith.constant 32 : i32
    %72 = vector.broadcast %c32_i32_12 : i32 to vector<1x64xi32>
    %73 = arith.cmpi slt, %61, %72 : vector<1x64xi32>
    %74 = arith.andi %71, %73 : vector<1x64xi1>
    %75 = arith.extui %74 : vector<1x64xi1> to vector<1x64xi32>
    %76 = arith.sitofp %75 : vector<1x64xi32> to vector<1x64xf32>
    %77 = vector.broadcast %1 : i32 to vector<1x64xi32>
    %78 = arith.cmpi sge, %63, %77 : vector<1x64xi32>
    %79 = vector.broadcast %3 : i32 to vector<1x64xi32>
    %80 = arith.cmpi sle, %63, %79 : vector<1x64xi32>
    %81 = arith.andi %78, %80 : vector<1x64xi1>
    %c0_i32_13 = arith.constant 0 : i32
    %82 = vector.broadcast %c0_i32_13 : i32 to vector<1x64xi32>
    %83 = arith.cmpi sge, %63, %82 : vector<1x64xi32>
    %84 = arith.andi %81, %83 : vector<1x64xi1>
    %c32_i32_14 = arith.constant 32 : i32
    %85 = vector.broadcast %c32_i32_14 : i32 to vector<1x64xi32>
    %86 = arith.cmpi slt, %63, %85 : vector<1x64xi32>
    %87 = arith.andi %84, %86 : vector<1x64xi1>
    %88 = arith.extui %87 : vector<1x64xi1> to vector<1x64xi32>
    %89 = arith.sitofp %88 : vector<1x64xi32> to vector<1x64xf32>
    %c-1_i32 = arith.constant -1 : i32
    %90 = vector.broadcast %c-1_i32 : i32 to vector<1x64xi32>
    %91 = arith.addi %28, %90 : vector<1x64xi32>
    %c-1_i32_15 = arith.constant -1 : i32
    %92 = vector.broadcast %c-1_i32_15 : i32 to vector<1x64xi32>
    %93 = arith.addi %29, %92 : vector<1x64xi32>
    %94 = vector.broadcast %5 : i32 to vector<1x64xi32>
    %95 = arith.cmpi sge, %91, %94 : vector<1x64xi32>
    %96 = vector.broadcast %7 : i32 to vector<1x64xi32>
    %97 = arith.cmpi sle, %91, %96 : vector<1x64xi32>
    %98 = arith.andi %95, %97 : vector<1x64xi1>
    %c0_i32_16 = arith.constant 0 : i32
    %99 = vector.broadcast %c0_i32_16 : i32 to vector<1x64xi32>
    %100 = arith.cmpi sge, %91, %99 : vector<1x64xi32>
    %101 = arith.andi %98, %100 : vector<1x64xi1>
    %c32_i32_17 = arith.constant 32 : i32
    %102 = vector.broadcast %c32_i32_17 : i32 to vector<1x64xi32>
    %103 = arith.cmpi slt, %91, %102 : vector<1x64xi32>
    %104 = arith.andi %101, %103 : vector<1x64xi1>
    %105 = arith.extui %104 : vector<1x64xi1> to vector<1x64xi32>
    %106 = arith.sitofp %105 : vector<1x64xi32> to vector<1x64xf32>
    %107 = vector.broadcast %1 : i32 to vector<1x64xi32>
    %108 = arith.cmpi sge, %93, %107 : vector<1x64xi32>
    %109 = vector.broadcast %3 : i32 to vector<1x64xi32>
    %110 = arith.cmpi sle, %93, %109 : vector<1x64xi32>
    %111 = arith.andi %108, %110 : vector<1x64xi1>
    %c0_i32_18 = arith.constant 0 : i32
    %112 = vector.broadcast %c0_i32_18 : i32 to vector<1x64xi32>
    %113 = arith.cmpi sge, %93, %112 : vector<1x64xi32>
    %114 = arith.andi %111, %113 : vector<1x64xi1>
    %c32_i32_19 = arith.constant 32 : i32
    %115 = vector.broadcast %c32_i32_19 : i32 to vector<1x64xi32>
    %116 = arith.cmpi slt, %93, %115 : vector<1x64xi32>
    %117 = arith.andi %114, %116 : vector<1x64xi1>
    %118 = arith.extui %117 : vector<1x64xi1> to vector<1x64xi32>
    %119 = arith.sitofp %118 : vector<1x64xi32> to vector<1x64xf32>
    %c0_i32_20 = arith.constant 0 : i32
    %120 = vector.broadcast %c0_i32_20 : i32 to vector<1x64xi32>
    %121 = arith.addi %28, %120 : vector<1x64xi32>
    %c0_i32_21 = arith.constant 0 : i32
    %122 = vector.broadcast %c0_i32_21 : i32 to vector<1x64xi32>
    %123 = arith.addi %29, %122 : vector<1x64xi32>
    %124 = vector.broadcast %5 : i32 to vector<1x64xi32>
    %125 = arith.cmpi sge, %121, %124 : vector<1x64xi32>
    %126 = vector.broadcast %7 : i32 to vector<1x64xi32>
    %127 = arith.cmpi sle, %121, %126 : vector<1x64xi32>
    %128 = arith.andi %125, %127 : vector<1x64xi1>
    %c0_i32_22 = arith.constant 0 : i32
    %129 = vector.broadcast %c0_i32_22 : i32 to vector<1x64xi32>
    %130 = arith.cmpi sge, %121, %129 : vector<1x64xi32>
    %131 = arith.andi %128, %130 : vector<1x64xi1>
    %c32_i32_23 = arith.constant 32 : i32
    %132 = vector.broadcast %c32_i32_23 : i32 to vector<1x64xi32>
    %133 = arith.cmpi slt, %121, %132 : vector<1x64xi32>
    %134 = arith.andi %131, %133 : vector<1x64xi1>
    %135 = arith.extui %134 : vector<1x64xi1> to vector<1x64xi32>
    %136 = arith.sitofp %135 : vector<1x64xi32> to vector<1x64xf32>
    %137 = vector.broadcast %1 : i32 to vector<1x64xi32>
    %138 = arith.cmpi sge, %123, %137 : vector<1x64xi32>
    %139 = vector.broadcast %3 : i32 to vector<1x64xi32>
    %140 = arith.cmpi sle, %123, %139 : vector<1x64xi32>
    %141 = arith.andi %138, %140 : vector<1x64xi1>
    %c0_i32_24 = arith.constant 0 : i32
    %142 = vector.broadcast %c0_i32_24 : i32 to vector<1x64xi32>
    %143 = arith.cmpi sge, %123, %142 : vector<1x64xi32>
    %144 = arith.andi %141, %143 : vector<1x64xi1>
    %c32_i32_25 = arith.constant 32 : i32
    %145 = vector.broadcast %c32_i32_25 : i32 to vector<1x64xi32>
    %146 = arith.cmpi slt, %123, %145 : vector<1x64xi32>
    %147 = arith.andi %144, %146 : vector<1x64xi1>
    %148 = arith.extui %147 : vector<1x64xi1> to vector<1x64xi32>
    %149 = arith.sitofp %148 : vector<1x64xi32> to vector<1x64xf32>
    %c1_i32 = arith.constant 1 : i32
    %150 = vector.broadcast %c1_i32 : i32 to vector<1x64xi32>
    %151 = arith.addi %28, %150 : vector<1x64xi32>
    %c1_i32_26 = arith.constant 1 : i32
    %152 = vector.broadcast %c1_i32_26 : i32 to vector<1x64xi32>
    %153 = arith.addi %29, %152 : vector<1x64xi32>
    %154 = vector.broadcast %5 : i32 to vector<1x64xi32>
    %155 = arith.cmpi sge, %151, %154 : vector<1x64xi32>
    %156 = vector.broadcast %7 : i32 to vector<1x64xi32>
    %157 = arith.cmpi sle, %151, %156 : vector<1x64xi32>
    %158 = arith.andi %155, %157 : vector<1x64xi1>
    %c0_i32_27 = arith.constant 0 : i32
    %159 = vector.broadcast %c0_i32_27 : i32 to vector<1x64xi32>
    %160 = arith.cmpi sge, %151, %159 : vector<1x64xi32>
    %161 = arith.andi %158, %160 : vector<1x64xi1>
    %c32_i32_28 = arith.constant 32 : i32
    %162 = vector.broadcast %c32_i32_28 : i32 to vector<1x64xi32>
    %163 = arith.cmpi slt, %151, %162 : vector<1x64xi32>
    %164 = arith.andi %161, %163 : vector<1x64xi1>
    %165 = arith.extui %164 : vector<1x64xi1> to vector<1x64xi32>
    %166 = arith.sitofp %165 : vector<1x64xi32> to vector<1x64xf32>
    %167 = vector.broadcast %1 : i32 to vector<1x64xi32>
    %168 = arith.cmpi sge, %153, %167 : vector<1x64xi32>
    %169 = vector.broadcast %3 : i32 to vector<1x64xi32>
    %170 = arith.cmpi sle, %153, %169 : vector<1x64xi32>
    %171 = arith.andi %168, %170 : vector<1x64xi1>
    %c0_i32_29 = arith.constant 0 : i32
    %172 = vector.broadcast %c0_i32_29 : i32 to vector<1x64xi32>
    %173 = arith.cmpi sge, %153, %172 : vector<1x64xi32>
    %174 = arith.andi %171, %173 : vector<1x64xi1>
    %c32_i32_30 = arith.constant 32 : i32
    %175 = vector.broadcast %c32_i32_30 : i32 to vector<1x64xi32>
    %176 = arith.cmpi slt, %153, %175 : vector<1x64xi32>
    %177 = arith.andi %174, %176 : vector<1x64xi1>
    %178 = arith.extui %177 : vector<1x64xi1> to vector<1x64xi32>
    %179 = arith.sitofp %178 : vector<1x64xi32> to vector<1x64xf32>
    %c2_i32 = arith.constant 2 : i32
    %180 = vector.broadcast %c2_i32 : i32 to vector<1x64xi32>
    %181 = arith.addi %28, %180 : vector<1x64xi32>
    %c2_i32_31 = arith.constant 2 : i32
    %182 = vector.broadcast %c2_i32_31 : i32 to vector<1x64xi32>
    %183 = arith.addi %29, %182 : vector<1x64xi32>
    %184 = vector.broadcast %5 : i32 to vector<1x64xi32>
    %185 = arith.cmpi sge, %181, %184 : vector<1x64xi32>
    %186 = vector.broadcast %7 : i32 to vector<1x64xi32>
    %187 = arith.cmpi sle, %181, %186 : vector<1x64xi32>
    %188 = arith.andi %185, %187 : vector<1x64xi1>
    %c0_i32_32 = arith.constant 0 : i32
    %189 = vector.broadcast %c0_i32_32 : i32 to vector<1x64xi32>
    %190 = arith.cmpi sge, %181, %189 : vector<1x64xi32>
    %191 = arith.andi %188, %190 : vector<1x64xi1>
    %c32_i32_33 = arith.constant 32 : i32
    %192 = vector.broadcast %c32_i32_33 : i32 to vector<1x64xi32>
    %193 = arith.cmpi slt, %181, %192 : vector<1x64xi32>
    %194 = arith.andi %191, %193 : vector<1x64xi1>
    %195 = arith.extui %194 : vector<1x64xi1> to vector<1x64xi32>
    %196 = arith.sitofp %195 : vector<1x64xi32> to vector<1x64xf32>
    %197 = vector.broadcast %1 : i32 to vector<1x64xi32>
    %198 = arith.cmpi sge, %183, %197 : vector<1x64xi32>
    %199 = vector.broadcast %3 : i32 to vector<1x64xi32>
    %200 = arith.cmpi sle, %183, %199 : vector<1x64xi32>
    %201 = arith.andi %198, %200 : vector<1x64xi1>
    %c0_i32_34 = arith.constant 0 : i32
    %202 = vector.broadcast %c0_i32_34 : i32 to vector<1x64xi32>
    %203 = arith.cmpi sge, %183, %202 : vector<1x64xi32>
    %204 = arith.andi %201, %203 : vector<1x64xi1>
    %c32_i32_35 = arith.constant 32 : i32
    %205 = vector.broadcast %c32_i32_35 : i32 to vector<1x64xi32>
    %206 = arith.cmpi slt, %183, %205 : vector<1x64xi32>
    %207 = arith.andi %204, %206 : vector<1x64xi1>
    %208 = arith.extui %207 : vector<1x64xi1> to vector<1x64xi32>
    %209 = arith.sitofp %208 : vector<1x64xi32> to vector<1x64xf32>
    %c3_i32 = arith.constant 3 : i32
    %210 = vector.broadcast %c3_i32 : i32 to vector<1x64xi32>
    %211 = arith.addi %28, %210 : vector<1x64xi32>
    %c3_i32_36 = arith.constant 3 : i32
    %212 = vector.broadcast %c3_i32_36 : i32 to vector<1x64xi32>
    %213 = arith.addi %29, %212 : vector<1x64xi32>
    %214 = vector.broadcast %5 : i32 to vector<1x64xi32>
    %215 = arith.cmpi sge, %211, %214 : vector<1x64xi32>
    %216 = vector.broadcast %7 : i32 to vector<1x64xi32>
    %217 = arith.cmpi sle, %211, %216 : vector<1x64xi32>
    %218 = arith.andi %215, %217 : vector<1x64xi1>
    %c0_i32_37 = arith.constant 0 : i32
    %219 = vector.broadcast %c0_i32_37 : i32 to vector<1x64xi32>
    %220 = arith.cmpi sge, %211, %219 : vector<1x64xi32>
    %221 = arith.andi %218, %220 : vector<1x64xi1>
    %c32_i32_38 = arith.constant 32 : i32
    %222 = vector.broadcast %c32_i32_38 : i32 to vector<1x64xi32>
    %223 = arith.cmpi slt, %211, %222 : vector<1x64xi32>
    %224 = arith.andi %221, %223 : vector<1x64xi1>
    %225 = arith.extui %224 : vector<1x64xi1> to vector<1x64xi32>
    %226 = arith.sitofp %225 : vector<1x64xi32> to vector<1x64xf32>
    %227 = vector.broadcast %1 : i32 to vector<1x64xi32>
    %228 = arith.cmpi sge, %213, %227 : vector<1x64xi32>
    %229 = vector.broadcast %3 : i32 to vector<1x64xi32>
    %230 = arith.cmpi sle, %213, %229 : vector<1x64xi32>
    %231 = arith.andi %228, %230 : vector<1x64xi1>
    %c0_i32_39 = arith.constant 0 : i32
    %232 = vector.broadcast %c0_i32_39 : i32 to vector<1x64xi32>
    %233 = arith.cmpi sge, %213, %232 : vector<1x64xi32>
    %234 = arith.andi %231, %233 : vector<1x64xi1>
    %c32_i32_40 = arith.constant 32 : i32
    %235 = vector.broadcast %c32_i32_40 : i32 to vector<1x64xi32>
    %236 = arith.cmpi slt, %213, %235 : vector<1x64xi32>
    %237 = arith.andi %234, %236 : vector<1x64xi1>
    %238 = arith.extui %237 : vector<1x64xi1> to vector<1x64xi32>
    %239 = arith.sitofp %238 : vector<1x64xi32> to vector<1x64xf32>
    %240 = arith.mulf %46, %59 : vector<1x64xf32>
    %241 = arith.mulf %46, %89 : vector<1x64xf32>
    %242 = arith.mulf %46, %119 : vector<1x64xf32>
    %243 = arith.mulf %46, %149 : vector<1x64xf32>
    %244 = arith.mulf %46, %179 : vector<1x64xf32>
    %245 = arith.mulf %46, %209 : vector<1x64xf32>
    %246 = arith.mulf %46, %239 : vector<1x64xf32>
    %247 = arith.mulf %76, %59 : vector<1x64xf32>
    %248 = arith.mulf %76, %89 : vector<1x64xf32>
    %249 = arith.mulf %76, %119 : vector<1x64xf32>
    %250 = arith.mulf %76, %149 : vector<1x64xf32>
    %251 = arith.mulf %76, %179 : vector<1x64xf32>
    %252 = arith.mulf %76, %209 : vector<1x64xf32>
    %253 = arith.mulf %76, %239 : vector<1x64xf32>
    %254 = arith.mulf %106, %59 : vector<1x64xf32>
    %255 = arith.mulf %106, %89 : vector<1x64xf32>
    %256 = arith.mulf %106, %119 : vector<1x64xf32>
    %257 = arith.mulf %106, %149 : vector<1x64xf32>
    %258 = arith.mulf %106, %179 : vector<1x64xf32>
    %259 = arith.mulf %106, %209 : vector<1x64xf32>
    %260 = arith.mulf %106, %239 : vector<1x64xf32>
    %261 = arith.mulf %136, %59 : vector<1x64xf32>
    %262 = arith.mulf %136, %89 : vector<1x64xf32>
    %263 = arith.mulf %136, %119 : vector<1x64xf32>
    %264 = arith.mulf %136, %149 : vector<1x64xf32>
    %265 = arith.mulf %136, %179 : vector<1x64xf32>
    %266 = arith.mulf %136, %209 : vector<1x64xf32>
    %267 = arith.mulf %136, %239 : vector<1x64xf32>
    %268 = arith.mulf %166, %59 : vector<1x64xf32>
    %269 = arith.mulf %166, %89 : vector<1x64xf32>
    %270 = arith.mulf %166, %119 : vector<1x64xf32>
    %271 = arith.mulf %166, %149 : vector<1x64xf32>
    %272 = arith.mulf %166, %179 : vector<1x64xf32>
    %273 = arith.mulf %166, %209 : vector<1x64xf32>
    %274 = arith.mulf %166, %239 : vector<1x64xf32>
    %275 = arith.mulf %196, %59 : vector<1x64xf32>
    %276 = arith.mulf %196, %89 : vector<1x64xf32>
    %277 = arith.mulf %196, %119 : vector<1x64xf32>
    %278 = arith.mulf %196, %149 : vector<1x64xf32>
    %279 = arith.mulf %196, %179 : vector<1x64xf32>
    %280 = arith.mulf %196, %209 : vector<1x64xf32>
    %281 = arith.mulf %196, %239 : vector<1x64xf32>
    %282 = arith.mulf %226, %59 : vector<1x64xf32>
    %283 = arith.mulf %226, %89 : vector<1x64xf32>
    %284 = arith.mulf %226, %119 : vector<1x64xf32>
    %285 = arith.mulf %226, %149 : vector<1x64xf32>
    %286 = arith.mulf %226, %179 : vector<1x64xf32>
    %287 = arith.mulf %226, %209 : vector<1x64xf32>
    %288 = arith.mulf %226, %239 : vector<1x64xf32>
    %c0_i32_41 = arith.constant 0 : i32
    %289 = vector.broadcast %c0_i32_41 : i32 to vector<1x64xi32>
    %290 = arith.cmpi sgt, %28, %289 : vector<1x64xi32>
    %291 = arith.extui %290 : vector<1x64xi1> to vector<1x64xi32>
    %292 = arith.sitofp %291 : vector<1x64xi32> to vector<1x64xf32>
    %c0_i32_42 = arith.constant 0 : i32
    %293 = vector.broadcast %c0_i32_42 : i32 to vector<1x64xi32>
    %294 = arith.cmpi sgt, %29, %293 : vector<1x64xi32>
    %295 = arith.extui %294 : vector<1x64xi1> to vector<1x64xi32>
    %296 = arith.sitofp %295 : vector<1x64xi32> to vector<1x64xf32>
    %297 = arith.mulf %292, %296 : vector<1x64xf32>
    %c0_43 = arith.constant 0 : index
    %c0_44 = arith.constant 0 : index
    %c0_45 = arith.constant 0 : index
    %298 = vector.load %arg3[%c0_43, %c0_44, %c0_45] : memref<9x8x1xf32, #tpu.memory_space<vmem>>, vector<9x8x1xf32>
    %c0_46 = arith.constant 0 : index
    %c0_47 = arith.constant 0 : index
    %299 = vector.load %arg4[%c0_46, %c0_47] : memref<8x1xf32, #tpu.memory_space<vmem>>, vector<8x1xf32>
    %c0_48 = arith.constant 0 : index
    %c0_49 = arith.constant 0 : index
    %c0_50 = arith.constant 0 : index
    %300 = vector.load %arg5[%c0_48, %c0_49, %c0_50] : memref<9x8x16xf32, #tpu.memory_space<vmem>>, vector<9x8x16xf32>
    %c0_51 = arith.constant 0 : index
    %c0_52 = arith.constant 0 : index
    %301 = vector.load %arg6[%c0_51, %c0_52] : memref<16x1xf32, #tpu.memory_space<vmem>>, vector<16x1xf32>
    %cst = arith.constant 0.000000e+00 : f32
    %302 = vector.broadcast %cst : f32 to vector<16x64xf32>
    %cst_53 = arith.constant 0.000000e+00 : f32
    %303 = vector.broadcast %cst_53 : f32 to vector<8x64xf32>
    %304 = vector.extract_strided_slice %298 {offsets = [0, 0, 0], sizes = [1, 8, 1], strides = [1, 1, 1]} : vector<9x8x1xf32> to vector<1x8x1xf32>
    %305 = vector.shape_cast %304 : vector<1x8x1xf32> to vector<8x1xf32>
    %306 = vector.broadcast %305 : vector<8x1xf32> to vector<8x64xf32>
    %307 = vector.broadcast %240 : vector<1x64xf32> to vector<8x64xf32>
    %308 = arith.mulf %306, %307 : vector<8x64xf32>
    %309 = arith.addf %303, %308 : vector<8x64xf32>
    %310 = vector.extract_strided_slice %298 {offsets = [1, 0, 0], sizes = [1, 8, 1], strides = [1, 1, 1]} : vector<9x8x1xf32> to vector<1x8x1xf32>
    %311 = vector.shape_cast %310 : vector<1x8x1xf32> to vector<8x1xf32>
    %312 = vector.broadcast %311 : vector<8x1xf32> to vector<8x64xf32>
    %313 = vector.broadcast %241 : vector<1x64xf32> to vector<8x64xf32>
    %314 = arith.mulf %312, %313 : vector<8x64xf32>
    %315 = arith.addf %309, %314 : vector<8x64xf32>
    %316 = vector.extract_strided_slice %298 {offsets = [2, 0, 0], sizes = [1, 8, 1], strides = [1, 1, 1]} : vector<9x8x1xf32> to vector<1x8x1xf32>
    %317 = vector.shape_cast %316 : vector<1x8x1xf32> to vector<8x1xf32>
    %318 = vector.broadcast %317 : vector<8x1xf32> to vector<8x64xf32>
    %319 = vector.broadcast %242 : vector<1x64xf32> to vector<8x64xf32>
    %320 = arith.mulf %318, %319 : vector<8x64xf32>
    %321 = arith.addf %315, %320 : vector<8x64xf32>
    %322 = vector.extract_strided_slice %298 {offsets = [3, 0, 0], sizes = [1, 8, 1], strides = [1, 1, 1]} : vector<9x8x1xf32> to vector<1x8x1xf32>
    %323 = vector.shape_cast %322 : vector<1x8x1xf32> to vector<8x1xf32>
    %324 = vector.broadcast %323 : vector<8x1xf32> to vector<8x64xf32>
    %325 = vector.broadcast %247 : vector<1x64xf32> to vector<8x64xf32>
    %326 = arith.mulf %324, %325 : vector<8x64xf32>
    %327 = arith.addf %321, %326 : vector<8x64xf32>
    %328 = vector.extract_strided_slice %298 {offsets = [4, 0, 0], sizes = [1, 8, 1], strides = [1, 1, 1]} : vector<9x8x1xf32> to vector<1x8x1xf32>
    %329 = vector.shape_cast %328 : vector<1x8x1xf32> to vector<8x1xf32>
    %330 = vector.broadcast %329 : vector<8x1xf32> to vector<8x64xf32>
    %331 = vector.broadcast %248 : vector<1x64xf32> to vector<8x64xf32>
    %332 = arith.mulf %330, %331 : vector<8x64xf32>
    %333 = arith.addf %327, %332 : vector<8x64xf32>
    %334 = vector.extract_strided_slice %298 {offsets = [5, 0, 0], sizes = [1, 8, 1], strides = [1, 1, 1]} : vector<9x8x1xf32> to vector<1x8x1xf32>
    %335 = vector.shape_cast %334 : vector<1x8x1xf32> to vector<8x1xf32>
    %336 = vector.broadcast %335 : vector<8x1xf32> to vector<8x64xf32>
    %337 = vector.broadcast %249 : vector<1x64xf32> to vector<8x64xf32>
    %338 = arith.mulf %336, %337 : vector<8x64xf32>
    %339 = arith.addf %333, %338 : vector<8x64xf32>
    %340 = vector.extract_strided_slice %298 {offsets = [6, 0, 0], sizes = [1, 8, 1], strides = [1, 1, 1]} : vector<9x8x1xf32> to vector<1x8x1xf32>
    %341 = vector.shape_cast %340 : vector<1x8x1xf32> to vector<8x1xf32>
    %342 = vector.broadcast %341 : vector<8x1xf32> to vector<8x64xf32>
    %343 = vector.broadcast %254 : vector<1x64xf32> to vector<8x64xf32>
    %344 = arith.mulf %342, %343 : vector<8x64xf32>
    %345 = arith.addf %339, %344 : vector<8x64xf32>
    %346 = vector.extract_strided_slice %298 {offsets = [7, 0, 0], sizes = [1, 8, 1], strides = [1, 1, 1]} : vector<9x8x1xf32> to vector<1x8x1xf32>
    %347 = vector.shape_cast %346 : vector<1x8x1xf32> to vector<8x1xf32>
    %348 = vector.broadcast %347 : vector<8x1xf32> to vector<8x64xf32>
    %349 = vector.broadcast %255 : vector<1x64xf32> to vector<8x64xf32>
    %350 = arith.mulf %348, %349 : vector<8x64xf32>
    %351 = arith.addf %345, %350 : vector<8x64xf32>
    %352 = vector.extract_strided_slice %298 {offsets = [8, 0, 0], sizes = [1, 8, 1], strides = [1, 1, 1]} : vector<9x8x1xf32> to vector<1x8x1xf32>
    %353 = vector.shape_cast %352 : vector<1x8x1xf32> to vector<8x1xf32>
    %354 = vector.broadcast %353 : vector<8x1xf32> to vector<8x64xf32>
    %355 = vector.broadcast %256 : vector<1x64xf32> to vector<8x64xf32>
    %356 = arith.mulf %354, %355 : vector<8x64xf32>
    %357 = arith.addf %351, %356 : vector<8x64xf32>
    %358 = vector.broadcast %299 : vector<8x1xf32> to vector<8x64xf32>
    %359 = arith.addf %357, %358 : vector<8x64xf32>
    %cst_54 = arith.constant 0.000000e+00 : f32
    %360 = vector.broadcast %cst_54 : f32 to vector<8x64xf32>
    %361 = arith.maximumf %359, %360 : vector<8x64xf32>
    %362 = vector.broadcast %297 : vector<1x64xf32> to vector<8x64xf32>
    %363 = arith.mulf %361, %362 : vector<8x64xf32>
    %364 = vector.extract_strided_slice %300 {offsets = [0, 0, 0], sizes = [1, 8, 16], strides = [1, 1, 1]} : vector<9x8x16xf32> to vector<1x8x16xf32>
    %365 = vector.shape_cast %364 : vector<1x8x16xf32> to vector<8x16xf32>
    %366 = vector.shape_cast %365 : vector<8x16xf32> to vector<8x16x1xf32>
    %367 = vector.shape_cast %363 : vector<8x64xf32> to vector<8x1x64xf32>
    %368 = vector.broadcast %366 : vector<8x16x1xf32> to vector<8x16x64xf32>
    %369 = vector.broadcast %367 : vector<8x1x64xf32> to vector<8x16x64xf32>
    %370 = arith.mulf %368, %369 : vector<8x16x64xf32>
    %cst_55 = arith.constant dense<0.000000e+00> : vector<16x64xf32>
    %371 = vector.multi_reduction <add>, %370, %cst_55 [0] : vector<8x16x64xf32> to vector<16x64xf32>
    %372 = arith.addf %302, %371 : vector<16x64xf32>
    %cst_56 = arith.constant 0.000000e+00 : f32
    %373 = vector.broadcast %cst_56 : f32 to vector<8x64xf32>
    %374 = vector.extract_strided_slice %298 {offsets = [0, 0, 0], sizes = [1, 8, 1], strides = [1, 1, 1]} : vector<9x8x1xf32> to vector<1x8x1xf32>
    %375 = vector.shape_cast %374 : vector<1x8x1xf32> to vector<8x1xf32>
    %376 = vector.broadcast %375 : vector<8x1xf32> to vector<8x64xf32>
    %377 = vector.broadcast %242 : vector<1x64xf32> to vector<8x64xf32>
    %378 = arith.mulf %376, %377 : vector<8x64xf32>
    %379 = arith.addf %373, %378 : vector<8x64xf32>
    %380 = vector.extract_strided_slice %298 {offsets = [1, 0, 0], sizes = [1, 8, 1], strides = [1, 1, 1]} : vector<9x8x1xf32> to vector<1x8x1xf32>
    %381 = vector.shape_cast %380 : vector<1x8x1xf32> to vector<8x1xf32>
    %382 = vector.broadcast %381 : vector<8x1xf32> to vector<8x64xf32>
    %383 = vector.broadcast %243 : vector<1x64xf32> to vector<8x64xf32>
    %384 = arith.mulf %382, %383 : vector<8x64xf32>
    %385 = arith.addf %379, %384 : vector<8x64xf32>
    %386 = vector.extract_strided_slice %298 {offsets = [2, 0, 0], sizes = [1, 8, 1], strides = [1, 1, 1]} : vector<9x8x1xf32> to vector<1x8x1xf32>
    %387 = vector.shape_cast %386 : vector<1x8x1xf32> to vector<8x1xf32>
    %388 = vector.broadcast %387 : vector<8x1xf32> to vector<8x64xf32>
    %389 = vector.broadcast %244 : vector<1x64xf32> to vector<8x64xf32>
    %390 = arith.mulf %388, %389 : vector<8x64xf32>
    %391 = arith.addf %385, %390 : vector<8x64xf32>
    %392 = vector.extract_strided_slice %298 {offsets = [3, 0, 0], sizes = [1, 8, 1], strides = [1, 1, 1]} : vector<9x8x1xf32> to vector<1x8x1xf32>
    %393 = vector.shape_cast %392 : vector<1x8x1xf32> to vector<8x1xf32>
    %394 = vector.broadcast %393 : vector<8x1xf32> to vector<8x64xf32>
    %395 = vector.broadcast %249 : vector<1x64xf32> to vector<8x64xf32>
    %396 = arith.mulf %394, %395 : vector<8x64xf32>
    %397 = arith.addf %391, %396 : vector<8x64xf32>
    %398 = vector.extract_strided_slice %298 {offsets = [4, 0, 0], sizes = [1, 8, 1], strides = [1, 1, 1]} : vector<9x8x1xf32> to vector<1x8x1xf32>
    %399 = vector.shape_cast %398 : vector<1x8x1xf32> to vector<8x1xf32>
    %400 = vector.broadcast %399 : vector<8x1xf32> to vector<8x64xf32>
    %401 = vector.broadcast %250 : vector<1x64xf32> to vector<8x64xf32>
    %402 = arith.mulf %400, %401 : vector<8x64xf32>
    %403 = arith.addf %397, %402 : vector<8x64xf32>
    %404 = vector.extract_strided_slice %298 {offsets = [5, 0, 0], sizes = [1, 8, 1], strides = [1, 1, 1]} : vector<9x8x1xf32> to vector<1x8x1xf32>
    %405 = vector.shape_cast %404 : vector<1x8x1xf32> to vector<8x1xf32>
    %406 = vector.broadcast %405 : vector<8x1xf32> to vector<8x64xf32>
    %407 = vector.broadcast %251 : vector<1x64xf32> to vector<8x64xf32>
    %408 = arith.mulf %406, %407 : vector<8x64xf32>
    %409 = arith.addf %403, %408 : vector<8x64xf32>
    %410 = vector.extract_strided_slice %298 {offsets = [6, 0, 0], sizes = [1, 8, 1], strides = [1, 1, 1]} : vector<9x8x1xf32> to vector<1x8x1xf32>
    %411 = vector.shape_cast %410 : vector<1x8x1xf32> to vector<8x1xf32>
    %412 = vector.broadcast %411 : vector<8x1xf32> to vector<8x64xf32>
    %413 = vector.broadcast %256 : vector<1x64xf32> to vector<8x64xf32>
    %414 = arith.mulf %412, %413 : vector<8x64xf32>
    %415 = arith.addf %409, %414 : vector<8x64xf32>
    %416 = vector.extract_strided_slice %298 {offsets = [7, 0, 0], sizes = [1, 8, 1], strides = [1, 1, 1]} : vector<9x8x1xf32> to vector<1x8x1xf32>
    %417 = vector.shape_cast %416 : vector<1x8x1xf32> to vector<8x1xf32>
    %418 = vector.broadcast %417 : vector<8x1xf32> to vector<8x64xf32>
    %419 = vector.broadcast %257 : vector<1x64xf32> to vector<8x64xf32>
    %420 = arith.mulf %418, %419 : vector<8x64xf32>
    %421 = arith.addf %415, %420 : vector<8x64xf32>
    %422 = vector.extract_strided_slice %298 {offsets = [8, 0, 0], sizes = [1, 8, 1], strides = [1, 1, 1]} : vector<9x8x1xf32> to vector<1x8x1xf32>
    %423 = vector.shape_cast %422 : vector<1x8x1xf32> to vector<8x1xf32>
    %424 = vector.broadcast %423 : vector<8x1xf32> to vector<8x64xf32>
    %425 = vector.broadcast %258 : vector<1x64xf32> to vector<8x64xf32>
    %426 = arith.mulf %424, %425 : vector<8x64xf32>
    %427 = arith.addf %421, %426 : vector<8x64xf32>
    %428 = vector.broadcast %299 : vector<8x1xf32> to vector<8x64xf32>
    %429 = arith.addf %427, %428 : vector<8x64xf32>
    %cst_57 = arith.constant 0.000000e+00 : f32
    %430 = vector.broadcast %cst_57 : f32 to vector<8x64xf32>
    %431 = arith.maximumf %429, %430 : vector<8x64xf32>
    %432 = vector.broadcast %292 : vector<1x64xf32> to vector<8x64xf32>
    %433 = arith.mulf %431, %432 : vector<8x64xf32>
    %434 = vector.extract_strided_slice %300 {offsets = [1, 0, 0], sizes = [1, 8, 16], strides = [1, 1, 1]} : vector<9x8x16xf32> to vector<1x8x16xf32>
    %435 = vector.shape_cast %434 : vector<1x8x16xf32> to vector<8x16xf32>
    %436 = vector.shape_cast %435 : vector<8x16xf32> to vector<8x16x1xf32>
    %437 = vector.shape_cast %433 : vector<8x64xf32> to vector<8x1x64xf32>
    %438 = vector.broadcast %436 : vector<8x16x1xf32> to vector<8x16x64xf32>
    %439 = vector.broadcast %437 : vector<8x1x64xf32> to vector<8x16x64xf32>
    %440 = arith.mulf %438, %439 : vector<8x16x64xf32>
    %cst_58 = arith.constant dense<0.000000e+00> : vector<16x64xf32>
    %441 = vector.multi_reduction <add>, %440, %cst_58 [0] : vector<8x16x64xf32> to vector<16x64xf32>
    %442 = arith.addf %372, %441 : vector<16x64xf32>
    %cst_59 = arith.constant 0.000000e+00 : f32
    %443 = vector.broadcast %cst_59 : f32 to vector<8x64xf32>
    %444 = vector.extract_strided_slice %298 {offsets = [0, 0, 0], sizes = [1, 8, 1], strides = [1, 1, 1]} : vector<9x8x1xf32> to vector<1x8x1xf32>
    %445 = vector.shape_cast %444 : vector<1x8x1xf32> to vector<8x1xf32>
    %446 = vector.broadcast %445 : vector<8x1xf32> to vector<8x64xf32>
    %447 = vector.broadcast %244 : vector<1x64xf32> to vector<8x64xf32>
    %448 = arith.mulf %446, %447 : vector<8x64xf32>
    %449 = arith.addf %443, %448 : vector<8x64xf32>
    %450 = vector.extract_strided_slice %298 {offsets = [1, 0, 0], sizes = [1, 8, 1], strides = [1, 1, 1]} : vector<9x8x1xf32> to vector<1x8x1xf32>
    %451 = vector.shape_cast %450 : vector<1x8x1xf32> to vector<8x1xf32>
    %452 = vector.broadcast %451 : vector<8x1xf32> to vector<8x64xf32>
    %453 = vector.broadcast %245 : vector<1x64xf32> to vector<8x64xf32>
    %454 = arith.mulf %452, %453 : vector<8x64xf32>
    %455 = arith.addf %449, %454 : vector<8x64xf32>
    %456 = vector.extract_strided_slice %298 {offsets = [2, 0, 0], sizes = [1, 8, 1], strides = [1, 1, 1]} : vector<9x8x1xf32> to vector<1x8x1xf32>
    %457 = vector.shape_cast %456 : vector<1x8x1xf32> to vector<8x1xf32>
    %458 = vector.broadcast %457 : vector<8x1xf32> to vector<8x64xf32>
    %459 = vector.broadcast %246 : vector<1x64xf32> to vector<8x64xf32>
    %460 = arith.mulf %458, %459 : vector<8x64xf32>
    %461 = arith.addf %455, %460 : vector<8x64xf32>
    %462 = vector.extract_strided_slice %298 {offsets = [3, 0, 0], sizes = [1, 8, 1], strides = [1, 1, 1]} : vector<9x8x1xf32> to vector<1x8x1xf32>
    %463 = vector.shape_cast %462 : vector<1x8x1xf32> to vector<8x1xf32>
    %464 = vector.broadcast %463 : vector<8x1xf32> to vector<8x64xf32>
    %465 = vector.broadcast %251 : vector<1x64xf32> to vector<8x64xf32>
    %466 = arith.mulf %464, %465 : vector<8x64xf32>
    %467 = arith.addf %461, %466 : vector<8x64xf32>
    %468 = vector.extract_strided_slice %298 {offsets = [4, 0, 0], sizes = [1, 8, 1], strides = [1, 1, 1]} : vector<9x8x1xf32> to vector<1x8x1xf32>
    %469 = vector.shape_cast %468 : vector<1x8x1xf32> to vector<8x1xf32>
    %470 = vector.broadcast %469 : vector<8x1xf32> to vector<8x64xf32>
    %471 = vector.broadcast %252 : vector<1x64xf32> to vector<8x64xf32>
    %472 = arith.mulf %470, %471 : vector<8x64xf32>
    %473 = arith.addf %467, %472 : vector<8x64xf32>
    %474 = vector.extract_strided_slice %298 {offsets = [5, 0, 0], sizes = [1, 8, 1], strides = [1, 1, 1]} : vector<9x8x1xf32> to vector<1x8x1xf32>
    %475 = vector.shape_cast %474 : vector<1x8x1xf32> to vector<8x1xf32>
    %476 = vector.broadcast %475 : vector<8x1xf32> to vector<8x64xf32>
    %477 = vector.broadcast %253 : vector<1x64xf32> to vector<8x64xf32>
    %478 = arith.mulf %476, %477 : vector<8x64xf32>
    %479 = arith.addf %473, %478 : vector<8x64xf32>
    %480 = vector.extract_strided_slice %298 {offsets = [6, 0, 0], sizes = [1, 8, 1], strides = [1, 1, 1]} : vector<9x8x1xf32> to vector<1x8x1xf32>
    %481 = vector.shape_cast %480 : vector<1x8x1xf32> to vector<8x1xf32>
    %482 = vector.broadcast %481 : vector<8x1xf32> to vector<8x64xf32>
    %483 = vector.broadcast %258 : vector<1x64xf32> to vector<8x64xf32>
    %484 = arith.mulf %482, %483 : vector<8x64xf32>
    %485 = arith.addf %479, %484 : vector<8x64xf32>
    %486 = vector.extract_strided_slice %298 {offsets = [7, 0, 0], sizes = [1, 8, 1], strides = [1, 1, 1]} : vector<9x8x1xf32> to vector<1x8x1xf32>
    %487 = vector.shape_cast %486 : vector<1x8x1xf32> to vector<8x1xf32>
    %488 = vector.broadcast %487 : vector<8x1xf32> to vector<8x64xf32>
    %489 = vector.broadcast %259 : vector<1x64xf32> to vector<8x64xf32>
    %490 = arith.mulf %488, %489 : vector<8x64xf32>
    %491 = arith.addf %485, %490 : vector<8x64xf32>
    %492 = vector.extract_strided_slice %298 {offsets = [8, 0, 0], sizes = [1, 8, 1], strides = [1, 1, 1]} : vector<9x8x1xf32> to vector<1x8x1xf32>
    %493 = vector.shape_cast %492 : vector<1x8x1xf32> to vector<8x1xf32>
    %494 = vector.broadcast %493 : vector<8x1xf32> to vector<8x64xf32>
    %495 = vector.broadcast %260 : vector<1x64xf32> to vector<8x64xf32>
    %496 = arith.mulf %494, %495 : vector<8x64xf32>
    %497 = arith.addf %491, %496 : vector<8x64xf32>
    %498 = vector.broadcast %299 : vector<8x1xf32> to vector<8x64xf32>
    %499 = arith.addf %497, %498 : vector<8x64xf32>
    %cst_60 = arith.constant 0.000000e+00 : f32
    %500 = vector.broadcast %cst_60 : f32 to vector<8x64xf32>
    %501 = arith.maximumf %499, %500 : vector<8x64xf32>
    %502 = vector.broadcast %292 : vector<1x64xf32> to vector<8x64xf32>
    %503 = arith.mulf %501, %502 : vector<8x64xf32>
    %504 = vector.extract_strided_slice %300 {offsets = [2, 0, 0], sizes = [1, 8, 16], strides = [1, 1, 1]} : vector<9x8x16xf32> to vector<1x8x16xf32>
    %505 = vector.shape_cast %504 : vector<1x8x16xf32> to vector<8x16xf32>
    %506 = vector.shape_cast %505 : vector<8x16xf32> to vector<8x16x1xf32>
    %507 = vector.shape_cast %503 : vector<8x64xf32> to vector<8x1x64xf32>
    %508 = vector.broadcast %506 : vector<8x16x1xf32> to vector<8x16x64xf32>
    %509 = vector.broadcast %507 : vector<8x1x64xf32> to vector<8x16x64xf32>
    %510 = arith.mulf %508, %509 : vector<8x16x64xf32>
    %cst_61 = arith.constant dense<0.000000e+00> : vector<16x64xf32>
    %511 = vector.multi_reduction <add>, %510, %cst_61 [0] : vector<8x16x64xf32> to vector<16x64xf32>
    %512 = arith.addf %442, %511 : vector<16x64xf32>
    %cst_62 = arith.constant 0.000000e+00 : f32
    %513 = vector.broadcast %cst_62 : f32 to vector<8x64xf32>
    %514 = vector.extract_strided_slice %298 {offsets = [0, 0, 0], sizes = [1, 8, 1], strides = [1, 1, 1]} : vector<9x8x1xf32> to vector<1x8x1xf32>
    %515 = vector.shape_cast %514 : vector<1x8x1xf32> to vector<8x1xf32>
    %516 = vector.broadcast %515 : vector<8x1xf32> to vector<8x64xf32>
    %517 = vector.broadcast %254 : vector<1x64xf32> to vector<8x64xf32>
    %518 = arith.mulf %516, %517 : vector<8x64xf32>
    %519 = arith.addf %513, %518 : vector<8x64xf32>
    %520 = vector.extract_strided_slice %298 {offsets = [1, 0, 0], sizes = [1, 8, 1], strides = [1, 1, 1]} : vector<9x8x1xf32> to vector<1x8x1xf32>
    %521 = vector.shape_cast %520 : vector<1x8x1xf32> to vector<8x1xf32>
    %522 = vector.broadcast %521 : vector<8x1xf32> to vector<8x64xf32>
    %523 = vector.broadcast %255 : vector<1x64xf32> to vector<8x64xf32>
    %524 = arith.mulf %522, %523 : vector<8x64xf32>
    %525 = arith.addf %519, %524 : vector<8x64xf32>
    %526 = vector.extract_strided_slice %298 {offsets = [2, 0, 0], sizes = [1, 8, 1], strides = [1, 1, 1]} : vector<9x8x1xf32> to vector<1x8x1xf32>
    %527 = vector.shape_cast %526 : vector<1x8x1xf32> to vector<8x1xf32>
    %528 = vector.broadcast %527 : vector<8x1xf32> to vector<8x64xf32>
    %529 = vector.broadcast %256 : vector<1x64xf32> to vector<8x64xf32>
    %530 = arith.mulf %528, %529 : vector<8x64xf32>
    %531 = arith.addf %525, %530 : vector<8x64xf32>
    %532 = vector.extract_strided_slice %298 {offsets = [3, 0, 0], sizes = [1, 8, 1], strides = [1, 1, 1]} : vector<9x8x1xf32> to vector<1x8x1xf32>
    %533 = vector.shape_cast %532 : vector<1x8x1xf32> to vector<8x1xf32>
    %534 = vector.broadcast %533 : vector<8x1xf32> to vector<8x64xf32>
    %535 = vector.broadcast %261 : vector<1x64xf32> to vector<8x64xf32>
    %536 = arith.mulf %534, %535 : vector<8x64xf32>
    %537 = arith.addf %531, %536 : vector<8x64xf32>
    %538 = vector.extract_strided_slice %298 {offsets = [4, 0, 0], sizes = [1, 8, 1], strides = [1, 1, 1]} : vector<9x8x1xf32> to vector<1x8x1xf32>
    %539 = vector.shape_cast %538 : vector<1x8x1xf32> to vector<8x1xf32>
    %540 = vector.broadcast %539 : vector<8x1xf32> to vector<8x64xf32>
    %541 = vector.broadcast %262 : vector<1x64xf32> to vector<8x64xf32>
    %542 = arith.mulf %540, %541 : vector<8x64xf32>
    %543 = arith.addf %537, %542 : vector<8x64xf32>
    %544 = vector.extract_strided_slice %298 {offsets = [5, 0, 0], sizes = [1, 8, 1], strides = [1, 1, 1]} : vector<9x8x1xf32> to vector<1x8x1xf32>
    %545 = vector.shape_cast %544 : vector<1x8x1xf32> to vector<8x1xf32>
    %546 = vector.broadcast %545 : vector<8x1xf32> to vector<8x64xf32>
    %547 = vector.broadcast %263 : vector<1x64xf32> to vector<8x64xf32>
    %548 = arith.mulf %546, %547 : vector<8x64xf32>
    %549 = arith.addf %543, %548 : vector<8x64xf32>
    %550 = vector.extract_strided_slice %298 {offsets = [6, 0, 0], sizes = [1, 8, 1], strides = [1, 1, 1]} : vector<9x8x1xf32> to vector<1x8x1xf32>
    %551 = vector.shape_cast %550 : vector<1x8x1xf32> to vector<8x1xf32>
    %552 = vector.broadcast %551 : vector<8x1xf32> to vector<8x64xf32>
    %553 = vector.broadcast %268 : vector<1x64xf32> to vector<8x64xf32>
    %554 = arith.mulf %552, %553 : vector<8x64xf32>
    %555 = arith.addf %549, %554 : vector<8x64xf32>
    %556 = vector.extract_strided_slice %298 {offsets = [7, 0, 0], sizes = [1, 8, 1], strides = [1, 1, 1]} : vector<9x8x1xf32> to vector<1x8x1xf32>
    %557 = vector.shape_cast %556 : vector<1x8x1xf32> to vector<8x1xf32>
    %558 = vector.broadcast %557 : vector<8x1xf32> to vector<8x64xf32>
    %559 = vector.broadcast %269 : vector<1x64xf32> to vector<8x64xf32>
    %560 = arith.mulf %558, %559 : vector<8x64xf32>
    %561 = arith.addf %555, %560 : vector<8x64xf32>
    %562 = vector.extract_strided_slice %298 {offsets = [8, 0, 0], sizes = [1, 8, 1], strides = [1, 1, 1]} : vector<9x8x1xf32> to vector<1x8x1xf32>
    %563 = vector.shape_cast %562 : vector<1x8x1xf32> to vector<8x1xf32>
    %564 = vector.broadcast %563 : vector<8x1xf32> to vector<8x64xf32>
    %565 = vector.broadcast %270 : vector<1x64xf32> to vector<8x64xf32>
    %566 = arith.mulf %564, %565 : vector<8x64xf32>
    %567 = arith.addf %561, %566 : vector<8x64xf32>
    %568 = vector.broadcast %299 : vector<8x1xf32> to vector<8x64xf32>
    %569 = arith.addf %567, %568 : vector<8x64xf32>
    %cst_63 = arith.constant 0.000000e+00 : f32
    %570 = vector.broadcast %cst_63 : f32 to vector<8x64xf32>
    %571 = arith.maximumf %569, %570 : vector<8x64xf32>
    %572 = vector.broadcast %296 : vector<1x64xf32> to vector<8x64xf32>
    %573 = arith.mulf %571, %572 : vector<8x64xf32>
    %574 = vector.extract_strided_slice %300 {offsets = [3, 0, 0], sizes = [1, 8, 16], strides = [1, 1, 1]} : vector<9x8x16xf32> to vector<1x8x16xf32>
    %575 = vector.shape_cast %574 : vector<1x8x16xf32> to vector<8x16xf32>
    %576 = vector.shape_cast %575 : vector<8x16xf32> to vector<8x16x1xf32>
    %577 = vector.shape_cast %573 : vector<8x64xf32> to vector<8x1x64xf32>
    %578 = vector.broadcast %576 : vector<8x16x1xf32> to vector<8x16x64xf32>
    %579 = vector.broadcast %577 : vector<8x1x64xf32> to vector<8x16x64xf32>
    %580 = arith.mulf %578, %579 : vector<8x16x64xf32>
    %cst_64 = arith.constant dense<0.000000e+00> : vector<16x64xf32>
    %581 = vector.multi_reduction <add>, %580, %cst_64 [0] : vector<8x16x64xf32> to vector<16x64xf32>
    %582 = arith.addf %512, %581 : vector<16x64xf32>
    %cst_65 = arith.constant 0.000000e+00 : f32
    %583 = vector.broadcast %cst_65 : f32 to vector<8x64xf32>
    %584 = vector.extract_strided_slice %298 {offsets = [0, 0, 0], sizes = [1, 8, 1], strides = [1, 1, 1]} : vector<9x8x1xf32> to vector<1x8x1xf32>
    %585 = vector.shape_cast %584 : vector<1x8x1xf32> to vector<8x1xf32>
    %586 = vector.broadcast %585 : vector<8x1xf32> to vector<8x64xf32>
    %587 = vector.broadcast %256 : vector<1x64xf32> to vector<8x64xf32>
    %588 = arith.mulf %586, %587 : vector<8x64xf32>
    %589 = arith.addf %583, %588 : vector<8x64xf32>
    %590 = vector.extract_strided_slice %298 {offsets = [1, 0, 0], sizes = [1, 8, 1], strides = [1, 1, 1]} : vector<9x8x1xf32> to vector<1x8x1xf32>
    %591 = vector.shape_cast %590 : vector<1x8x1xf32> to vector<8x1xf32>
    %592 = vector.broadcast %591 : vector<8x1xf32> to vector<8x64xf32>
    %593 = vector.broadcast %257 : vector<1x64xf32> to vector<8x64xf32>
    %594 = arith.mulf %592, %593 : vector<8x64xf32>
    %595 = arith.addf %589, %594 : vector<8x64xf32>
    %596 = vector.extract_strided_slice %298 {offsets = [2, 0, 0], sizes = [1, 8, 1], strides = [1, 1, 1]} : vector<9x8x1xf32> to vector<1x8x1xf32>
    %597 = vector.shape_cast %596 : vector<1x8x1xf32> to vector<8x1xf32>
    %598 = vector.broadcast %597 : vector<8x1xf32> to vector<8x64xf32>
    %599 = vector.broadcast %258 : vector<1x64xf32> to vector<8x64xf32>
    %600 = arith.mulf %598, %599 : vector<8x64xf32>
    %601 = arith.addf %595, %600 : vector<8x64xf32>
    %602 = vector.extract_strided_slice %298 {offsets = [3, 0, 0], sizes = [1, 8, 1], strides = [1, 1, 1]} : vector<9x8x1xf32> to vector<1x8x1xf32>
    %603 = vector.shape_cast %602 : vector<1x8x1xf32> to vector<8x1xf32>
    %604 = vector.broadcast %603 : vector<8x1xf32> to vector<8x64xf32>
    %605 = vector.broadcast %263 : vector<1x64xf32> to vector<8x64xf32>
    %606 = arith.mulf %604, %605 : vector<8x64xf32>
    %607 = arith.addf %601, %606 : vector<8x64xf32>
    %608 = vector.extract_strided_slice %298 {offsets = [4, 0, 0], sizes = [1, 8, 1], strides = [1, 1, 1]} : vector<9x8x1xf32> to vector<1x8x1xf32>
    %609 = vector.shape_cast %608 : vector<1x8x1xf32> to vector<8x1xf32>
    %610 = vector.broadcast %609 : vector<8x1xf32> to vector<8x64xf32>
    %611 = vector.broadcast %264 : vector<1x64xf32> to vector<8x64xf32>
    %612 = arith.mulf %610, %611 : vector<8x64xf32>
    %613 = arith.addf %607, %612 : vector<8x64xf32>
    %614 = vector.extract_strided_slice %298 {offsets = [5, 0, 0], sizes = [1, 8, 1], strides = [1, 1, 1]} : vector<9x8x1xf32> to vector<1x8x1xf32>
    %615 = vector.shape_cast %614 : vector<1x8x1xf32> to vector<8x1xf32>
    %616 = vector.broadcast %615 : vector<8x1xf32> to vector<8x64xf32>
    %617 = vector.broadcast %265 : vector<1x64xf32> to vector<8x64xf32>
    %618 = arith.mulf %616, %617 : vector<8x64xf32>
    %619 = arith.addf %613, %618 : vector<8x64xf32>
    %620 = vector.extract_strided_slice %298 {offsets = [6, 0, 0], sizes = [1, 8, 1], strides = [1, 1, 1]} : vector<9x8x1xf32> to vector<1x8x1xf32>
    %621 = vector.shape_cast %620 : vector<1x8x1xf32> to vector<8x1xf32>
    %622 = vector.broadcast %621 : vector<8x1xf32> to vector<8x64xf32>
    %623 = vector.broadcast %270 : vector<1x64xf32> to vector<8x64xf32>
    %624 = arith.mulf %622, %623 : vector<8x64xf32>
    %625 = arith.addf %619, %624 : vector<8x64xf32>
    %626 = vector.extract_strided_slice %298 {offsets = [7, 0, 0], sizes = [1, 8, 1], strides = [1, 1, 1]} : vector<9x8x1xf32> to vector<1x8x1xf32>
    %627 = vector.shape_cast %626 : vector<1x8x1xf32> to vector<8x1xf32>
    %628 = vector.broadcast %627 : vector<8x1xf32> to vector<8x64xf32>
    %629 = vector.broadcast %271 : vector<1x64xf32> to vector<8x64xf32>
    %630 = arith.mulf %628, %629 : vector<8x64xf32>
    %631 = arith.addf %625, %630 : vector<8x64xf32>
    %632 = vector.extract_strided_slice %298 {offsets = [8, 0, 0], sizes = [1, 8, 1], strides = [1, 1, 1]} : vector<9x8x1xf32> to vector<1x8x1xf32>
    %633 = vector.shape_cast %632 : vector<1x8x1xf32> to vector<8x1xf32>
    %634 = vector.broadcast %633 : vector<8x1xf32> to vector<8x64xf32>
    %635 = vector.broadcast %272 : vector<1x64xf32> to vector<8x64xf32>
    %636 = arith.mulf %634, %635 : vector<8x64xf32>
    %637 = arith.addf %631, %636 : vector<8x64xf32>
    %638 = vector.broadcast %299 : vector<8x1xf32> to vector<8x64xf32>
    %639 = arith.addf %637, %638 : vector<8x64xf32>
    %cst_66 = arith.constant 0.000000e+00 : f32
    %640 = vector.broadcast %cst_66 : f32 to vector<8x64xf32>
    %641 = arith.maximumf %639, %640 : vector<8x64xf32>
    %642 = vector.extract_strided_slice %300 {offsets = [4, 0, 0], sizes = [1, 8, 16], strides = [1, 1, 1]} : vector<9x8x16xf32> to vector<1x8x16xf32>
    %643 = vector.shape_cast %642 : vector<1x8x16xf32> to vector<8x16xf32>
    %644 = vector.shape_cast %643 : vector<8x16xf32> to vector<8x16x1xf32>
    %645 = vector.shape_cast %641 : vector<8x64xf32> to vector<8x1x64xf32>
    %646 = vector.broadcast %644 : vector<8x16x1xf32> to vector<8x16x64xf32>
    %647 = vector.broadcast %645 : vector<8x1x64xf32> to vector<8x16x64xf32>
    %648 = arith.mulf %646, %647 : vector<8x16x64xf32>
    %cst_67 = arith.constant dense<0.000000e+00> : vector<16x64xf32>
    %649 = vector.multi_reduction <add>, %648, %cst_67 [0] : vector<8x16x64xf32> to vector<16x64xf32>
    %650 = arith.addf %582, %649 : vector<16x64xf32>
    %cst_68 = arith.constant 0.000000e+00 : f32
    %651 = vector.broadcast %cst_68 : f32 to vector<8x64xf32>
    %652 = vector.extract_strided_slice %298 {offsets = [0, 0, 0], sizes = [1, 8, 1], strides = [1, 1, 1]} : vector<9x8x1xf32> to vector<1x8x1xf32>
    %653 = vector.shape_cast %652 : vector<1x8x1xf32> to vector<8x1xf32>
    %654 = vector.broadcast %653 : vector<8x1xf32> to vector<8x64xf32>
    %655 = vector.broadcast %258 : vector<1x64xf32> to vector<8x64xf32>
    %656 = arith.mulf %654, %655 : vector<8x64xf32>
    %657 = arith.addf %651, %656 : vector<8x64xf32>
    %658 = vector.extract_strided_slice %298 {offsets = [1, 0, 0], sizes = [1, 8, 1], strides = [1, 1, 1]} : vector<9x8x1xf32> to vector<1x8x1xf32>
    %659 = vector.shape_cast %658 : vector<1x8x1xf32> to vector<8x1xf32>
    %660 = vector.broadcast %659 : vector<8x1xf32> to vector<8x64xf32>
    %661 = vector.broadcast %259 : vector<1x64xf32> to vector<8x64xf32>
    %662 = arith.mulf %660, %661 : vector<8x64xf32>
    %663 = arith.addf %657, %662 : vector<8x64xf32>
    %664 = vector.extract_strided_slice %298 {offsets = [2, 0, 0], sizes = [1, 8, 1], strides = [1, 1, 1]} : vector<9x8x1xf32> to vector<1x8x1xf32>
    %665 = vector.shape_cast %664 : vector<1x8x1xf32> to vector<8x1xf32>
    %666 = vector.broadcast %665 : vector<8x1xf32> to vector<8x64xf32>
    %667 = vector.broadcast %260 : vector<1x64xf32> to vector<8x64xf32>
    %668 = arith.mulf %666, %667 : vector<8x64xf32>
    %669 = arith.addf %663, %668 : vector<8x64xf32>
    %670 = vector.extract_strided_slice %298 {offsets = [3, 0, 0], sizes = [1, 8, 1], strides = [1, 1, 1]} : vector<9x8x1xf32> to vector<1x8x1xf32>
    %671 = vector.shape_cast %670 : vector<1x8x1xf32> to vector<8x1xf32>
    %672 = vector.broadcast %671 : vector<8x1xf32> to vector<8x64xf32>
    %673 = vector.broadcast %265 : vector<1x64xf32> to vector<8x64xf32>
    %674 = arith.mulf %672, %673 : vector<8x64xf32>
    %675 = arith.addf %669, %674 : vector<8x64xf32>
    %676 = vector.extract_strided_slice %298 {offsets = [4, 0, 0], sizes = [1, 8, 1], strides = [1, 1, 1]} : vector<9x8x1xf32> to vector<1x8x1xf32>
    %677 = vector.shape_cast %676 : vector<1x8x1xf32> to vector<8x1xf32>
    %678 = vector.broadcast %677 : vector<8x1xf32> to vector<8x64xf32>
    %679 = vector.broadcast %266 : vector<1x64xf32> to vector<8x64xf32>
    %680 = arith.mulf %678, %679 : vector<8x64xf32>
    %681 = arith.addf %675, %680 : vector<8x64xf32>
    %682 = vector.extract_strided_slice %298 {offsets = [5, 0, 0], sizes = [1, 8, 1], strides = [1, 1, 1]} : vector<9x8x1xf32> to vector<1x8x1xf32>
    %683 = vector.shape_cast %682 : vector<1x8x1xf32> to vector<8x1xf32>
    %684 = vector.broadcast %683 : vector<8x1xf32> to vector<8x64xf32>
    %685 = vector.broadcast %267 : vector<1x64xf32> to vector<8x64xf32>
    %686 = arith.mulf %684, %685 : vector<8x64xf32>
    %687 = arith.addf %681, %686 : vector<8x64xf32>
    %688 = vector.extract_strided_slice %298 {offsets = [6, 0, 0], sizes = [1, 8, 1], strides = [1, 1, 1]} : vector<9x8x1xf32> to vector<1x8x1xf32>
    %689 = vector.shape_cast %688 : vector<1x8x1xf32> to vector<8x1xf32>
    %690 = vector.broadcast %689 : vector<8x1xf32> to vector<8x64xf32>
    %691 = vector.broadcast %272 : vector<1x64xf32> to vector<8x64xf32>
    %692 = arith.mulf %690, %691 : vector<8x64xf32>
    %693 = arith.addf %687, %692 : vector<8x64xf32>
    %694 = vector.extract_strided_slice %298 {offsets = [7, 0, 0], sizes = [1, 8, 1], strides = [1, 1, 1]} : vector<9x8x1xf32> to vector<1x8x1xf32>
    %695 = vector.shape_cast %694 : vector<1x8x1xf32> to vector<8x1xf32>
    %696 = vector.broadcast %695 : vector<8x1xf32> to vector<8x64xf32>
    %697 = vector.broadcast %273 : vector<1x64xf32> to vector<8x64xf32>
    %698 = arith.mulf %696, %697 : vector<8x64xf32>
    %699 = arith.addf %693, %698 : vector<8x64xf32>
    %700 = vector.extract_strided_slice %298 {offsets = [8, 0, 0], sizes = [1, 8, 1], strides = [1, 1, 1]} : vector<9x8x1xf32> to vector<1x8x1xf32>
    %701 = vector.shape_cast %700 : vector<1x8x1xf32> to vector<8x1xf32>
    %702 = vector.broadcast %701 : vector<8x1xf32> to vector<8x64xf32>
    %703 = vector.broadcast %274 : vector<1x64xf32> to vector<8x64xf32>
    %704 = arith.mulf %702, %703 : vector<8x64xf32>
    %705 = arith.addf %699, %704 : vector<8x64xf32>
    %706 = vector.broadcast %299 : vector<8x1xf32> to vector<8x64xf32>
    %707 = arith.addf %705, %706 : vector<8x64xf32>
    %cst_69 = arith.constant 0.000000e+00 : f32
    %708 = vector.broadcast %cst_69 : f32 to vector<8x64xf32>
    %709 = arith.maximumf %707, %708 : vector<8x64xf32>
    %710 = vector.extract_strided_slice %300 {offsets = [5, 0, 0], sizes = [1, 8, 16], strides = [1, 1, 1]} : vector<9x8x16xf32> to vector<1x8x16xf32>
    %711 = vector.shape_cast %710 : vector<1x8x16xf32> to vector<8x16xf32>
    %712 = vector.shape_cast %711 : vector<8x16xf32> to vector<8x16x1xf32>
    %713 = vector.shape_cast %709 : vector<8x64xf32> to vector<8x1x64xf32>
    %714 = vector.broadcast %712 : vector<8x16x1xf32> to vector<8x16x64xf32>
    %715 = vector.broadcast %713 : vector<8x1x64xf32> to vector<8x16x64xf32>
    %716 = arith.mulf %714, %715 : vector<8x16x64xf32>
    %cst_70 = arith.constant dense<0.000000e+00> : vector<16x64xf32>
    %717 = vector.multi_reduction <add>, %716, %cst_70 [0] : vector<8x16x64xf32> to vector<16x64xf32>
    %718 = arith.addf %650, %717 : vector<16x64xf32>
    %cst_71 = arith.constant 0.000000e+00 : f32
    %719 = vector.broadcast %cst_71 : f32 to vector<8x64xf32>
    %720 = vector.extract_strided_slice %298 {offsets = [0, 0, 0], sizes = [1, 8, 1], strides = [1, 1, 1]} : vector<9x8x1xf32> to vector<1x8x1xf32>
    %721 = vector.shape_cast %720 : vector<1x8x1xf32> to vector<8x1xf32>
    %722 = vector.broadcast %721 : vector<8x1xf32> to vector<8x64xf32>
    %723 = vector.broadcast %268 : vector<1x64xf32> to vector<8x64xf32>
    %724 = arith.mulf %722, %723 : vector<8x64xf32>
    %725 = arith.addf %719, %724 : vector<8x64xf32>
    %726 = vector.extract_strided_slice %298 {offsets = [1, 0, 0], sizes = [1, 8, 1], strides = [1, 1, 1]} : vector<9x8x1xf32> to vector<1x8x1xf32>
    %727 = vector.shape_cast %726 : vector<1x8x1xf32> to vector<8x1xf32>
    %728 = vector.broadcast %727 : vector<8x1xf32> to vector<8x64xf32>
    %729 = vector.broadcast %269 : vector<1x64xf32> to vector<8x64xf32>
    %730 = arith.mulf %728, %729 : vector<8x64xf32>
    %731 = arith.addf %725, %730 : vector<8x64xf32>
    %732 = vector.extract_strided_slice %298 {offsets = [2, 0, 0], sizes = [1, 8, 1], strides = [1, 1, 1]} : vector<9x8x1xf32> to vector<1x8x1xf32>
    %733 = vector.shape_cast %732 : vector<1x8x1xf32> to vector<8x1xf32>
    %734 = vector.broadcast %733 : vector<8x1xf32> to vector<8x64xf32>
    %735 = vector.broadcast %270 : vector<1x64xf32> to vector<8x64xf32>
    %736 = arith.mulf %734, %735 : vector<8x64xf32>
    %737 = arith.addf %731, %736 : vector<8x64xf32>
    %738 = vector.extract_strided_slice %298 {offsets = [3, 0, 0], sizes = [1, 8, 1], strides = [1, 1, 1]} : vector<9x8x1xf32> to vector<1x8x1xf32>
    %739 = vector.shape_cast %738 : vector<1x8x1xf32> to vector<8x1xf32>
    %740 = vector.broadcast %739 : vector<8x1xf32> to vector<8x64xf32>
    %741 = vector.broadcast %275 : vector<1x64xf32> to vector<8x64xf32>
    %742 = arith.mulf %740, %741 : vector<8x64xf32>
    %743 = arith.addf %737, %742 : vector<8x64xf32>
    %744 = vector.extract_strided_slice %298 {offsets = [4, 0, 0], sizes = [1, 8, 1], strides = [1, 1, 1]} : vector<9x8x1xf32> to vector<1x8x1xf32>
    %745 = vector.shape_cast %744 : vector<1x8x1xf32> to vector<8x1xf32>
    %746 = vector.broadcast %745 : vector<8x1xf32> to vector<8x64xf32>
    %747 = vector.broadcast %276 : vector<1x64xf32> to vector<8x64xf32>
    %748 = arith.mulf %746, %747 : vector<8x64xf32>
    %749 = arith.addf %743, %748 : vector<8x64xf32>
    %750 = vector.extract_strided_slice %298 {offsets = [5, 0, 0], sizes = [1, 8, 1], strides = [1, 1, 1]} : vector<9x8x1xf32> to vector<1x8x1xf32>
    %751 = vector.shape_cast %750 : vector<1x8x1xf32> to vector<8x1xf32>
    %752 = vector.broadcast %751 : vector<8x1xf32> to vector<8x64xf32>
    %753 = vector.broadcast %277 : vector<1x64xf32> to vector<8x64xf32>
    %754 = arith.mulf %752, %753 : vector<8x64xf32>
    %755 = arith.addf %749, %754 : vector<8x64xf32>
    %756 = vector.extract_strided_slice %298 {offsets = [6, 0, 0], sizes = [1, 8, 1], strides = [1, 1, 1]} : vector<9x8x1xf32> to vector<1x8x1xf32>
    %757 = vector.shape_cast %756 : vector<1x8x1xf32> to vector<8x1xf32>
    %758 = vector.broadcast %757 : vector<8x1xf32> to vector<8x64xf32>
    %759 = vector.broadcast %282 : vector<1x64xf32> to vector<8x64xf32>
    %760 = arith.mulf %758, %759 : vector<8x64xf32>
    %761 = arith.addf %755, %760 : vector<8x64xf32>
    %762 = vector.extract_strided_slice %298 {offsets = [7, 0, 0], sizes = [1, 8, 1], strides = [1, 1, 1]} : vector<9x8x1xf32> to vector<1x8x1xf32>
    %763 = vector.shape_cast %762 : vector<1x8x1xf32> to vector<8x1xf32>
    %764 = vector.broadcast %763 : vector<8x1xf32> to vector<8x64xf32>
    %765 = vector.broadcast %283 : vector<1x64xf32> to vector<8x64xf32>
    %766 = arith.mulf %764, %765 : vector<8x64xf32>
    %767 = arith.addf %761, %766 : vector<8x64xf32>
    %768 = vector.extract_strided_slice %298 {offsets = [8, 0, 0], sizes = [1, 8, 1], strides = [1, 1, 1]} : vector<9x8x1xf32> to vector<1x8x1xf32>
    %769 = vector.shape_cast %768 : vector<1x8x1xf32> to vector<8x1xf32>
    %770 = vector.broadcast %769 : vector<8x1xf32> to vector<8x64xf32>
    %771 = vector.broadcast %284 : vector<1x64xf32> to vector<8x64xf32>
    %772 = arith.mulf %770, %771 : vector<8x64xf32>
    %773 = arith.addf %767, %772 : vector<8x64xf32>
    %774 = vector.broadcast %299 : vector<8x1xf32> to vector<8x64xf32>
    %775 = arith.addf %773, %774 : vector<8x64xf32>
    %cst_72 = arith.constant 0.000000e+00 : f32
    %776 = vector.broadcast %cst_72 : f32 to vector<8x64xf32>
    %777 = arith.maximumf %775, %776 : vector<8x64xf32>
    %778 = vector.broadcast %296 : vector<1x64xf32> to vector<8x64xf32>
    %779 = arith.mulf %777, %778 : vector<8x64xf32>
    %780 = vector.extract_strided_slice %300 {offsets = [6, 0, 0], sizes = [1, 8, 16], strides = [1, 1, 1]} : vector<9x8x16xf32> to vector<1x8x16xf32>
    %781 = vector.shape_cast %780 : vector<1x8x16xf32> to vector<8x16xf32>
    %782 = vector.shape_cast %781 : vector<8x16xf32> to vector<8x16x1xf32>
    %783 = vector.shape_cast %779 : vector<8x64xf32> to vector<8x1x64xf32>
    %784 = vector.broadcast %782 : vector<8x16x1xf32> to vector<8x16x64xf32>
    %785 = vector.broadcast %783 : vector<8x1x64xf32> to vector<8x16x64xf32>
    %786 = arith.mulf %784, %785 : vector<8x16x64xf32>
    %cst_73 = arith.constant dense<0.000000e+00> : vector<16x64xf32>
    %787 = vector.multi_reduction <add>, %786, %cst_73 [0] : vector<8x16x64xf32> to vector<16x64xf32>
    %788 = arith.addf %718, %787 : vector<16x64xf32>
    %cst_74 = arith.constant 0.000000e+00 : f32
    %789 = vector.broadcast %cst_74 : f32 to vector<8x64xf32>
    %790 = vector.extract_strided_slice %298 {offsets = [0, 0, 0], sizes = [1, 8, 1], strides = [1, 1, 1]} : vector<9x8x1xf32> to vector<1x8x1xf32>
    %791 = vector.shape_cast %790 : vector<1x8x1xf32> to vector<8x1xf32>
    %792 = vector.broadcast %791 : vector<8x1xf32> to vector<8x64xf32>
    %793 = vector.broadcast %270 : vector<1x64xf32> to vector<8x64xf32>
    %794 = arith.mulf %792, %793 : vector<8x64xf32>
    %795 = arith.addf %789, %794 : vector<8x64xf32>
    %796 = vector.extract_strided_slice %298 {offsets = [1, 0, 0], sizes = [1, 8, 1], strides = [1, 1, 1]} : vector<9x8x1xf32> to vector<1x8x1xf32>
    %797 = vector.shape_cast %796 : vector<1x8x1xf32> to vector<8x1xf32>
    %798 = vector.broadcast %797 : vector<8x1xf32> to vector<8x64xf32>
    %799 = vector.broadcast %271 : vector<1x64xf32> to vector<8x64xf32>
    %800 = arith.mulf %798, %799 : vector<8x64xf32>
    %801 = arith.addf %795, %800 : vector<8x64xf32>
    %802 = vector.extract_strided_slice %298 {offsets = [2, 0, 0], sizes = [1, 8, 1], strides = [1, 1, 1]} : vector<9x8x1xf32> to vector<1x8x1xf32>
    %803 = vector.shape_cast %802 : vector<1x8x1xf32> to vector<8x1xf32>
    %804 = vector.broadcast %803 : vector<8x1xf32> to vector<8x64xf32>
    %805 = vector.broadcast %272 : vector<1x64xf32> to vector<8x64xf32>
    %806 = arith.mulf %804, %805 : vector<8x64xf32>
    %807 = arith.addf %801, %806 : vector<8x64xf32>
    %808 = vector.extract_strided_slice %298 {offsets = [3, 0, 0], sizes = [1, 8, 1], strides = [1, 1, 1]} : vector<9x8x1xf32> to vector<1x8x1xf32>
    %809 = vector.shape_cast %808 : vector<1x8x1xf32> to vector<8x1xf32>
    %810 = vector.broadcast %809 : vector<8x1xf32> to vector<8x64xf32>
    %811 = vector.broadcast %277 : vector<1x64xf32> to vector<8x64xf32>
    %812 = arith.mulf %810, %811 : vector<8x64xf32>
    %813 = arith.addf %807, %812 : vector<8x64xf32>
    %814 = vector.extract_strided_slice %298 {offsets = [4, 0, 0], sizes = [1, 8, 1], strides = [1, 1, 1]} : vector<9x8x1xf32> to vector<1x8x1xf32>
    %815 = vector.shape_cast %814 : vector<1x8x1xf32> to vector<8x1xf32>
    %816 = vector.broadcast %815 : vector<8x1xf32> to vector<8x64xf32>
    %817 = vector.broadcast %278 : vector<1x64xf32> to vector<8x64xf32>
    %818 = arith.mulf %816, %817 : vector<8x64xf32>
    %819 = arith.addf %813, %818 : vector<8x64xf32>
    %820 = vector.extract_strided_slice %298 {offsets = [5, 0, 0], sizes = [1, 8, 1], strides = [1, 1, 1]} : vector<9x8x1xf32> to vector<1x8x1xf32>
    %821 = vector.shape_cast %820 : vector<1x8x1xf32> to vector<8x1xf32>
    %822 = vector.broadcast %821 : vector<8x1xf32> to vector<8x64xf32>
    %823 = vector.broadcast %279 : vector<1x64xf32> to vector<8x64xf32>
    %824 = arith.mulf %822, %823 : vector<8x64xf32>
    %825 = arith.addf %819, %824 : vector<8x64xf32>
    %826 = vector.extract_strided_slice %298 {offsets = [6, 0, 0], sizes = [1, 8, 1], strides = [1, 1, 1]} : vector<9x8x1xf32> to vector<1x8x1xf32>
    %827 = vector.shape_cast %826 : vector<1x8x1xf32> to vector<8x1xf32>
    %828 = vector.broadcast %827 : vector<8x1xf32> to vector<8x64xf32>
    %829 = vector.broadcast %284 : vector<1x64xf32> to vector<8x64xf32>
    %830 = arith.mulf %828, %829 : vector<8x64xf32>
    %831 = arith.addf %825, %830 : vector<8x64xf32>
    %832 = vector.extract_strided_slice %298 {offsets = [7, 0, 0], sizes = [1, 8, 1], strides = [1, 1, 1]} : vector<9x8x1xf32> to vector<1x8x1xf32>
    %833 = vector.shape_cast %832 : vector<1x8x1xf32> to vector<8x1xf32>
    %834 = vector.broadcast %833 : vector<8x1xf32> to vector<8x64xf32>
    %835 = vector.broadcast %285 : vector<1x64xf32> to vector<8x64xf32>
    %836 = arith.mulf %834, %835 : vector<8x64xf32>
    %837 = arith.addf %831, %836 : vector<8x64xf32>
    %838 = vector.extract_strided_slice %298 {offsets = [8, 0, 0], sizes = [1, 8, 1], strides = [1, 1, 1]} : vector<9x8x1xf32> to vector<1x8x1xf32>
    %839 = vector.shape_cast %838 : vector<1x8x1xf32> to vector<8x1xf32>
    %840 = vector.broadcast %839 : vector<8x1xf32> to vector<8x64xf32>
    %841 = vector.broadcast %286 : vector<1x64xf32> to vector<8x64xf32>
    %842 = arith.mulf %840, %841 : vector<8x64xf32>
    %843 = arith.addf %837, %842 : vector<8x64xf32>
    %844 = vector.broadcast %299 : vector<8x1xf32> to vector<8x64xf32>
    %845 = arith.addf %843, %844 : vector<8x64xf32>
    %cst_75 = arith.constant 0.000000e+00 : f32
    %846 = vector.broadcast %cst_75 : f32 to vector<8x64xf32>
    %847 = arith.maximumf %845, %846 : vector<8x64xf32>
    %848 = vector.extract_strided_slice %300 {offsets = [7, 0, 0], sizes = [1, 8, 16], strides = [1, 1, 1]} : vector<9x8x16xf32> to vector<1x8x16xf32>
    %849 = vector.shape_cast %848 : vector<1x8x16xf32> to vector<8x16xf32>
    %850 = vector.shape_cast %849 : vector<8x16xf32> to vector<8x16x1xf32>
    %851 = vector.shape_cast %847 : vector<8x64xf32> to vector<8x1x64xf32>
    %852 = vector.broadcast %850 : vector<8x16x1xf32> to vector<8x16x64xf32>
    %853 = vector.broadcast %851 : vector<8x1x64xf32> to vector<8x16x64xf32>
    %854 = arith.mulf %852, %853 : vector<8x16x64xf32>
    %cst_76 = arith.constant dense<0.000000e+00> : vector<16x64xf32>
    %855 = vector.multi_reduction <add>, %854, %cst_76 [0] : vector<8x16x64xf32> to vector<16x64xf32>
    %856 = arith.addf %788, %855 : vector<16x64xf32>
    %cst_77 = arith.constant 0.000000e+00 : f32
    %857 = vector.broadcast %cst_77 : f32 to vector<8x64xf32>
    %858 = vector.extract_strided_slice %298 {offsets = [0, 0, 0], sizes = [1, 8, 1], strides = [1, 1, 1]} : vector<9x8x1xf32> to vector<1x8x1xf32>
    %859 = vector.shape_cast %858 : vector<1x8x1xf32> to vector<8x1xf32>
    %860 = vector.broadcast %859 : vector<8x1xf32> to vector<8x64xf32>
    %861 = vector.broadcast %272 : vector<1x64xf32> to vector<8x64xf32>
    %862 = arith.mulf %860, %861 : vector<8x64xf32>
    %863 = arith.addf %857, %862 : vector<8x64xf32>
    %864 = vector.extract_strided_slice %298 {offsets = [1, 0, 0], sizes = [1, 8, 1], strides = [1, 1, 1]} : vector<9x8x1xf32> to vector<1x8x1xf32>
    %865 = vector.shape_cast %864 : vector<1x8x1xf32> to vector<8x1xf32>
    %866 = vector.broadcast %865 : vector<8x1xf32> to vector<8x64xf32>
    %867 = vector.broadcast %273 : vector<1x64xf32> to vector<8x64xf32>
    %868 = arith.mulf %866, %867 : vector<8x64xf32>
    %869 = arith.addf %863, %868 : vector<8x64xf32>
    %870 = vector.extract_strided_slice %298 {offsets = [2, 0, 0], sizes = [1, 8, 1], strides = [1, 1, 1]} : vector<9x8x1xf32> to vector<1x8x1xf32>
    %871 = vector.shape_cast %870 : vector<1x8x1xf32> to vector<8x1xf32>
    %872 = vector.broadcast %871 : vector<8x1xf32> to vector<8x64xf32>
    %873 = vector.broadcast %274 : vector<1x64xf32> to vector<8x64xf32>
    %874 = arith.mulf %872, %873 : vector<8x64xf32>
    %875 = arith.addf %869, %874 : vector<8x64xf32>
    %876 = vector.extract_strided_slice %298 {offsets = [3, 0, 0], sizes = [1, 8, 1], strides = [1, 1, 1]} : vector<9x8x1xf32> to vector<1x8x1xf32>
    %877 = vector.shape_cast %876 : vector<1x8x1xf32> to vector<8x1xf32>
    %878 = vector.broadcast %877 : vector<8x1xf32> to vector<8x64xf32>
    %879 = vector.broadcast %279 : vector<1x64xf32> to vector<8x64xf32>
    %880 = arith.mulf %878, %879 : vector<8x64xf32>
    %881 = arith.addf %875, %880 : vector<8x64xf32>
    %882 = vector.extract_strided_slice %298 {offsets = [4, 0, 0], sizes = [1, 8, 1], strides = [1, 1, 1]} : vector<9x8x1xf32> to vector<1x8x1xf32>
    %883 = vector.shape_cast %882 : vector<1x8x1xf32> to vector<8x1xf32>
    %884 = vector.broadcast %883 : vector<8x1xf32> to vector<8x64xf32>
    %885 = vector.broadcast %280 : vector<1x64xf32> to vector<8x64xf32>
    %886 = arith.mulf %884, %885 : vector<8x64xf32>
    %887 = arith.addf %881, %886 : vector<8x64xf32>
    %888 = vector.extract_strided_slice %298 {offsets = [5, 0, 0], sizes = [1, 8, 1], strides = [1, 1, 1]} : vector<9x8x1xf32> to vector<1x8x1xf32>
    %889 = vector.shape_cast %888 : vector<1x8x1xf32> to vector<8x1xf32>
    %890 = vector.broadcast %889 : vector<8x1xf32> to vector<8x64xf32>
    %891 = vector.broadcast %281 : vector<1x64xf32> to vector<8x64xf32>
    %892 = arith.mulf %890, %891 : vector<8x64xf32>
    %893 = arith.addf %887, %892 : vector<8x64xf32>
    %894 = vector.extract_strided_slice %298 {offsets = [6, 0, 0], sizes = [1, 8, 1], strides = [1, 1, 1]} : vector<9x8x1xf32> to vector<1x8x1xf32>
    %895 = vector.shape_cast %894 : vector<1x8x1xf32> to vector<8x1xf32>
    %896 = vector.broadcast %895 : vector<8x1xf32> to vector<8x64xf32>
    %897 = vector.broadcast %286 : vector<1x64xf32> to vector<8x64xf32>
    %898 = arith.mulf %896, %897 : vector<8x64xf32>
    %899 = arith.addf %893, %898 : vector<8x64xf32>
    %900 = vector.extract_strided_slice %298 {offsets = [7, 0, 0], sizes = [1, 8, 1], strides = [1, 1, 1]} : vector<9x8x1xf32> to vector<1x8x1xf32>
    %901 = vector.shape_cast %900 : vector<1x8x1xf32> to vector<8x1xf32>
    %902 = vector.broadcast %901 : vector<8x1xf32> to vector<8x64xf32>
    %903 = vector.broadcast %287 : vector<1x64xf32> to vector<8x64xf32>
    %904 = arith.mulf %902, %903 : vector<8x64xf32>
    %905 = arith.addf %899, %904 : vector<8x64xf32>
    %906 = vector.extract_strided_slice %298 {offsets = [8, 0, 0], sizes = [1, 8, 1], strides = [1, 1, 1]} : vector<9x8x1xf32> to vector<1x8x1xf32>
    %907 = vector.shape_cast %906 : vector<1x8x1xf32> to vector<8x1xf32>
    %908 = vector.broadcast %907 : vector<8x1xf32> to vector<8x64xf32>
    %909 = vector.broadcast %288 : vector<1x64xf32> to vector<8x64xf32>
    %910 = arith.mulf %908, %909 : vector<8x64xf32>
    %911 = arith.addf %905, %910 : vector<8x64xf32>
    %912 = vector.broadcast %299 : vector<8x1xf32> to vector<8x64xf32>
    %913 = arith.addf %911, %912 : vector<8x64xf32>
    %cst_78 = arith.constant 0.000000e+00 : f32
    %914 = vector.broadcast %cst_78 : f32 to vector<8x64xf32>
    %915 = arith.maximumf %913, %914 : vector<8x64xf32>
    %916 = vector.extract_strided_slice %300 {offsets = [8, 0, 0], sizes = [1, 8, 16], strides = [1, 1, 1]} : vector<9x8x16xf32> to vector<1x8x16xf32>
    %917 = vector.shape_cast %916 : vector<1x8x16xf32> to vector<8x16xf32>
    %918 = vector.shape_cast %917 : vector<8x16xf32> to vector<8x16x1xf32>
    %919 = vector.shape_cast %915 : vector<8x64xf32> to vector<8x1x64xf32>
    %920 = vector.broadcast %918 : vector<8x16x1xf32> to vector<8x16x64xf32>
    %921 = vector.broadcast %919 : vector<8x1x64xf32> to vector<8x16x64xf32>
    %922 = arith.mulf %920, %921 : vector<8x16x64xf32>
    %cst_79 = arith.constant dense<0.000000e+00> : vector<16x64xf32>
    %923 = vector.multi_reduction <add>, %922, %cst_79 [0] : vector<8x16x64xf32> to vector<16x64xf32>
    %924 = arith.addf %856, %923 : vector<16x64xf32>
    %925 = vector.broadcast %301 : vector<16x1xf32> to vector<16x64xf32>
    %926 = arith.addf %924, %925 : vector<16x64xf32>
    %cst_80 = arith.constant 0.000000e+00 : f32
    %927 = vector.broadcast %cst_80 : f32 to vector<16x64xf32>
    %928 = arith.maximumf %926, %927 : vector<16x64xf32>
    %c0_81 = arith.constant 0 : index
    %c0_82 = arith.constant 0 : index
    %c0_83 = arith.constant 0 : index
    %929 = vector.load %arg8[%c0_81, %c0_82, %c0_83] : memref<1x16x64xf32, #tpu.memory_space<vmem>>, vector<1x16x64xf32>
    %930 = vector.shape_cast %929 : vector<1x16x64xf32> to vector<16x64xf32>
    %931 = vector.shape_cast %928 : vector<16x64xf32> to vector<1x16x64xf32>
    tpu.vector_store %arg8[%c0_81, %c0_82, %c0_83], %931 {strides = array<i32>} : memref<1x16x64xf32, #tpu.memory_space<vmem>>, vector<1x16x64xf32>,
    return
  }
  func.func @transform_0(%arg0: i32, %arg1: memref<2x4xi32, #tpu.memory_space<smem>>) -> (i32, i32) {
    %c0_i32 = arith.constant 0 : i32
    %c0_i32_0 = arith.constant 0 : i32
    %c0_i32_1 = arith.constant 0 : i32
    return %c0_i32, %c0_i32_0 : i32, i32
  }
  func.func @transform_1(%arg0: i32, %arg1: memref<2x4xi32, #tpu.memory_space<smem>>) -> (i32, i32, i32) {
    %c0_i32 = arith.constant 0 : i32
    %c0_i32_0 = arith.constant 0 : i32
    %c0_i32_1 = arith.constant 0 : i32
    %c0_i32_2 = arith.constant 0 : i32
    return %c0_i32, %c0_i32_0, %c0_i32_1 : i32, i32, i32
  }
  func.func @transform_2(%arg0: i32, %arg1: memref<2x4xi32, #tpu.memory_space<smem>>) -> (i32, i32) {
    %c0_i32 = arith.constant 0 : i32
    %c0_i32_0 = arith.constant 0 : i32
    %c0_i32_1 = arith.constant 0 : i32
    return %c0_i32, %c0_i32_0 : i32, i32
  }
  func.func @transform_3(%arg0: i32, %arg1: memref<2x4xi32, #tpu.memory_space<smem>>) -> (i32, i32, i32) {
    %c0_i32 = arith.constant 0 : i32
    %c0_i32_0 = arith.constant 0 : i32
    %c0_i32_1 = arith.constant 0 : i32
    %c0_i32_2 = arith.constant 0 : i32
    return %c0_i32, %c0_i32_0, %c0_i32_1 : i32, i32, i32
  }
  func.func @transform_4(%arg0: i32, %arg1: memref<2x4xi32, #tpu.memory_space<smem>>) -> (i32, i32) {
    %c0_i32 = arith.constant 0 : i32
    %c0_i32_0 = arith.constant 0 : i32
    %c0_i32_1 = arith.constant 0 : i32
    return %c0_i32, %c0_i32_0 : i32, i32
  }
  func.func @transform_5(%arg0: i32, %arg1: memref<2x4xi32, #tpu.memory_space<smem>>) -> (i32, i32, i32) {
    %c0_i32 = arith.constant 0 : i32
    %c0_i32_0 = arith.constant 0 : i32
    %c0_i32_1 = arith.constant 0 : i32
    return %arg0, %c0_i32, %c0_i32_0 : i32, i32, i32
  }
  func.func @transform_6(%arg0: i32, %arg1: memref<2x4xi32, #tpu.memory_space<smem>>) -> (i32, i32, i32) {
    %c0_i32 = arith.constant 0 : i32
    %c0_i32_0 = arith.constant 0 : i32
    %c0_i32_1 = arith.constant 0 : i32
    return %arg0, %c0_i32, %c0_i32_0 : i32, i32, i32
  }
}

</mosaic_0001>

<bundles_post_ra>
// kernel: flow_diffusion_forward.1
= control target key start
LH: loop header
LB: loop body
LE: loop exit
PB: predicated region body
PF: predicated region fallthrough
CT: control target
= control target key end

     0   :  { %s5333_s0 = inlined_call_operand.vmem [shape: s32[2,4], index: 0, kind: input, shape index: {}]   ;;  %s5334_s1 = inlined_call_operand.vmem [shape: s32[2,64], index: 1, kind: input, shape index: {}]   ;;  %s5335_s2 = inlined_call_operand.vmem [shape: f32[9,8,1], index: 2, kind: input, shape index: {}]   ;;  %s5336_s3 = inlined_call_operand.vmem [shape: f32[8,1], index: 3, kind: input, shape index: {}]   ;;  %s5337_s4 = inlined_call_operand.vmem [shape: f32[9,8,16], index: 4, kind: input, shape index: {}]   ;;  %s5338_s5 = inlined_call_operand.vmem [shape: f32[16,1], index: 5, kind: input, shape index: {}]   ;;  %s5339_s6 = inlined_call_operand.hbm [shape: f32[2,32,32], index: 6, kind: output, shape index: {0}]   ;;  %s5340_s7 = inlined_call_operand.vmem [shape: f32[2,16,64], index: 7, kind: output, shape index: {1}]  }
   0x1   :  { %s13_s26 = sshll.u32 %s5333_s0, 4  ;;  %s14_s26 = int_to_ptr.vmem [resolvable:$true] %s13_s26 }
   0x2   :  { %s3201_s27 = scalar_lea.vmem %s14_s26, 32  ;;  %p3206_p1 = scmp.lt.s32.totalorder %s14_s26, %s14_s26 }
   0x3   :  { %p3202_p0 = scmp.ne.s32.totalorder %s14_s26, %s3201_s27  ;;  %p3207_p2 = scmp.lt.s32.totalorder %s3201_s27, %s3201_s27 }
   0x5   :  { %p3208_p3 = por %p3207_p2, %p3206_p1 }
   0x7   :  { %p3209_p4 = pnand %p3208_p3, %p3202_p0 }
   0x9   :  { %3212 = shalt.err (!%p3209_p4)  }
   0xa   :  { %s3277_s28 = smov [#allocation3]  }
   0xb   :  { %16 = dma.vmem_to_smem %s14_s26, 32, %s3277_s28, [#allocation2] }
   0xc   :  { %3255 = dma.done.wait [#allocation2], 32 }
   0xd   :  { %3256 = vsyncadd [#allocation2], 4294967264 }
   0xe   :  { %18 = sfence }
   0xf   :  { %19 = vsyncpa [#allocation5], 0 }
  0x10   :  { %21 = vsyncpa [#allocation5 + $0x1], 0  ;;  %s3327_s29 = smov 0   ;;  %s3329_s30 = smov 0  }
  0x11   :  { %s3331_s0 = smov 0   ;;  %s3333_s8 = smov 0  }
  0x12 LB: > { %s3348_s9 = sadd.s32 4294967295, %s3275_s8   ;;  %s3119_s10 = sadd.s32 4294967294, %s3275_s8   ;;  %s3275_s8 = sphi %s3333_s8, %s5680_s8   ;;  %s3271_s0 = sphi %s3331_s0, %s5679_s0   ;;  %s3267_s30 = sphi %s3329_s30, %s5678_s30   ;;  %s3263_s29 = sphi %s3327_s29, %s5677_s29  }
  0x13   : > { %s3352_s11 = sadd.s32 1, %s3275_s8   ;;  %s139_s12 = sadd.s32 1, %s3271_s0 }
  0x14   : > { %s136_s13 = ssub.s32 %s3275_s8, %s3352_s11  ;;  %p149_p5 = scmp.ne.s32.totalorder %s3271_s0, %s3267_s30 }
  0x15   : > { %p137_p6 = scmp.eq.s32.totalorder %s136_s13, 0  ;;  %p150_p7 = scmp.eq.s32.totalorder %s3348_s9, 1 }
  0x16   : > { %p155_p8 = scmp.ne.s32.totalorder %s3267_s30, %s3263_s29  ;;  %p156_p9 = scmp.eq.s32.totalorder %s3119_s10, 1 }
  0x17   : > { %s3363_s14 = scalar_select %p137_p6, %s3271_s0, %s139_s12  }
  0x18   : > { %p3365_p10 = por %p150_p7, %p149_p5  ;;  %p3369_p11 = por %p156_p9, %p155_p8 }
  0x19   : > { %p3121_p12 = scmp.ge.s32.totalorder %s3275_s8, 1  ;;  %p215_p13 = scmp.lt.s32.totalorder %s3275_s8, 3 }
  0x1b   : > { %p216_p0 = pnand %p3121_p12, %p215_p13 }
  0x1d   : > { %219 = sbr.rel (%p216_p0) target bundleno = 485 (0x1e5), region = 40 }
  0x22   : > { %v509_v0 = vld [vmem:[%s5335_s2 + $0x10] sm:$0xff]  ;;  %v507_v1 = vld [vmem:[%s5335_s2] sm:$0xff]  ;;  %v3278_v2 = vmov 0   ;;  %v510_v3 = vld [vmem:[%s5335_s2 + $0x18] sm:$0xff]  ;;  %v5341_v5 = vlaneseq  ;;  %s3454_s26 = sshll.u32 %s3348_s9, 7  ;;  %v5421_v47 = vmov 0 }
  0x23   : > { %3199 = vset.pattern.permute.xlu1 %v3278_v2  ;;  %3198 = vset.pattern.permute.xlu0 %v3278_v2  ;;  %v508_v4 = vld [vmem:[%s5335_s2 + $0x8] sm:$0xff]  ;;  %v511_v7 = vld [vmem:[%s5335_s2 + $0x20] sm:$0xff]  ;;  %v514_v9 = vld [vmem:[%s5335_s2 + $0x38] sm:$0xff]  ;;  %s254_s27 = sadd.s32 2, %s3454_s26  ;;  %s256_s28 = sadd.s32 3, %s3454_s26 }
  0x24   : > { %552 = vperm.xlu1 %3199, %v509_v0   ;;  %530 = vperm.xlu0 %3198, %v507_v1   ;;  %v512_v6 = vld [vmem:[%s5335_s2 + $0x28] sm:$0xff]  ;;  %v3394_v8 = vshrl.u32 %v5341_v5, 7  ;;  %v513_v10 = vld [vmem:[%s5335_s2 + $0x30] sm:$0xff]  ;;  %v516_v12 = vld [vmem:[%s5336_s3] sm:$0xff]  ;;  %s255_s13 = sld [smem:[#allocation3 + %s254_s27]]  ;;  %s252_s20 = sadd.s32 1, %s3454_s26 }
  0x25   : > { %v515_v13 = vld [vmem:[%s5335_s2 + $0x40] sm:$0xff]  ;;  %v518_v30 = vld [vmem:[%s5337_s4 + $0x8] sm:$0xff]  ;;  %v519_v39 = vld [vmem:[%s5337_s4 + $0x10] sm:$0xff]  ;;  %s257_s17 = sld [smem:[#allocation3 + %s256_s28]]  ;;  %s235_s28 = sand.u32 1, %s3267_s30  }
  0x26   : > { %5416 = vst [vmem:[#allocation8_spill] sm:$0xff] %v3394_v8  ;;  %v3403_v11 = vsub.s32 0, %v3394_v8  ;;  %v517_v14 = vld [vmem:[%s5337_s4] sm:$0xff]  ;;  %v3416_v16 = vsub.s32 1, %v3394_v8  ;;  %v3420_v18 = vsub.s32 2, %v3394_v8  ;;  %v3424_v20 = vsub.s32 3, %v3394_v8 }
  0x27   : > { %v3428_v22 = vsub.s32 4, %v3394_v8  ;;  %v3432_v24 = vsub.s32 5, %v3394_v8  ;;  %v3436_v26 = vsub.s32 6, %v3394_v8  ;;  %v3440_v28 = vsub.s32 7, %v3394_v8  ;;  %v3467_v42 = vld [vmem:[%s5334_s1] sm:$0x1] }
  0x28   : > { %563 = vperm.xlu1 %3199, %v510_v3   ;;  %541 = vperm.xlu0 %3198, %v508_v4   ;;  %v642_v15 = vrot.slane %v517_v14, %v3403_v11  ;;  %v653_v17 = vrot.slane %v517_v14, %v3416_v16  ;;  %v664_v19 = vrot.slane %v517_v14, %v3420_v18  ;;  %v3470_v43 = vadd.s32 3, %v3467_v42  ;;  %s251_s21 = sld [smem:[#allocation3 + %s3454_s26]]  ;;  %v3493_v51 = vld [vmem:[%s5334_s1 + $0x1] sm:$0x1]  ;;  %v3509_v59 = vld [vmem:[%s5337_s4 + $0x18] sm:$0xff]  ;;  %s4932_s10 = sshll.u32 %s235_s28, 5 }
  0x29   : > { %v675_v21 = vrot.slane %v517_v14, %v3424_v20  ;;  %v686_v23 = vrot.slane %v517_v14, %v3428_v22  ;;  %5417 = vst [vmem:[#allocation9_spill] sm:$0xff] %v3432_v24  ;;  %v697_v25 = vrot.slane %v517_v14, %v3432_v24  ;;  %v708_v27 = vrot.slane %v517_v14, %v3436_v26  ;;  %s253_s22 = sld [smem:[#allocation3 + %s252_s20]]  ;;  %s3152_s12 = sshll.u32 %s3348_s9, 9 }
  0x2a   : > { %5418 = vst [vmem:[#allocation10_spill] sm:$0xff] %v3440_v28  ;;  %v719_v29 = vrot.slane %v517_v14, %v3440_v28  ;;  %v918_v31 = vrot.slane %v518_v30, %v3403_v11  ;;  %v929_v32 = vrot.slane %v518_v30, %v3416_v16  ;;  %v940_v33 = vrot.slane %v518_v30, %v3420_v18  ;;  %s5004_s20 = scalar_lea.hbm %s5339_s6, %s3152_s12  ;;  %s3281_s23 = smov [#allocation4]  }
  0x2b   : > { %v951_v34 = vrot.slane %v518_v30, %v3424_v20  ;;  %v962_v35 = vrot.slane %v518_v30, %v3428_v22  ;;  %v973_v36 = vrot.slane %v518_v30, %v3432_v24  ;;  %v984_v37 = vrot.slane %v518_v30, %v3436_v26  ;;  %s3217_s24 = sshll.u32 %s3281_s23, 4  ;;  %s3218_s24 = int_to_ptr.vmem [resolvable:$false] %s3217_s24 }
  0x2c   : > { %585 = vperm.xlu1 %3199, %v512_v6   ;;  %574 = vperm.xlu0 %3198, %v511_v7   ;;  %v995_v38 = vrot.slane %v518_v30, %v3440_v28  ;;  %v1189_v40 = vrot.slane %v519_v39, %v3403_v11  ;;  %v1200_v41 = vrot.slane %v519_v39, %v3416_v16  ;;  %v3472_v44 = vstv %s255_s13  ;;  %s237_s13 = scalar_lea.vmem [#allocation4], %s4932_s10  ;;  %s3219_s25 = scalar_lea.vmem %s3218_s24, 1024 }
  0x2d   : > { %5419 = vst [vmem:[#allocation11_spill] sm:$0xff] %v3472_v44  ;;  %v3474_v45 = vstv %s257_s17  ;;  %v1211_v46 = vrot.slane %v519_v39, %v3420_v18  ;;  %vm433_vm0 = vcmp.ge.s32.totalorder %v3470_v43, %v3472_v44  ;;  %v1222_v48 = vrot.slane %v519_v39, %v3424_v20  ;;  %s3041_s17 = sshll.u32 %s237_s13, 4  ;;  %s5017_s17 = int_to_ptr.vmem [resolvable:$true] %s3041_s17 }
  0x2e   : > { %5420 = vst [vmem:[#allocation12_spill] sm:$0xff] %v3474_v45  ;;  %vm434_vm1 = vcmp.le.s32.totalorder %v3470_v43, %v3474_v45  ;;  %v1233_v49 = vrot.slane %v519_v39, %v3428_v22  ;;  %v1244_v50 = vrot.slane %v519_v39, %v3432_v24  ;;  %v1255_v52 = vrot.slane %v519_v39, %v3436_v26  ;;  %p3220_p4 = scmp.lt.s32.totalorder %s5017_s17, %s3218_s24 }
  0x2f   : > { %vm3481_vm2 = vmand %vm433_vm0, %vm434_vm1  ;;  %v313_v53 = vadd.s32 4294967293, %v3467_v42  ;;  %v334_v54 = vadd.s32 4294967294, %v3493_v51  ;;  %v314_v55 = vadd.s32 4294967293, %v3493_v51  ;;  %v3499_v56 = vstv %s251_s21  ;;  %s5026_s21 = scalar_lea.sflag [#allocation5], %s235_s28 }
  0x30   : > { %607 = vperm.xlu1 %3199, %v514_v9   ;;  %596 = vperm.xlu0 %3198, %v513_v10   ;;  %v5422_v47 = vsel %vm3481_vm2, 4294967295, %v5421_v47  ;;  %5423 = vst [vmem:[#allocation13_spill] sm:$0xff] %v3499_v56  ;;  %v3501_v57 = vstv %s253_s22  ;;  %v1266_v58 = vrot.slane %v519_v39, %v3440_v28  ;;  %v354_v60 = vadd.s32 4294967295, %v3493_v51  ;;  %s3213_s22 = scalar_lea.vmem %s5017_s17, 512 }
  0x31   : > { %5424 = vst [vmem:[#allocation14_spill] sm:$0xff] %v3501_v57  ;;  %vm315_vm3 = vcmp.ge.s32.totalorder %v313_v53, %v3472_v44  ;;  %vm316_vm4 = vcmp.le.s32.totalorder %v313_v53, %v3474_v45  ;;  %vm344_vm5 = vcmp.ge.s32.totalorder %v334_v54, %v3499_v56  ;;  %vm345_vm6 = vcmp.le.s32.totalorder %v334_v54, %v3501_v57  ;;  %p3214_p1 = scmp.ne.s32.totalorder %s5017_s17, %s3213_s22  ;;  %p3221_p5 = scmp.lt.s32.totalorder %s3219_s25, %s3213_s22 }
  0x32   : > { %vm324_vm7 = vcmp.ge.s32.totalorder %v314_v55, %v3499_v56  ;;  %vm325_vm8 = vcmp.le.s32.totalorder %v314_v55, %v3501_v57  ;;  %vm317_vm9 = vmand %vm315_vm3, %vm316_vm4  ;;  %vm318_vm10 = vcmp.ge.s32.totalorder %v313_v53, 0  ;;  %v1464_v61 = vrot.slane %v3509_v59, %v3403_v11 }
  0x33   : > { %vm346_vm11 = vmand %vm344_vm5, %vm345_vm6  ;;  %vm347_vm12 = vcmp.ge.s32.totalorder %v334_v54, 0  ;;  %vm327_vm14 = vcmp.ge.s32.totalorder %v314_v55, 0  ;;  %vm364_vm0 = vcmp.ge.s32.totalorder %v354_v60, %v3499_v56  ;;  %vm365_vm1 = vcmp.le.s32.totalorder %v354_v60, %v3501_v57  ;;  %p3215_p2 = pnand %p3214_p1, %p3365_p10  ;;  %p3222_p6 = por %p3221_p5, %p3220_p4 }
  0x34   : > { %629 = vperm.xlu1 %3199, %v516_v12   ;;  %618 = vperm.xlu0 %3198, %v515_v13   ;;  %vm326_vm13 = vmand %vm324_vm7, %vm325_vm8  ;;  %vm349_vm3 = vcmp.lt.s32.totalorder %v334_v54, 32  ;;  %v333_v63 = vadd.s32 4294967294, %v3467_v42  ;;  %v1475_v0 = vrot.slane %v3509_v59, %v3416_v16  ;;  %vm320_vm4 = vcmp.lt.s32.totalorder %v313_v53, 32 }
  0x35   : > { %vm3518_vm15 = vmand %vm317_vm9, %vm318_vm10  ;;  %vm329_vm6 = vcmp.lt.s32.totalorder %v314_v55, 32  ;;  %vm367_vm8 = vcmp.ge.s32.totalorder %v354_v60, 0  ;;  %v1486_v2 = vrot.slane %v3509_v59, %v3420_v18  ;;  %v5342_v3 = vmov 0.0   ;;  %p3216_p3 = pneg %p3215_p2 }
  0x36   : > { %vm348_vm2 = vmand %vm346_vm11, %vm347_vm12  ;;  %vm335_vm11 = vcmp.ge.s32.totalorder %v333_v63, %v3472_v44  ;;  %vm336_vm12 = vcmp.le.s32.totalorder %v333_v63, %v3474_v45  ;;  %v392_v6 = vadd.s32 1, %v3493_v51  ;;  %v1497_v14 = vrot.slane %v3509_v59, %v3424_v20 }
  0x37   : > { %vm328_vm5 = vmand %vm326_vm13, %vm327_vm14  ;;  %v3643_v53 = vadd.s32 3, %v3493_v51  ;;  %p3223_p7 = pnand %p3222_p6, %p3216_p3 }
  0x38   : > { %648 = vbcast.lane.b32.xlu1 %v642_v15, 264  ;;  %644 = vbcast.lane.b32.xlu0 %v642_v15, 256  ;;  %vm366_vm7 = vmand %vm364_vm0, %vm365_vm1  ;;  %vm369_vm0 = vcmp.lt.s32.totalorder %v354_v60, 32 }
  0x39   : > { %vm350_vm9 = vmand %vm348_vm2, %vm349_vm3  ;;  %vm338_vm2 = vcmp.ge.s32.totalorder %v333_v63, 0  ;;  %vm340_vm3 = vcmp.lt.s32.totalorder %v333_v63, 32 }
  0x3a   : > { %vm3529_vm10 = vmand %vm3518_vm15, %vm320_vm4  ;;  %v3538_v4 = vsel %vm350_vm9, 1.0, %v5342_v3  ;;  %vm405_vm9 = vcmp.ge.s32.totalorder %v392_v6, 0 }
  0x3b   : > { %vm330_vm13 = vmand %vm328_vm5, %vm329_vm6  ;;  %v3548_v10 = vsel %vm3529_vm10, 1.0, %v5342_v3  ;;  %vm402_vm5 = vcmp.ge.s32.totalorder %v392_v6, %v3499_v56  ;;  %vm403_vm6 = vcmp.le.s32.totalorder %v392_v6, %v3501_v57  ;;  %vm382_vm10 = vcmp.ge.s32.totalorder %v3493_v51, %v3499_v56 }
  0x3c   : > { %659 = vbcast.lane.b32.xlu1 %v653_v17, 264  ;;  %655 = vbcast.lane.b32.xlu0 %v653_v17, 256  ;;  %vm368_vm14 = vmand %vm366_vm7, %vm367_vm8  ;;  %v3551_v12 = vsel %vm330_vm13, 1.0, %v5342_v3  ;;  %v452_v13 = vmul.f32 %v3538_v4, %v3548_v10  ;;  %vm407_vm13 = vcmp.lt.s32.totalorder %v392_v6, 32  ;;  %v3280_v6 = vmov 1966171168  }
  0x3d   : > { %vm337_vm15 = vmand %vm335_vm11, %vm336_vm12  ;;  %v451_v15 = vmul.f32 %v3551_v12, %v3548_v10  ;;  %vm383_vm11 = vcmp.le.s32.totalorder %v3493_v51, %v3501_v57 }
  0x3e   : > { %vm370_vm1 = vmand %vm368_vm14, %vm369_vm0  ;;  %vm385_vm14 = vcmp.ge.s32.totalorder %v3493_v51, 0 }
  0x3f   : > { %vm339_vm4 = vmand %vm337_vm15, %vm338_vm2  ;;  %v3562_v17 = vsel %vm370_vm1, 1.0, %v5342_v3  ;;  %v536_v30 = vrot.slane %v451_v15, %v3403_v11  ;;  %vm500_vm1 = vcmp.gt.s32.totalorder %v3467_v42, 0 }
  0x40   : > { %670 = vbcast.lane.b32.xlu1 %v664_v19, 264  ;;  %666 = vbcast.lane.b32.xlu0 %v664_v19, 256  ;;  %vm341_vm7 = vmand %vm339_vm4, %vm340_vm3  ;;  %v3658_v55 = vsel %vm500_vm1, 1.0, %v5342_v3 }
  0x41   : > { %vm404_vm8 = vmand %vm402_vm5, %vm403_vm6  ;;  %vm503_vm6 = vcmp.gt.s32.totalorder %v3493_v51, 0 }
  0x42   : > { %vm406_vm12 = vmand %vm404_vm8, %vm405_vm9  ;;  %v3671_v60 = vsel %vm503_vm6, 1.0, %v5342_v3 }
  0x43   : > { %vm3609_vm15 = vmand %vm382_vm10, %vm383_vm11  ;;  %vm387_vm10 = vcmp.lt.s32.totalorder %v3493_v51, 32 }
  0x44   : > { %681 = vbcast.lane.b32.xlu1 %v675_v21, 264  ;;  %677 = vbcast.lane.b32.xlu0 %v675_v21, 256  ;;  %vm3616_vm3 = vmand %vm406_vm12, %vm407_vm13 }
  0x45   : > { %vm3649_vm9 = vmand %vm3609_vm15, %vm385_vm14  ;;  %vm443_vm15 = vcmp.le.s32.totalorder %v3643_v53, %v3501_v57 }
  0x48   : > { %692 = vbcast.lane.b32.xlu1 %v686_v23, 264  ;;  %688 = vbcast.lane.b32.xlu0 %v686_v23, 256  ;;  %v547_v23 = vrot.slane %v452_v13, %v3403_v11  ;;  %v730_v13 = vunpack.c.l.s4 %v3280_v6 }
  0x4c   : > { %703 = vbcast.lane.b32.xlu1 %v697_v25, 264  ;;  %699 = vbcast.lane.b32.xlu0 %v697_v25, 256  ;;  %v1508_v25 = vrot.slane %v3509_v59, %v3428_v22 }
  0x50   : > { %714 = vbcast.lane.b32.xlu1 %v708_v27, 264  ;;  %710 = vbcast.lane.b32.xlu0 %v708_v27, 256  ;;  %v3572_v27 = vadd.s32 4294967295, %v3467_v42 }
  0x52   : > { %vm355_vm0 = vcmp.ge.s32.totalorder %v3572_v27, %v3472_v44  ;;  %vm356_vm2 = vcmp.le.s32.totalorder %v3572_v27, %v3474_v45  ;;  %vm360_vm13 = vcmp.lt.s32.totalorder %v3572_v27, 32 }
  0x53   : > { %vm3638_vm8 = vmand %vm355_vm0, %vm356_vm2  ;;  %vm442_vm2 = vcmp.ge.s32.totalorder %v3643_v53, %v3499_v56 }
  0x54   : > { %725 = vbcast.lane.b32.xlu1 %v719_v29, 264  ;;  %721 = vbcast.lane.b32.xlu0 %v719_v29, 256  ;;  %v453_v29 = vmul.f32 %v3562_v17, %v3548_v10  ;;  %vm3698_vm0 = vmand %vm3649_vm9, %vm387_vm10  ;;  %vm373_vm10 = vcmp.ge.s32.totalorder %v3467_v42, %v3472_v44 }
  0x55   : > { %vm444_vm6 = vmand %vm442_vm2, %vm443_vm15  ;;  %v3755_v54 = vsel %vm3698_vm0, 1.0, %v5342_v3  ;;  %vm376_vm0 = vcmp.ge.s32.totalorder %v3467_v42, 0  ;;  %vm378_vm2 = vcmp.lt.s32.totalorder %v3467_v42, 32 }
  0x56   : > { %5450 = vst [vmem:[#allocation22_spill] sm:$0xff] %v3755_v54 }
  0x58   : > { %924 = vbcast.lane.b32.xlu1 %v918_v31, 264  ;;  %920 = vbcast.lane.b32.xlu0 %v918_v31, 256  ;;  %v3582_v31 = vadd.s32 2, %v3493_v51 }
  0x5a   : > { %vm422_vm4 = vcmp.ge.s32.totalorder %v3582_v31, %v3499_v56  ;;  %vm423_vm5 = vcmp.le.s32.totalorder %v3582_v31, %v3501_v57  ;;  %vm425_vm11 = vcmp.ge.s32.totalorder %v3582_v31, 0 }
  0x5b   : > { %vm3666_vm12 = vmand %vm422_vm4, %vm423_vm5  ;;  %vm445_vm5 = vcmp.ge.s32.totalorder %v3643_v53, 0 }
  0x5c   : > { %935 = vbcast.lane.b32.xlu1 %v929_v32, 264  ;;  %931 = vbcast.lane.b32.xlu0 %v929_v32, 256  ;;  %vm3710_vm1 = vmand %vm3666_vm12, %vm425_vm11  ;;  %vm374_vm11 = vcmp.le.s32.totalorder %v3467_v42, %v3474_v45 }
  0x5d   : > { %vm3761_vm9 = vmand %vm444_vm6, %vm445_vm5 }
  0x5e   : > { %vm3818_vm15 = vmand %vm373_vm10, %vm374_vm11 }
  0x5f   : > { %vm3868_vm5 = vmand %vm3818_vm15, %vm376_vm0  ;;  %vm436_vm0 = vcmp.ge.s32.totalorder %v3470_v43, 0  ;;  %vm438_vm15 = vcmp.lt.s32.totalorder %v3470_v43, 32  ;;  %v4161_v43 = vld [vmem:[%s5337_s4 + $0x30] sm:$0xff] }
  0x60   : > { %946 = vbcast.lane.b32.xlu1 %v940_v33, 264  ;;  %942 = vbcast.lane.b32.xlu0 %v940_v33, 256 }
  0x64   : > { %957 = vbcast.lane.b32.xlu1 %v951_v34, 264  ;;  %953 = vbcast.lane.b32.xlu0 %v951_v34, 256  ;;  %v3589_v34 = vsel %vm341_vm7, 1.0, %v5342_v3  ;;  %vm358_vm7 = vcmp.ge.s32.totalorder %v3572_v27, 0 }
  0x65   : > { %vm359_vm14 = vmand %vm3638_vm8, %vm358_vm7  ;;  %vm447_vm8 = vcmp.lt.s32.totalorder %v3643_v53, 32 }
  0x66   : > { %vm361_vm4 = vmand %vm359_vm14, %vm360_vm13 }
  0x67   : > { %vm3796_vm12 = vmand %vm3761_vm9, %vm447_vm8 }
  0x68   : > { %968 = vbcast.lane.b32.xlu1 %v962_v35, 264  ;;  %964 = vbcast.lane.b32.xlu0 %v962_v35, 256 }
  0x6c   : > { %979 = vbcast.lane.b32.xlu1 %v973_v36, 264  ;;  %975 = vbcast.lane.b32.xlu0 %v973_v36, 256  ;;  %v1519_v36 = vrot.slane %v3509_v59, %v3432_v24 }
  0x70   : > { %990 = vbcast.lane.b32.xlu1 %v984_v37, 264  ;;  %986 = vbcast.lane.b32.xlu0 %v984_v37, 256 }
  0x74   : > { %1001 = vbcast.lane.b32.xlu1 %v995_v38, 264  ;;  %997 = vbcast.lane.b32.xlu0 %v995_v38, 256  ;;  %v3601_v38 = vrot.slane %v453_v29, %v3403_v11 }
  0x78   : > { %1195 = vbcast.lane.b32.xlu1 %v1189_v40, 264  ;;  %1191 = vbcast.lane.b32.xlu0 %v1189_v40, 256  ;;  %v458_v40 = vmul.f32 %v3589_v34, %v3551_v12 }
  0x7a   : > { %v569_v63 = vrot.slane %v458_v40, %v3403_v11  ;;  %v460_v40 = vmul.f32 %v3562_v17, %v3589_v34 }
  0x7c   : > { %1206 = vbcast.lane.b32.xlu1 %v1200_v41, 264  ;;  %1202 = vbcast.lane.b32.xlu0 %v1200_v41, 256  ;;  %v3784_v51 = vrot.slane %v460_v40, %v3403_v11  ;;  %v3808_v40 = vrot.slane %v3658_v55, %v3403_v11 }
  0x7e   : > { %5458 = vst [vmem:[#allocation26_spill] sm:$0xff] %v3808_v40 }
  0x80   : > { %1217 = vbcast.lane.b32.xlu1 %v1211_v46, 264  ;;  %1213 = vbcast.lane.b32.xlu0 %v1211_v46, 256 }
  0x84   : > { %1228 = vbcast.lane.b32.xlu1 %v1222_v48, 264  ;;  %1224 = vbcast.lane.b32.xlu0 %v1222_v48, 256 }
  0x88   : > { %1239 = vbcast.lane.b32.xlu1 %v1233_v49, 264  ;;  %1235 = vbcast.lane.b32.xlu0 %v1233_v49, 256  ;;  %v1530_v49 = vrot.slane %v3509_v59, %v3436_v26 }
  0x8c   : > { %1250 = vbcast.lane.b32.xlu1 %v1244_v50, 264  ;;  %1246 = vbcast.lane.b32.xlu0 %v1244_v50, 256  ;;  %v3747_v50 = vadd.s32 1, %v3467_v42 }
  0x8e   : > { %vm393_vm13 = vcmp.ge.s32.totalorder %v3747_v50, %v3472_v44  ;;  %vm394_vm14 = vcmp.le.s32.totalorder %v3747_v50, %v3474_v45 }
  0x90   : > { %1261 = vbcast.lane.b32.xlu1 %v1255_v52, 264  ;;  %1257 = vbcast.lane.b32.xlu0 %v1255_v52, 256 }
  0x94   : > { %1272 = vbcast.lane.b32.xlu1 %v1266_v58, 264  ;;  %1268 = vbcast.lane.b32.xlu0 %v1266_v58, 256 }
  0x98   : > { %1470 = vbcast.lane.b32.xlu1 %v1464_v61, 264  ;;  %1466 = vbcast.lane.b32.xlu0 %v1464_v61, 256  ;;  %v459_v61 = vmul.f32 %v3538_v4, %v3589_v34 }
  0x9c   : > { %1481 = vbcast.lane.b32.xlu1 %v1475_v0, 264  ;;  %1477 = vbcast.lane.b32.xlu0 %v1475_v0, 256  ;;  %v3681_v0 = vsel %vm3616_vm3, 1.0, %v5342_v3  ;;  %vm427_vm3 = vcmp.lt.s32.totalorder %v3582_v31, 32  ;;  %v3742_v31 = vsel %vm361_vm4, 1.0, %v5342_v3  ;;  %vm3849_vm4 = vmand %vm393_vm13, %vm394_vm14 }
  0x9d   : > { %5442 = vst [vmem:[#allocation18_spill] sm:$0xff] %v3681_v0  ;;  %v455_v29 = vmul.f32 %v3681_v0, %v3548_v10  ;;  %vm428_vm7 = vmand %vm3710_vm1, %vm427_vm3  ;;  %v465_v15 = vmul.f32 %v3742_v31, %v3551_v12  ;;  %vm396_vm1 = vcmp.ge.s32.totalorder %v3747_v50, 0  ;;  %v466_v5 = vmul.f32 %v3742_v31, %v3538_v4 }
  0x9e   : > { %vm398_vm3 = vcmp.lt.s32.totalorder %v3747_v50, 32  ;;  %vm397_vm6 = vmand %vm3849_vm4, %vm396_vm1  ;;  %vm5498_vm1 = vnez %v5422_v47 }
  0x9f   : > { %v3541_v7 = vpop.permute.xlu1 %552  ;;  %v3543_v9 = vpop.permute.xlu0 %530  ;;  %vm3931_vm8 = vmand %vm397_vm6, %vm398_vm3 }
  0xa0   : > { %5429 = vst [vmem:[#allocation15_spill] sm:$0xff] %v3541_v7  ;;  %5430 = vst [vmem:[#allocation16_spill] sm:$0xff] %v3543_v9  ;;  %1492 = vbcast.lane.b32.xlu1 %v1486_v2, 264  ;;  %1488 = vbcast.lane.b32.xlu0 %v1486_v2, 256  ;;  %v537_v37 = vmul.f32 %v536_v30, %v3543_v9  ;;  %v559_v62 = vmul.f32 %v3601_v38, %v3541_v7 }
  0xa1   : > { %vm4101_vm3 = vmand %vm5498_vm1, %vm436_vm0 }
  0xa2   : > { %vm439_vm4 = vmand %vm4101_vm3, %vm438_vm15 }
  0xa3   : > { %v3564_v19 = vpop.permute.xlu1 %563  ;;  %v3566_v21 = vpop.permute.xlu0 %541 }
  0xa4   : > { %5431 = vst [vmem:[#allocation17_spill] sm:$0xff] %v3566_v21  ;;  %1503 = vbcast.lane.b32.xlu1 %v1497_v14, 264  ;;  %1499 = vbcast.lane.b32.xlu0 %v1497_v14, 256  ;;  %v548_v35 = vmul.f32 %v547_v23, %v3566_v21  ;;  %v1541_v14 = vrot.slane %v3509_v59, %v3440_v28 }
  0xa5   : > { %v3716_v59 = vmul.f32 %v3671_v60, %v3658_v55  ;;  %v570_v30 = vmul.f32 %v569_v63, %v3564_v19 }
  0xa6   : > { %v549_v52 = vadd.f32 %v548_v35, %v537_v37  ;;  %v580_v35 = vrot.slane %v459_v61, %v3403_v11  ;;  %v3834_v61 = vmul.f32 %v3755_v54, %v3589_v34 }
  0xa7   : > { %v3584_v32 = vpop.permute.xlu1 %585  ;;  %v3586_v33 = vpop.permute.xlu0 %574 }
  0xa8   : > { %1514 = vbcast.lane.b32.xlu1 %v1508_v25, 264  ;;  %1510 = vbcast.lane.b32.xlu0 %v1508_v25, 256  ;;  %v560_v23 = vadd.f32 %v559_v62, %v549_v52  ;;  %v3721_v25 = vld [vmem:[%s5337_s4 + $0x20] sm:$0xff]  ;;  %v3750_v52 = vrot.slane %v455_v29, %v3403_v11  ;;  %v581_v58 = vmul.f32 %v580_v35, %v3586_v33 }
  0xa9   : > { %v1726_v27 = vrot.slane %v3721_v25, %v3403_v11  ;;  %v3788_v29 = vmul.f32 %v3755_v54, %v3548_v10  ;;  %v1770_v40 = vrot.slane %v3721_v25, %v3428_v22  ;;  %v469_v35 = vmul.f32 %v3681_v0, %v3742_v31 }
  0xaa   : > { %v571_v41 = vadd.f32 %v570_v30, %v560_v23  ;;  %v1748_v30 = vrot.slane %v3721_v25, %v3420_v18  ;;  %v1781_v57 = vrot.slane %v3721_v25, %v3432_v24 }
  0xab   : > { %v3624_v46 = vpop.permute.xlu1 %607  ;;  %v3626_v48 = vpop.permute.xlu0 %596 }
  0xac   : > { %1525 = vbcast.lane.b32.xlu1 %v1519_v36, 264  ;;  %1521 = vbcast.lane.b32.xlu0 %v1519_v36, 256  ;;  %v731_v36 = vunpack.c.0.s8 %v730_v13  ;;  %v1737_v13 = vrot.slane %v3721_v25, %v3416_v16  ;;  %v582_v23 = vadd.f32 %v581_v58, %v571_v41  ;;  %v1759_v58 = vrot.slane %v3721_v25, %v3424_v20 }
  0xae   : > { %v3766_v62 = vsub.s32 %v731_v36, %v3394_v8  ;;  %v592_v36 = vmul.f32 %v3784_v51, %v3584_v32  ;;  %v3927_v8 = vrot.slane %v469_v35, %v3403_v11 }
  0xaf   : > { %v3683_v1 = vpop.permute.xlu1 %629  ;;  %v3685_v2 = vpop.permute.xlu0 %618 }
  0xb0   : > { %5443 = vst [vmem:[#allocation19_spill] sm:$0xff] %v3685_v2  ;;  %1536 = vbcast.lane.b32.xlu1 %v1530_v49, 264  ;;  %1532 = vbcast.lane.b32.xlu0 %v1530_v49, 256  ;;  %v593_v49 = vadd.f32 %v592_v36, %v582_v23  ;;  %v871_v23 = vrot.slane %v3788_v29, %v3403_v11  ;;  %v5465_v36 = vmov 0.0   ;;  %5472 = vst [vmem:[#allocation33_spill] sm:$0xff] %v3927_v8 }
  0xb1   : > { %v3862_v56 = vsel %vm3796_vm12, 1.0, %v5465_v36 }
  0xb2   : > { %5466 = vst [vmem:[#allocation29_spill] sm:$0xff] %v3862_v56 }
  0xb3   : > { %v3730_v37 = vpop.permute.xlu1 %648  ;;  %v3732_v39 = vpop.permute.xlu0 %644 }
  0xb4   : > { %5448 = vst [vmem:[#allocation20_spill] sm:$0xff] %v3730_v37  ;;  %5449 = vst [vmem:[#allocation21_spill] sm:$0xff] %v3732_v39  ;;  %1547 = vbcast.lane.b32.xlu1 %v1541_v14, 264  ;;  %1543 = vbcast.lane.b32.xlu0 %v1541_v14, 256  ;;  %v3779_v14 = vsel %vm428_vm7, 1.0, %v5342_v3  ;;  %v3840_v3 = vrot.slane %v465_v15, %v3403_v11  ;;  %v467_v15 = vmul.f32 %v3562_v17, %v3742_v31 }
  0xb5   : > { %5455 = vst [vmem:[#allocation25_spill] sm:$0xff] %v3779_v14  ;;  %v3824_v41 = vmul.f32 %v3779_v14, %v3548_v10  ;;  %v3903_v37 = vmul.f32 %v3862_v56, %v3548_v10  ;;  %vm379_vm7 = vmand %vm3868_vm5, %vm378_vm2  ;;  %vm833_vm5 = vcmask 523264  }
  0xb6   : > { %v603_v29 = vmul.f32 %v3840_v3, %v3626_v48  ;;  %v3950_v50 = vsel %vm379_vm7, 1.0, %v5465_v36 }
  0xb7   : > { %v3768_v63 = vpop.permute.xlu1 %659  ;;  %v3770_v6 = vpop.permute.xlu0 %655 }
  0xb8   : > { %5453 = vst [vmem:[#allocation23_spill] sm:$0xff] %v3768_v63  ;;  %5454 = vst [vmem:[#allocation24_spill] sm:$0xff] %v3770_v6  ;;  %1732 = vbcast.lane.b32.xlu1 %v1726_v27, 264  ;;  %1728 = vbcast.lane.b32.xlu0 %v1726_v27, 256  ;;  %v3890_v6 = vmul.f32 %v3779_v14, %v3589_v34  ;;  %v470_v63 = vmul.f32 %v3779_v14, %v3742_v31 }
  0xba   : > { %v3947_v8 = vrot.slane %v470_v63, %v3403_v11  ;;  %v3961_v63 = vrot.slane %v3671_v60, %v3403_v11  ;;  %v866_v60 = vmul.f32 %v3601_v38, %v3543_v9 }
  0xbb   : > { %v3826_v55 = vpop.permute.xlu1 %670  ;;  %v3828_v27 = vpop.permute.xlu0 %666 }
  0xbc   : > { %5461 = vst [vmem:[#allocation27_spill] sm:$0xff] %v3826_v55  ;;  %5462 = vst [vmem:[#allocation28_spill] sm:$0xff] %v3828_v27  ;;  %1743 = vbcast.lane.b32.xlu1 %v1737_v13, 264  ;;  %1739 = vbcast.lane.b32.xlu0 %v1737_v13, 256  ;;  %v462_v13 = vmul.f32 %v3681_v0, %v3589_v34  ;;  %v468_v27 = vmul.f32 %v3755_v54, %v3742_v31 }
  0xbd   : > { %v604_v55 = vadd.f32 %v603_v29, %v593_v49  ;;  %v3919_v49 = vmul.f32 %v3862_v56, %v3589_v34  ;;  %5477 = vst [vmem:[#allocation36_spill] sm:$0xff] %v3947_v8  ;;  %5478 = vst [vmem:[#allocation37_spill] sm:$0xff] %v3961_v63  ;;  %v474_v63 = vmul.f32 %v3950_v50, %v3562_v17 }
  0xbf   : > { %v3882_v53 = vpop.permute.xlu1 %681  ;;  %v3884_v39 = vpop.permute.xlu0 %677 }
  0xc0   : > { %5469 = vst [vmem:[#allocation30_spill] sm:$0xff] %v3882_v53  ;;  %5470 = vst [vmem:[#allocation31_spill] sm:$0xff] %v3884_v39  ;;  %v3899_v53 = vrot.slane %v466_v5, %v3403_v11  ;;  %1754 = vbcast.lane.b32.xlu1 %v1748_v30, 264  ;;  %1750 = vbcast.lane.b32.xlu0 %v1748_v30, 256  ;;  %v3910_v39 = vrot.slane %v467_v15, %v3403_v11 }
  0xc1   : > { %v3915_v5 = vrot.slane %v462_v13, %v3403_v11  ;;  %v3924_v30 = vrot.slane %v468_v27, %v3403_v11  ;;  %v3936_v13 = vadd.s32 2, %v3467_v42  ;;  %v471_v27 = vmul.f32 %v3862_v56, %v3742_v31 }
  0xc2   : > { %v614_v10 = vmul.f32 %v3899_v53, %v3624_v46  ;;  %v1792_v42 = vrot.slane %v3721_v25, %v3436_v26  ;;  %v872_v31 = vmul.f32 %v871_v23, %v3566_v21 }
  0xc3   : > { %5471 = vst [vmem:[#allocation32_spill] sm:$0xff] %v3924_v30  ;;  %v3938_v34 = vpop.permute.xlu1 %692  ;;  %v3940_v29 = vpop.permute.xlu0 %688  ;;  %vm413_vm9 = vcmp.ge.s32.totalorder %v3936_v13, %v3472_v44  ;;  %vm414_vm10 = vcmp.le.s32.totalorder %v3936_v13, %v3474_v45  ;;  %v3985_v35 = vrot.slane %v471_v27, %v3403_v11  ;;  %vm416_vm11 = vcmp.ge.s32.totalorder %v3936_v13, 0 }
  0xc4   : > { %5475 = vst [vmem:[#allocation34_spill] sm:$0xff] %v3938_v34  ;;  %5476 = vst [vmem:[#allocation35_spill] sm:$0xff] %v3940_v29  ;;  %v615_v30 = vadd.f32 %v614_v10, %v604_v55  ;;  %1765 = vbcast.lane.b32.xlu1 %v1759_v58, 264  ;;  %1761 = vbcast.lane.b32.xlu0 %v1759_v58, 256  ;;  %v3966_v55 = vsel %vm3931_vm8, 1.0, %v5465_v36  ;;  %v625_v58 = vmul.f32 %v3910_v39, %v3685_v2 }
  0xc5   : > { %v3972_v10 = vmul.f32 %v3950_v50, %v3551_v12  ;;  %5482 = vst [vmem:[#allocation41_spill] sm:$0xff] %v3985_v35  ;;  %v3989_v29 = vmul.f32 %v3950_v50, %v3538_v4  ;;  %v479_v38 = vmul.f32 %v3966_v55, %v3551_v12  ;;  %v480_v27 = vmul.f32 %v3966_v55, %v3538_v4  ;;  %vm4010_vm12 = vmand %vm413_vm9, %vm414_vm10 }
  0xc6   : > { %v626_v34 = vadd.f32 %v625_v58, %v615_v30  ;;  %v481_v35 = vmul.f32 %v3966_v55, %v3562_v17  ;;  %v1803_v30 = vrot.slane %v3721_v25, %v3440_v28  ;;  %v476_v58 = vmul.f32 %v3681_v0, %v3950_v50  ;;  %vm4051_vm14 = vmand %vm4010_vm12, %vm416_vm11 }
  0xc7   : > { %5479 = vst [vmem:[#allocation38_spill] sm:$0xff] %v3972_v10  ;;  %v3980_v23 = vpop.permute.xlu1 %703  ;;  %v3982_v15 = vpop.permute.xlu0 %699  ;;  %v878_v44 = vmul.f32 %v3750_v52, %v3541_v7  ;;  %v4031_v25 = vrot.slane %v474_v63, %v3403_v11  ;;  %v4044_v2 = vrot.slane %v479_v38, %v3403_v11  ;;  %vm418_vm13 = vcmp.lt.s32.totalorder %v3936_v13, 32 }
  0xc8   : > { %5480 = vst [vmem:[#allocation39_spill] sm:$0xff] %v3980_v23  ;;  %5481 = vst [vmem:[#allocation40_spill] sm:$0xff] %v3982_v15  ;;  %1776 = vbcast.lane.b32.xlu1 %v1770_v40, 264  ;;  %1772 = vbcast.lane.b32.xlu0 %v1770_v40, 256  ;;  %v3997_v23 = vmul.f32 %v3755_v54, %v3950_v50  ;;  %v873_v15 = vadd.f32 %v872_v31, %v866_v60 }
  0xc9   : > { %v482_v60 = vmul.f32 %v3966_v55, %v3755_v54  ;;  %v483_v31 = vmul.f32 %v3681_v0, %v3966_v55  ;;  %v5487_v54 = vrot.slane %v3824_v41, %v3403_v11  ;;  %v1141_v63 = vmul.f32 %v3750_v52, %v3543_v9  ;;  %vm4088_vm2 = vmand %vm4051_vm14, %vm418_vm13 }
  0xca   : > { %v4067_v40 = vrot.slane %v476_v58, %v3403_v11  ;;  %v485_v38 = vmul.f32 %v3862_v56, %v3966_v55 }
  0xcb   : > { %v4022_v45 = vpop.permute.xlu1 %714  ;;  %v4024_v8 = vpop.permute.xlu0 %710  ;;  %v1147_v10 = vmul.f32 %v5487_v54, %v3566_v21  ;;  %v879_v54 = vadd.f32 %v878_v44, %v873_v15  ;;  %v4070_v0 = vrot.slane %v482_v60, %v3403_v11  ;;  %v4080_v52 = vrot.slane %v483_v31, %v3403_v11 }
  0xcc   : > { %5485 = vst [vmem:[#allocation42_spill] sm:$0xff] %v4022_v45  ;;  %5486 = vst [vmem:[#allocation43_spill] sm:$0xff] %v4024_v8  ;;  %v632_v45 = vadd.f32 %v3683_v1, %v626_v34  ;;  %1787 = vbcast.lane.b32.xlu1 %v1781_v57, 264  ;;  %1783 = vbcast.lane.b32.xlu0 %v1781_v57, 256  ;;  %v522_v8 = vld [vmem:[%s5337_s4 + $0x28] sm:$0xff]  ;;  %v4056_v57 = vrot.slane %v480_v27, %v3403_v11 }
  0xcd   : > { %v4059_v34 = vrot.slane %v481_v35, %v3403_v11  ;;  %5491 = vst [vmem:[#allocation45_spill] sm:$0xff] %v4070_v0  ;;  %v880_v35 = vmul.f32 %v3784_v51, %v3564_v19  ;;  %v1988_v27 = vrot.slane %v522_v8, %v3403_v11  ;;  %5494 = vst [vmem:[#allocation48_spill] sm:$0xff] %v4080_v52 }
  0xce   : > { %v633_v60 = vmax.f32 %v632_v45, 0.0  ;;  %v1148_v51 = vadd.f32 %v1147_v10, %v1141_v63  ;;  %v1999_v45 = vrot.slane %v522_v8, %v3416_v16  ;;  %v484_v10 = vmul.f32 %v3779_v14, %v3966_v55 }
  0xcf   : > { %5490 = vst [vmem:[#allocation44_spill] sm:$0xff] %v4059_v34  ;;  %v4072_v44 = vpop.permute.xlu1 %725  ;;  %v4074_v15 = vpop.permute.xlu0 %721  ;;  %v881_v31 = vadd.f32 %v880_v35, %v879_v54  ;;  %v4113_v41 = vrot.slane %v522_v8, %v3420_v18  ;;  %v4116_v63 = vrot.slane %v522_v8, %v3424_v20  ;;  %v4119_v47 = vrot.slane %v522_v8, %v3428_v22 }
  0xd0   : > { %5492 = vst [vmem:[#allocation46_spill] sm:$0xff] %v4072_v44  ;;  %5493 = vst [vmem:[#allocation47_spill] sm:$0xff] %v4074_v15  ;;  %1798 = vbcast.lane.b32.xlu1 %v1792_v42, 264  ;;  %1794 = vbcast.lane.b32.xlu0 %v1792_v42, 256  ;;  %v4094_v15 = vmul.f32 %v3779_v14, %v3950_v50  ;;  %v4108_v42 = vmul.f32 %v3862_v56, %v3950_v50 }
  0xd1   : > { %v5502_v54 = vrot.slane %v3903_v37, %v3403_v11  ;;  %v5504_v50 = vrot.slane %v3834_v61, %v3403_v11  ;;  %v4134_v14 = vrot.slane %v522_v8, %v3432_v24  ;;  %v4137_v52 = vrot.slane %v485_v38, %v3403_v11 }
  0xd2   : > { %5497 = vst [vmem:[#allocation49_spill] sm:$0xff] %v4094_v15  ;;  %5501 = vst [vmem:[#allocation50_spill] sm:$0xff] %v4108_v42  ;;  %v4142_v37 = vsel %vm4088_vm2, 1.0, %v5465_v36  ;;  %v5508_v61 = vrot.slane %v3716_v59, %v3403_v11  ;;  %v4156_v58 = vrot.slane %v522_v8, %v3436_v26  ;;  %v4188_v59 = vrot.slane %v522_v8, %v3440_v28 }
  0xd3   : > { %v1153_v35 = vmul.f32 %v5502_v54, %v3541_v7  ;;  %v4125_v44 = vpop.permute.xlu1 %924  ;;  %v886_v55 = vmul.f32 %v5504_v50, %v3586_v33  ;;  %v4131_v56 = vpop.permute.xlu0 %920  ;;  %5506 = vst [vmem:[#allocation53_spill] sm:$0xff] %v4137_v52  ;;  %5507 = vst [vmem:[#allocation54_spill] sm:$0xff] %v4142_v37  ;;  %v4175_v13 = vmul.f32 %v4142_v37, %v3551_v12 }
  0xd4   : > { %5503 = vst [vmem:[#allocation51_spill] sm:$0xff] %v4125_v44  ;;  %5505 = vst [vmem:[#allocation52_spill] sm:$0xff] %v4131_v56  ;;  %v4151_v54 = vmul.f32 %v5508_v61, %v633_v60  ;;  %1809 = vbcast.lane.b32.xlu1 %v1803_v30, 264  ;;  %1805 = vbcast.lane.b32.xlu0 %v1803_v30, 256  ;;  %v4166_v60 = vrot.slane %v484_v10, %v3403_v11 }
  0xd5   : > { %v1154_v50 = vadd.f32 %v1153_v35, %v1148_v51  ;;  %v887_v52 = vadd.f32 %v886_v55, %v881_v31  ;;  %v1155_v30 = vmul.f32 %v3915_v5, %v3564_v19  ;;  %v4171_v51 = vsel %vm439_vm4, 1.0, %v5465_v36  ;;  %5511 = vst [vmem:[#allocation57_spill] sm:$0xff] %v4175_v13 }
  0xd6   : > { %5509 = vst [vmem:[#allocation55_spill] sm:$0xff] %v4166_v60  ;;  %5510 = vst [vmem:[#allocation56_spill] sm:$0xff] %v4171_v51  ;;  %v488_v31 = vmul.f32 %v4142_v37, %v3562_v17  ;;  %v1414_v35 = vmul.f32 %v3899_v53, %v3566_v21  ;;  %v892_v10 = vmul.f32 %v3915_v5, %v3584_v32 }
  0xd7   : > { %v4183_v55 = vpop.permute.xlu1 %935  ;;  %v4185_v61 = vpop.permute.xlu0 %931  ;;  %v4192_v38 = vmul.f32 %v4142_v37, %v3538_v4  ;;  %v735_v36 = vrot.slane %v4151_v54, %v3766_v62  ;;  %v1156_v53 = vadd.f32 %v1155_v30, %v1154_v50  ;;  %v4198_v5 = vrot.slane %v4161_v43, %v3403_v11 }
  0xd8   : > { %5512 = vst [vmem:[#allocation58_spill] sm:$0xff] %v4185_v61  ;;  %1994 = vbcast.lane.b32.xlu1 %v1988_v27, 264  ;;  %1990 = vbcast.lane.b32.xlu0 %v1988_v27, 256  ;;  %v1412_v60 = vmul.f32 %v3840_v3, %v3543_v9  ;;  %v893_v42 = vadd.f32 %v892_v10, %v887_v52 }
  0xd9   : > { %5513 = vst [vmem:[#allocation59_spill] sm:$0xff] %v4192_v38  ;;  %v4204_v8 = vmul.f32 %v4171_v51, %v3551_v12  ;;  %v4208_v37 = vmul.f32 %v4171_v51, %v3538_v4  ;;  %v5516_v27 = vrot.slane %v3890_v6, %v3403_v11  ;;  %v495_v30 = vmul.f32 %v4171_v51, %v3562_v17  ;;  %v5523_v17 = vld [vmem:[#allocation32_spill] sm:$0xff] }
  0xda   : > { %v4219_v52 = vrot.slane %v488_v31, %v3403_v11  ;;  %v1415_v12 = vadd.f32 %v1414_v35, %v1412_v60  ;;  %v894_v10 = vmul.f32 %v3910_v39, %v3626_v48  ;;  %v4229_v6 = vrot.slane %v4161_v43, %v3416_v16  ;;  %v4240_v35 = vld [vmem:[%s5337_s4 + $0x38] sm:$0xff] }
  0xdb   : > { %5514 = vst [vmem:[#allocation60_spill] sm:$0xff] %v4204_v8  ;;  %5515 = vst [vmem:[#allocation61_spill] sm:$0xff] %v4208_v37  ;;  %v1161_v50 = vmul.f32 %v5516_v27, %v3586_v33  ;;  %v4223_v4 = vpop.permute.xlu1 %946  ;;  %v4225_v15 = vpop.permute.xlu0 %942  ;;  %v743_v27 = vcombine.high %v735_v36, %v735_v36  ;;  %v4235_v60 = vrot.slane %v4161_v43, %v3420_v18 }
  0xdc   : > { %5517 = vst [vmem:[#allocation62_spill] sm:$0xff] %v4219_v52  ;;  %5518 = vst [vmem:[#allocation63_spill] sm:$0xff] %v4223_v4  ;;  %2005 = vbcast.lane.b32.xlu1 %v1999_v45, 264  ;;  %2001 = vbcast.lane.b32.xlu0 %v1999_v45, 256  ;;  %v895_v3 = vadd.f32 %v894_v10, %v893_v42  ;;  %v1416_v51 = vmul.f32 %v3910_v39, %v3541_v7 }
  0xdd   : > { %5519 = vst [vmem:[#allocation64_spill] sm:$0xff] %v4225_v15  ;;  %v1162_v31 = vadd.f32 %v1161_v50, %v1156_v53  ;;  %v5520_v53 = vrot.slane %v3919_v49, %v3403_v11  ;;  %v4254_v52 = vrot.slane %v4161_v43, %v3424_v20  ;;  %v4258_v42 = vrot.slane %v4161_v43, %v3428_v22 }
  0xde   : > { %v4261_v10 = vrot.slane %v495_v30, %v3403_v11  ;;  %v900_v8 = vmul.f32 %v5523_v17, %v3624_v46  ;;  %v4271_v49 = vrot.slane %v4240_v35, %v3403_v11  ;;  %v1417_v38 = vadd.f32 %v1416_v51, %v1415_v12  ;;  %v4280_v30 = vld [vmem:[%s5337_s4 + $0x40] sm:$0xff]  ;;  %v5529_v12 = vld [vmem:[#allocation38_spill] sm:$0xff] }
  0xdf   : > { %v1167_v50 = vmul.f32 %v5520_v53, %v3584_v32  ;;  %5521 = vst [vmem:[#allocation65_spill] sm:$0xff] %v4258_v42  ;;  %v4265_v45 = vpop.permute.xlu1 %957  ;;  %v4267_v37 = vpop.permute.xlu0 %953  ;;  %v4275_v53 = vrot.slane %v4161_v43, %v3432_v24  ;;  %v4289_v28 = vrot.slane %v4240_v35, %v3416_v16  ;;  %v751_v24 = vrot.slane %v735_v36, %v3766_v62 }
  0xe0   : > { %5522 = vst [vmem:[#allocation66_spill] sm:$0xff] %v4261_v10  ;;  %5524 = vst [vmem:[#allocation32_spill] sm:$0xff] %v4265_v45  ;;  %v4283_v10 = vrot.slane %v743_v27, %v3766_v62  ;;  %2016 = vbcast.lane.b32.xlu1 %v4113_v41, 264  ;;  %2012 = vbcast.lane.b32.xlu0 %v4113_v41, 256  ;;  %v901_v51 = vadd.f32 %v900_v8, %v895_v3  ;;  %v5535_v8 = vld [vmem:[#allocation19_spill] sm:$0xff] }
  0xe1   : > { %5525 = vst [vmem:[#allocation67_spill] sm:$0xff] %v4267_v37  ;;  %5526 = vst [vmem:[#allocation68_spill] sm:$0xff] %v4271_v49  ;;  %v1168_v13 = vadd.f32 %v1167_v50, %v1162_v31  ;;  %v5530_v37 = vrot.slane %v5529_v12, %v3403_v11  ;;  %v4298_v27 = vrot.slane %v4240_v35, %v3420_v18  ;;  %v5532_v31 = vld [vmem:[#allocation33_spill] sm:$0xff] }
  0xe2   : > { %5527 = vst [vmem:[#allocation69_spill] sm:$0xff] %v4275_v53  ;;  %5528 = vst [vmem:[#allocation70_spill] sm:$0xff] %v4289_v28  ;;  %v1687_v41 = vmul.f32 %v3910_v39, %v3543_v9  ;;  %v1169_v50 = vmul.f32 %v5532_v31, %v3626_v48  ;;  %v4306_v28 = vrot.slane %v4280_v30, %v3403_v11 }
  0xe3   : > { %v1422_v45 = vmul.f32 %v5530_v37, %v3564_v19  ;;  %5531 = vst [vmem:[#allocation38_spill] sm:$0xff] %v4298_v27  ;;  %v4310_v36 = vrot.slane %v4280_v30, %v3416_v16  ;;  %v906_v37 = vmul.f32 %v5532_v31, %v5535_v8  ;;  %v4314_v3 = vpop.permute.xlu1 %968  ;;  %v4316_v12 = vpop.permute.xlu0 %964  ;;  %v1949_v39 = vmul.f32 %v5532_v31, %v3543_v9  ;;  %v5538_v27 = vld [vmem:[#allocation36_spill] sm:$0xff] }
  0xe4   : > { %5533 = vst [vmem:[#allocation33_spill] sm:$0xff] %v4306_v28  ;;  %5536 = vst [vmem:[#allocation72_spill] sm:$0xff] %v4314_v3  ;;  %v1951_v53 = vmul.f32 %v5538_v27, %v3566_v21  ;;  %v784_v28 = vrot.slane %v4283_v10, %v3403_v11  ;;  %2027 = vbcast.lane.b32.xlu1 %v4116_v63, 264  ;;  %2023 = vbcast.lane.b32.xlu0 %v4116_v63, 256 }
  0xe5   : > { %5534 = vst [vmem:[#allocation71_spill] sm:$0xff] %v4310_v36  ;;  %5537 = vst [vmem:[#allocation73_spill] sm:$0xff] %v4316_v12  ;;  %v1423_v49 = vadd.f32 %v1422_v45, %v1417_v38  ;;  %v1170_v16 = vadd.f32 %v1169_v50, %v1168_v13  ;;  %v5539_v36 = vld [vmem:[#allocation41_spill] sm:$0xff]  ;;  %v780_v12 = vrot.slane %v751_v24, %v3403_v11 }
  0xe6   : > { %v1953_v3 = vmul.f32 %v5539_v36, %v3541_v7  ;;  %v728_v15 = vcombine.high %v4151_v54, %v4151_v54  ;;  %v907_v4 = vadd.f32 %v906_v37, %v901_v51  ;;  %v5540_v38 = vrot.slane %v3989_v29, %v3403_v11  ;;  %v5543_v37 = vld [vmem:[#allocation23_spill] sm:$0xff] }
  0xe7   : > { %v773_v61 = vcombine.high %v751_v24, %v751_v24  ;;  %v1175_v56 = vmul.f32 %v5538_v27, %v3624_v46  ;;  %v4339_v63 = vmul.f32 %v4044_v2, %v3543_v9  ;;  %v4343_v13 = vrot.slane %v4240_v35, %v3424_v20  ;;  %v4347_v51 = vpop.permute.xlu1 %979  ;;  %v4349_v50 = vpop.permute.xlu0 %975  ;;  %v5544_v9 = vld [vmem:[#allocation24_spill] sm:$0xff] }
  0xe8   : > { %v1428_v45 = vmul.f32 %v5540_v38, %v3586_v33  ;;  %v1689_v54 = vmul.f32 %v5523_v17, %v3566_v21  ;;  %5542 = vst [vmem:[#allocation41_spill] sm:$0xff] %v4347_v51  ;;  %v1952_v29 = vadd.f32 %v1951_v53, %v1949_v39  ;;  %v1691_v27 = vmul.f32 %v5532_v31, %v3541_v7  ;;  %v5545_v17 = vld [vmem:[#allocation20_spill] sm:$0xff]  ;;  %v5546_v31 = vld [vmem:[#allocation21_spill] sm:$0xff] }
  0xe9   : > { %5541 = vst [vmem:[#allocation36_spill] sm:$0xff] %v4343_v13  ;;  %v820_v38 = vmul.f32 %v784_v28, %v5543_v37  ;;  %v819_v42 = vmul.f32 %v784_v28, %v5544_v9  ;;  %2038 = vbcast.lane.b32.xlu1 %v4119_v47, 264  ;;  %2034 = vbcast.lane.b32.xlu0 %v4119_v47, 256 }
  0xea   : > { %v1429_v24 = vadd.f32 %v1428_v45, %v1423_v49  ;;  %v1176_v13 = vadd.f32 %v1175_v56, %v1170_v16  ;;  %v818_v44 = vmul.f32 %v780_v12, %v5545_v17  ;;  %v742_v51 = vrot.slane %v728_v15, %v3766_v62 }
  0xeb   : > { %v908_v53 = vadd.f32 %v907_v4, %v3683_v1  ;;  %v1434_v49 = vmul.f32 %v4031_v25, %v3584_v32  ;;  %v817_v39 = vmul.f32 %v780_v12, %v5546_v31  ;;  %v788_v45 = vrot.slane %v773_v61, %v3403_v11  ;;  %v4368_v47 = vpop.permute.xlu1 %990  ;;  %v4370_v16 = vpop.permute.xlu0 %986 }
  0xec   : > { %v775_v28 = vcombine.high %v4283_v10, %v4283_v10  ;;  %v1181_v9 = vmul.f32 %v5539_v36, %v5535_v8  ;;  %v1690_v56 = vadd.f32 %v1689_v54, %v1687_v41  ;;  %v4372_v15 = vadd.f32 %v1953_v3, %v1952_v29 }
  0xed   : > { %v1435_v4 = vadd.f32 %v1434_v49, %v1429_v24  ;;  %v1440_v37 = vmul.f32 %v4044_v2, %v3626_v48  ;;  %v850_v12 = vsel %vm833_vm5, %v820_v38, 0.0  ;;  %v835_v61 = vsel %vm833_vm5, %v819_v42, 0.0  ;;  %2049 = vbcast.lane.b32.xlu1 %v4134_v14, 264  ;;  %2045 = vbcast.lane.b32.xlu0 %v4134_v14, 256  ;;  %v5547_v42 = vld [vmem:[#allocation27_spill] sm:$0xff]  ;;  %v5548_v38 = vld [vmem:[#allocation28_spill] sm:$0xff] }
  0xee   : > { %v1182_v10 = vadd.f32 %v1181_v9, %v1176_v13  ;;  %v1446_v41 = vmul.f32 %v4056_v57, %v3624_v46  ;;  %v849_v36 = vsel %vm833_vm5, %v818_v44, 0.0  ;;  %v4384_v3 = vrot.slane %v742_v51, %v3766_v62 }
  0xef   : > { %v909_v54 = vmax.f32 %v908_v53, 0.0  ;;  %v1452_v2 = vmul.f32 %v4059_v34, %v5535_v8  ;;  %v834_v29 = vsel %vm833_vm5, %v817_v39, 0.0  ;;  %v822_v24 = vmul.f32 %v788_v45, %v5547_v42  ;;  %v4392_v9 = vpop.permute.xlu1 %1001  ;;  %v4394_v44 = vpop.permute.xlu0 %997 }
  0xf0   : > { %v821_v17 = vmul.f32 %v788_v45, %v5548_v38  ;;  %v792_v14 = vrot.slane %v775_v28, %v3403_v11  ;;  %v851_v13 = vadd.f32 %v850_v12, %v849_v36  ;;  %v836_v49 = vadd.f32 %v835_v61, %v834_v29  ;;  %5549 = vst [vmem:[#allocation23_spill] sm:$0xff] %v4394_v44  ;;  %v5550_v28 = vld [vmem:[#allocation26_spill] sm:$0xff] }
  0xf1   : > { %v744_v31 = vcombine.high %v742_v51, %v742_v51  ;;  %v1441_v7 = vadd.f32 %v1440_v37, %v1435_v4  ;;  %2060 = vbcast.lane.b32.xlu1 %v4156_v58, 264  ;;  %2056 = vbcast.lane.b32.xlu0 %v4156_v58, 256  ;;  %v1183_v53 = vadd.f32 %v1182_v10, %v3683_v1  ;;  %v852_v58 = vsel %vm833_vm5, %v822_v24, 0.0  ;;  %v5551_v10 = vld [vmem:[#allocation30_spill] sm:$0xff] }
  0xf2   : > { %v2213_v39 = vmul.f32 %v4056_v57, %v3566_v21  ;;  %v4403_v45 = vrot.slane %v4280_v30, %v3420_v18  ;;  %v796_v51 = vrot.slane %v4384_v3, %v3403_v11  ;;  %v914_v12 = vmul.f32 %v5550_v28, %v909_v54  ;;  %v5552_v57 = vld [vmem:[#allocation31_spill] sm:$0xff] }
  0xf3   : > { %v1692_v61 = vadd.f32 %v1691_v27, %v1690_v56  ;;  %v1693_v4 = vmul.f32 %v4031_v25, %v3564_v19  ;;  %v837_v37 = vsel %vm833_vm5, %v821_v17, 0.0  ;;  %v824_v36 = vmul.f32 %v792_v14, %v5551_v10  ;;  %v4415_v21 = vpop.permute.xlu1 %1195  ;;  %v4417_v44 = vpop.permute.xlu0 %1191 }
  0xf4   : > { %v823_v29 = vmul.f32 %v792_v14, %v5552_v57  ;;  %v853_v42 = vadd.f32 %v852_v58, %v851_v13  ;;  %v838_v18 = vadd.f32 %v837_v37, %v836_v49  ;;  %v772_v38 = vrot.slane %v744_v31, %v3766_v62  ;;  %5553 = vst [vmem:[#allocation24_spill] sm:$0xff] %v4417_v44  ;;  %v5556_v49 = vld [vmem:[#allocation34_spill] sm:$0xff] }
  0xf5   : > { %v1447_v27 = vadd.f32 %v1446_v41, %v1441_v7  ;;  %v1184_v56 = vmax.f32 %v1183_v53, 0.0  ;;  %2071 = vbcast.lane.b32.xlu1 %v4188_v59, 264  ;;  %2067 = vbcast.lane.b32.xlu0 %v4188_v59, 256  ;;  %v4422_v25 = vadd.f32 %v2213_v39, %v4339_v63  ;;  %v4426_v54 = vrot.slane %v4240_v35, %v3428_v22  ;;  %v5557_v53 = vld [vmem:[#allocation35_spill] sm:$0xff] }
  0xf6   : > { %v4430_v24 = vrot.slane %v4280_v30, %v3424_v20  ;;  %v1011_v17 = vrot.slane %v914_v12, %v3766_v62  ;;  %v1004_v14 = vcombine.high %v914_v12, %v914_v12  ;;  %v1694_v7 = vadd.f32 %v1693_v4, %v1692_v61 }
  0xf7   : > { %5554 = vst [vmem:[#allocation20_spill] sm:$0xff] %v4422_v25  ;;  %v5555_v41 = vrot.slane %v3997_v23, %v3403_v11  ;;  %v854_v63 = vsel %vm833_vm5, %v824_v36, 0.0  ;;  %v839_v13 = vsel %vm833_vm5, %v823_v29, 0.0  ;;  %v826_v31 = vmul.f32 %v796_v51, %v5556_v49  ;;  %v4442_v10 = vpop.permute.xlu1 %1206  ;;  %v4444_v12 = vpop.permute.xlu0 %1202  ;;  %v5558_v36 = vld [vmem:[#allocation39_spill] sm:$0xff]  ;;  %v5559_v29 = vld [vmem:[#allocation40_spill] sm:$0xff] }
  0xf8   : > { %v825_v39 = vmul.f32 %v796_v51, %v5557_v53  ;;  %v855_v58 = vadd.f32 %v854_v63, %v853_v42  ;;  %v840_v20 = vadd.f32 %v839_v13, %v838_v18  ;;  %v800_v37 = vrot.slane %v772_v38, %v3403_v11 }
  0xf9   : > { %v1699_v59 = vmul.f32 %v5555_v41, %v3586_v33  ;;  %v1453_v61 = vadd.f32 %v1452_v2, %v1447_v27  ;;  %v774_v23 = vcombine.high %v4384_v3, %v4384_v3  ;;  %v1185_v4 = vmul.f32 %v1184_v56, %v5550_v28  ;;  %2265 = vbcast.lane.b32.xlu1 %v4198_v5, 264 }
  0xfa   : > { %2261 = vbcast.lane.b32.xlu0 %v4198_v5, 256  ;;  %v1705_v51 = vmul.f32 %v4067_v40, %v3584_v32  ;;  %v828_v57 = vmul.f32 %v800_v37, %v5558_v36  ;;  %v827_v42 = vmul.f32 %v800_v37, %v5559_v29  ;;  %v1019_v18 = vcombine.high %v1011_v17, %v1011_v17  ;;  %v5563_v29 = vld [vmem:[#allocation43_spill] sm:$0xff] }
  0xfb   : > { %v4457_v2 = vmul.f32 %v4059_v34, %v3626_v48  ;;  %v856_v3 = vsel %vm833_vm5, %v826_v31, 0.0  ;;  %v841_v28 = vsel %vm833_vm5, %v825_v39, 0.0  ;;  %v776_v27 = vcombine.high %v772_v38, %v772_v38  ;;  %v4462_v63 = vpop.permute.xlu1 %1217  ;;  %v4464_v13 = vpop.permute.xlu0 %1213 }
  0xfc   : > { %v1018_v56 = vrot.slane %v1004_v14, %v3766_v62  ;;  %v857_v5 = vadd.f32 %v856_v3, %v855_v58  ;;  %v842_v41 = vadd.f32 %v841_v28, %v840_v20  ;;  %5560 = vst [vmem:[#allocation21_spill] sm:$0xff] %v4462_v63  ;;  %5561 = vst [vmem:[#allocation27_spill] sm:$0xff] %v4464_v13  ;;  %v858_v14 = vsel %vm833_vm5, %v828_v57, 0.0 }
  0xfd   : > { %v1454_v49 = vadd.f32 %v1453_v61, %v3683_v1  ;;  %v4469_v53 = vmul.f32 %v4070_v0, %v3624_v46  ;;  %v804_v37 = vrot.slane %v774_v23, %v3403_v11  ;;  %v4473_v31 = vrot.slane %v1185_v4, %v3766_v62  ;;  %2276 = vbcast.lane.b32.xlu1 %v4229_v6, 264  ;;  %v5562_v61 = vld [vmem:[#allocation42_spill] sm:$0xff] }
  0xfe   : > { %2272 = vbcast.lane.b32.xlu0 %v4229_v6, 256  ;;  %v1700_v38 = vadd.f32 %v1699_v59, %v1694_v7  ;;  %v843_v39 = vsel %vm833_vm5, %v827_v42, 0.0  ;;  %v1027_v58 = vrot.slane %v1011_v17, %v3766_v62  ;;  %v1041_v20 = vrot.slane %v1019_v18, %v3766_v62  ;;  %v5566_v59 = vld [vmem:[#allocation48_spill] sm:$0xff]  ;;  %v5567_v17 = vld [vmem:[#allocation46_spill] sm:$0xff]  ;;  %v5568_v18 = vld [vmem:[#allocation47_spill] sm:$0xff] }
  0xff   : > { %v830_v36 = vmul.f32 %v804_v37, %v5562_v61  ;;  %v829_v23 = vmul.f32 %v804_v37, %v5563_v29  ;;  %v808_v3 = vrot.slane %v776_v27, %v3403_v11  ;;  %v1020_v28 = vcombine.high %v1018_v56, %v1018_v56  ;;  %v4484_v13 = vpop.permute.xlu1 %1228  ;;  %v4486_v6 = vpop.permute.xlu0 %1224 }
 0x100   : > { %v859_v0 = vadd.f32 %v858_v14, %v857_v5  ;;  %v844_v25 = vadd.f32 %v843_v39, %v842_v41  ;;  %5564 = vst [vmem:[#allocation28_spill] sm:$0xff] %v4484_v13  ;;  %5565 = vst [vmem:[#allocation26_spill] sm:$0xff] %v4486_v6  ;;  %v1455_v7 = vmax.f32 %v1454_v49, 0.0  ;;  %v4490_v57 = vmul.f32 %v5566_v59, %v5535_v8  ;;  %v5572_v6 = vld [vmem:[#allocation37_spill] sm:$0xff] }
 0x101   : > { %v832_v42 = vmul.f32 %v808_v3, %v5567_v17  ;;  %v831_v61 = vmul.f32 %v808_v3, %v5568_v18  ;;  %2287 = vbcast.lane.b32.xlu1 %v4235_v60, 264  ;;  %v1275_v27 = vcombine.high %v1185_v4, %v1185_v4  ;;  %v1049_v5 = vcombine.high %v1027_v58, %v1027_v58 }
 0x102   : > { %2283 = vbcast.lane.b32.xlu0 %v4235_v60, 256  ;;  %v1051_v41 = vcombine.high %v1041_v20, %v1041_v20  ;;  %v1298_v37 = vrot.slane %v4473_v31, %v3766_v62  ;;  %v4500_v49 = vrot.slane %v4161_v43, %v3436_v26  ;;  %v860_v14 = vsel %vm833_vm5, %v830_v36, 0.0 }
 0x103   : > { %v845_v39 = vsel %vm833_vm5, %v829_v23, 0.0  ;;  %v1034_v29 = vrot.slane %v1018_v56, %v3766_v62  ;;  %v1048_v3 = vrot.slane %v1020_v28, %v3766_v62  ;;  %v861_v17 = vadd.f32 %v860_v14, %v859_v0  ;;  %v4506_v4 = vpop.permute.xlu1 %1239  ;;  %v4508_v18 = vpop.permute.xlu0 %1235 }
 0x104   : > { %5569 = vst [vmem:[#allocation30_spill] sm:$0xff] %v4500_v49  ;;  %v846_v60 = vadd.f32 %v845_v39, %v844_v25  ;;  %5570 = vst [vmem:[#allocation31_spill] sm:$0xff] %v4506_v4  ;;  %v1460_v13 = vmul.f32 %v5572_v6, %v1455_v7  ;;  %v1706_v34 = vadd.f32 %v1705_v51, %v1700_v38  ;;  %v862_v8 = vsel %vm833_vm5, %v832_v42, 0.0  ;;  %v5580_v6 = vld [vmem:[#allocation58_spill] sm:$0xff]  ;;  %v5588_v4 = vld [vmem:[#allocation32_spill] sm:$0xff] }
 0x105   : > { %5571 = vst [vmem:[#allocation34_spill] sm:$0xff] %v4508_v18  ;;  %v847_v63 = vsel %vm833_vm5, %v831_v61, 0.0  ;;  %v1056_v36 = vrot.slane %v1027_v58, %v3403_v11  ;;  %v1289_v23 = vrot.slane %v1275_v27, %v3766_v62  ;;  %2298 = vbcast.lane.b32.xlu1 %v4254_v52, 264  ;;  %v1060_v0 = vrot.slane %v1041_v20, %v3403_v11 }
 0x106   : > { %2294 = vbcast.lane.b32.xlu0 %v4254_v52, 256  ;;  %v1064_v25 = vrot.slane %v1049_v5, %v3403_v11  ;;  %v1068_v56 = vrot.slane %v1051_v41, %v3403_v11  ;;  %v1290_v51 = vcombine.high %v4473_v31, %v4473_v31  ;;  %v4523_v38 = vrot.slane %v1034_v29, %v3403_v11  ;;  %v5577_v5 = vld [vmem:[#allocation51_spill] sm:$0xff] }
 0x107   : > { %v1050_v28 = vcombine.high %v1034_v29, %v1034_v29  ;;  %v1052_v58 = vcombine.high %v1048_v3, %v1048_v3  ;;  %v4526_v7 = vrot.slane %v1298_v37, %v3403_v11  ;;  %v4528_v42 = vadd.f32 %v862_v8, %v861_v17  ;;  %v4533_v61 = vpop.permute.xlu1 %1250  ;;  %v4535_v27 = vpop.permute.xlu0 %1246  ;;  %v5578_v29 = vld [vmem:[#allocation65_spill] sm:$0xff]  ;;  %v5579_v8 = vld [vmem:[#allocation52_spill] sm:$0xff] }
 0x108   : > { %v4530_v52 = vadd.f32 %v847_v63, %v846_v60  ;;  %v1096_v20 = vmul.f32 %v1060_v0, %v4183_v55  ;;  %5575 = vst [vmem:[#allocation40_spill] sm:$0xff] %v4533_v61  ;;  %5576 = vst [vmem:[#allocation42_spill] sm:$0xff] %v4535_v27  ;;  %v1557_v31 = vrot.slane %v1460_v13, %v3766_v62 }
 0x109   : > { %5573 = vst [vmem:[#allocation35_spill] sm:$0xff] %v4528_v42  ;;  %v1094_v41 = vmul.f32 %v1056_v36, %v5577_v5  ;;  %v4540_v14 = vrot.slane %v1048_v3, %v3403_v11  ;;  %v1291_v39 = vcombine.high %v1289_v23, %v1289_v23  ;;  %2309 = vbcast.lane.b32.xlu1 %v5578_v29, 264 }
 0x10a   : > { %5574 = vst [vmem:[#allocation39_spill] sm:$0xff] %v4530_v52  ;;  %2305 = vbcast.lane.b32.xlu0 %v5578_v29, 256  ;;  %v1093_v63 = vmul.f32 %v1056_v36, %v5579_v8  ;;  %v1312_v55 = vrot.slane %v1290_v51, %v3766_v62  ;;  %v1320_v17 = vcombine.high %v1298_v37, %v1298_v37  ;;  %v1125_v61 = vsel %vm833_vm5, %v1096_v20, 0.0  ;;  %v5581_v29 = vld [vmem:[#allocation63_spill] sm:$0xff]  ;;  %v5586_v8 = vld [vmem:[#allocation69_spill] sm:$0xff] }
 0x10b   : > { %v1708_v60 = vadd.f32 %v4457_v2, %v1706_v34  ;;  %v1095_v52 = vmul.f32 %v1060_v0, %v5580_v6  ;;  %v4549_v27 = vrot.slane %v1050_v28, %v3403_v11  ;;  %v4552_v3 = vrot.slane %v1052_v58, %v3403_v11  ;;  %v4557_v36 = vpop.permute.xlu1 %1261  ;;  %v4559_v51 = vpop.permute.xlu0 %1257  ;;  %v5584_v6 = vld [vmem:[#allocation64_spill] sm:$0xff] }
 0x10c   : > { %v1305_v5 = vrot.slane %v1289_v23, %v3766_v62  ;;  %v1098_v18 = vmul.f32 %v1064_v25, %v5581_v29  ;;  %5582 = vst [vmem:[#allocation43_spill] sm:$0xff] %v4557_v36  ;;  %5583 = vst [vmem:[#allocation48_spill] sm:$0xff] %v4559_v51  ;;  %v1565_v37 = vcombine.high %v1557_v31, %v1557_v31  ;;  %v1124_v2 = vsel %vm833_vm5, %v1094_v41, 0.0  ;;  %v5585_v58 = vld [vmem:[#allocation68_spill] sm:$0xff] }
 0x10d   : > { %v1550_v34 = vcombine.high %v1460_v13, %v1460_v13  ;;  %v1097_v0 = vmul.f32 %v1064_v25, %v5584_v6  ;;  %v1319_v28 = vrot.slane %v1291_v39, %v3766_v62  ;;  %2523 = vbcast.lane.b32.xlu1 %v5585_v58, 256  ;;  %v1573_v23 = vrot.slane %v1557_v31, %v3766_v62 }
 0x10e   : > { %2316 = vbcast.lane.b32.xlu0 %v5586_v8, 256  ;;  %v1109_v20 = vsel %vm833_vm5, %v1093_v63, 0.0  ;;  %v4569_v29 = vrot.slane %v1320_v17, %v3403_v11  ;;  %v1322_v51 = vcombine.high %v1312_v55, %v1312_v55  ;;  %v1714_v13 = vadd.f32 %v4469_v53, %v1708_v60 }
 0x10f   : > { %v1126_v36 = vadd.f32 %v1125_v61, %v1124_v2  ;;  %v1110_v41 = vsel %vm833_vm5, %v1095_v52, 0.0  ;;  %v4574_v25 = vrot.slane %v1312_v55, %v3403_v11  ;;  %v1321_v39 = vcombine.high %v1305_v5, %v1305_v5  ;;  %v4578_v31 = vpop.permute.xlu1 %1272  ;;  %v4580_v63 = vpop.permute.xlu0 %1268  ;;  %v5591_v61 = vld [vmem:[#allocation67_spill] sm:$0xff]  ;;  %v5592_v55 = vld [vmem:[#allocation70_spill] sm:$0xff] }
 0x110   : > { %5587 = vst [vmem:[#allocation46_spill] sm:$0xff] %v4569_v29  ;;  %v1127_v6 = vsel %vm833_vm5, %v1098_v18, 0.0  ;;  %v1100_v42 = vmul.f32 %v1068_v56, %v5588_v4  ;;  %5589 = vst [vmem:[#allocation47_spill] sm:$0xff] %v4578_v31  ;;  %v1587_v17 = vrot.slane %v1565_v37, %v3766_v62  ;;  %v1564_v29 = vrot.slane %v1550_v34, %v3766_v62 }
 0x111   : > { %5590 = vst [vmem:[#allocation51_spill] sm:$0xff] %v4580_v63  ;;  %v1112_v53 = vsel %vm833_vm5, %v1097_v0, 0.0  ;;  %v1099_v52 = vmul.f32 %v1068_v56, %v5591_v61  ;;  %v1323_v60 = vcombine.high %v1319_v28, %v1319_v28  ;;  %2534 = vbcast.lane.b32.xlu1 %v5592_v55, 256  ;;  %v1595_v18 = vcombine.high %v1573_v23, %v1573_v23 }
 0x112   : > { %2527 = vbcast.lane.b32.xlu0 %v5585_v58, 264  ;;  %v1111_v2 = vadd.f32 %v1110_v41, %v1109_v20  ;;  %v4589_v4 = vrot.slane %v1322_v51, %v3403_v11  ;;  %v4592_v63 = vrot.slane %v1305_v5, %v3403_v11  ;;  %v1720_v37 = vadd.f32 %v4490_v57, %v1714_v13  ;;  %v5599_v13 = vld [vmem:[#allocation72_spill] sm:$0xff] }
 0x113   : > { %v1128_v34 = vadd.f32 %v1127_v6, %v1126_v36  ;;  %v4596_v0 = vrot.slane %v1319_v28, %v3403_v11  ;;  %v4599_v56 = vrot.slane %v1321_v39, %v3403_v11  ;;  %v1602_v61 = vrot.slane %v1573_v23, %v3403_v11  ;;  %v1471_v41 = vpop.permute.xlu1 %1470  ;;  %v1467_v51 = vpop.permute.xlu0 %1466  ;;  %v5598_v36 = vld [vmem:[#allocation38_spill] sm:$0xff]  ;;  %v5600_v39 = vld [vmem:[#allocation73_spill] sm:$0xff] }
 0x114   : > { %5593 = vst [vmem:[#allocation65_spill] sm:$0xff] %v4589_v4  ;;  %5594 = vst [vmem:[#allocation52_spill] sm:$0xff] %v4592_v63  ;;  %v1113_v58 = vadd.f32 %v1112_v53, %v1111_v2  ;;  %v1129_v20 = vsel %vm833_vm5, %v1100_v42, 0.0  ;;  %v1597_v31 = vcombine.high %v1587_v17, %v1587_v17  ;;  %v1580_v5 = vrot.slane %v1564_v29, %v3766_v62 }
 0x115   : > { %5595 = vst [vmem:[#allocation58_spill] sm:$0xff] %v4596_v0  ;;  %5596 = vst [vmem:[#allocation63_spill] sm:$0xff] %v4599_v56  ;;  %v1114_v63 = vsel %vm833_vm5, %v1099_v52, 0.0  ;;  %v4606_v57 = vrot.slane %v1323_v60, %v3403_v11  ;;  %2545 = vbcast.lane.b32.xlu1 %v5598_v36, 256  ;;  %v1606_v28 = vrot.slane %v1587_v17, %v3403_v11  ;;  %v5601_v56 = vld [vmem:[#allocation9_spill] sm:$0xff] }
 0x116   : > { %2538 = vbcast.lane.b32.xlu0 %v5592_v55, 264  ;;  %v1610_v23 = vrot.slane %v1595_v18, %v3403_v11  ;;  %v1102_v42 = vmul.f32 %v4523_v38, %v5599_v13  ;;  %v1101_v6 = vmul.f32 %v4523_v38, %v5600_v39  ;;  %v1566_v53 = vcombine.high %v1564_v29, %v1564_v29  ;;  %v5602_v29 = vld [vmem:[#allocation33_spill] sm:$0xff]  ;;  %v5604_v39 = vld [vmem:[#allocation10_spill] sm:$0xff] }
 0x117   : > { %5597 = vst [vmem:[#allocation64_spill] sm:$0xff] %v4606_v57  ;;  %v1721_v52 = vadd.f32 %v1720_v37, %v3683_v1  ;;  %v1130_v2 = vadd.f32 %v1129_v20, %v1128_v34  ;;  %v1640_v60 = vmul.f32 %v1602_v61, %v1471_v41  ;;  %v1639_v57 = vmul.f32 %v1602_v61, %v1467_v51  ;;  %v1482_v17 = vpop.permute.xlu1 %1481  ;;  %v1478_v4 = vpop.permute.xlu0 %1477  ;;  %v5603_v51 = vld [vmem:[#allocation41_spill] sm:$0xff] }
 0x118   : > { %v4619_v0 = vrot.slane %v4240_v35, %v5601_v56  ;;  %v1115_v55 = vadd.f32 %v1114_v63, %v1113_v58  ;;  %v1614_v18 = vrot.slane %v1597_v31, %v3403_v11  ;;  %v1618_v13 = vrot.slane %v1580_v5, %v3403_v11 }
 0x119   : > { %v1596_v49 = vcombine.high %v1580_v5, %v1580_v5  ;;  %v1642_v44 = vmul.f32 %v1606_v28, %v1482_v17  ;;  %v1641_v38 = vmul.f32 %v1606_v28, %v1478_v4  ;;  %2785 = vbcast.lane.b32.xlu1 %v5602_v29, 256  ;;  %v4627_v37 = vrot.slane %v4280_v30, %v3428_v22  ;;  %v5605_v17 = vld [vmem:[#allocation71_spill] sm:$0xff] }
 0x11a   : > { %2549 = vbcast.lane.b32.xlu0 %v5598_v36, 264  ;;  %v1131_v34 = vsel %vm833_vm5, %v1102_v42, 0.0  ;;  %v1116_v63 = vsel %vm833_vm5, %v1101_v6, 0.0  ;;  %v1594_v61 = vrot.slane %v1566_v53, %v3766_v62  ;;  %v1722_v31 = vmax.f32 %v1721_v52, 0.0 }
 0x11b   : > { %v1670_v58 = vsel %vm833_vm5, %v1640_v60, 0.0  ;;  %v1655_v20 = vsel %vm833_vm5, %v1639_v57, 0.0  ;;  %v1671_v4 = vsel %vm833_vm5, %v1642_v44, 0.0  ;;  %v1656_v41 = vsel %vm833_vm5, %v1641_v38, 0.0  ;;  %v1493_v28 = vpop.permute.xlu1 %1492  ;;  %v1489_v42 = vpop.permute.xlu0 %1488 }
 0x11c   : > { %v1104_v5 = vmul.f32 %v4540_v14, %v5603_v51  ;;  %v1672_v22 = vadd.f32 %v1671_v4, %v1670_v58  ;;  %v1657_v36 = vadd.f32 %v1656_v41, %v1655_v20  ;;  %v4640_v6 = vrot.slane %v4161_v43, %v5604_v39 }
 0x11d   : > { %v1132_v53 = vadd.f32 %v1131_v34, %v1130_v2  ;;  %v1644_v52 = vmul.f32 %v1610_v23, %v1493_v28  ;;  %v1643_v60 = vmul.f32 %v1610_v23, %v1489_v42  ;;  %2796 = vbcast.lane.b32.xlu1 %v5605_v17, 256  ;;  %v1117_v44 = vadd.f32 %v1116_v63, %v1115_v55 }
 0x11e   : > { %2789 = vbcast.lane.b32.xlu0 %v5602_v29, 264  ;;  %v1103_v57 = vmul.f32 %v4540_v14, %v4349_v50  ;;  %v4647_v38 = vrot.slane %v1596_v49, %v3403_v11  ;;  %v1819_v58 = vrot.slane %v1722_v31, %v3766_v62  ;;  %v1622_v2 = vrot.slane %v1594_v61, %v3403_v11  ;;  %v5606_v49 = vld [vmem:[#allocation36_spill] sm:$0xff] }
 0x11f   : > { %v1673_v20 = vsel %vm833_vm5, %v1644_v52, 0.0  ;;  %v1658_v43 = vsel %vm833_vm5, %v1643_v60, 0.0  ;;  %v1598_v23 = vcombine.high %v1594_v61, %v1594_v61  ;;  %v1133_v34 = vsel %vm833_vm5, %v1104_v5, 0.0  ;;  %v1504_v55 = vpop.permute.xlu1 %1503  ;;  %v1500_v63 = vpop.permute.xlu0 %1499 }
 0x120   : > { %v1674_v4 = vadd.f32 %v1673_v20, %v1672_v22  ;;  %v1659_v29 = vadd.f32 %v1658_v43, %v1657_v36  ;;  %v1812_v41 = vcombine.high %v1722_v31, %v1722_v31  ;;  %v1646_v50 = vmul.f32 %v1614_v18, %v1504_v55 }
 0x121   : > { %v1645_v14 = vmul.f32 %v1614_v18, %v1500_v63  ;;  %2556 = vbcast.lane.b32.xlu1 %v5606_v49, 256  ;;  %v4658_v51 = vrot.slane %v4240_v35, %v3436_v26  ;;  %v1118_v28 = vsel %vm833_vm5, %v1103_v57, 0.0  ;;  %v1835_v61 = vrot.slane %v1819_v58, %v3766_v62 }
 0x122   : > { %2800 = vbcast.lane.b32.xlu0 %v5605_v17, 264  ;;  %v4664_v5 = vrot.slane %v4280_v30, %v5601_v56  ;;  %v4668_v31 = vrot.slane %v4240_v35, %v5604_v39  ;;  %v1134_v18 = vadd.f32 %v1133_v34, %v1132_v53  ;;  %v1106_v22 = vmul.f32 %v4549_v27, %v4368_v47 }
 0x123   : > { %v1675_v36 = vsel %vm833_vm5, %v1646_v50, 0.0  ;;  %v1660_v42 = vsel %vm833_vm5, %v1645_v14, 0.0  ;;  %v1105_v52 = vmul.f32 %v4549_v27, %v4370_v16  ;;  %v1515_v57 = vpop.permute.xlu1 %1514  ;;  %v1511_v56 = vpop.permute.xlu0 %1510  ;;  %v1955_v20 = vmul.f32 %v4067_v40, %v3564_v19  ;;  %v5607_v14 = vld [vmem:[#allocation49_spill] sm:$0xff] }
 0x124   : > { %v1676_v60 = vadd.f32 %v1675_v36, %v1674_v4  ;;  %v1661_v17 = vadd.f32 %v1660_v42, %v1659_v29  ;;  %v1119_v35 = vadd.f32 %v1118_v28, %v1117_v44  ;;  %v1648_v43 = vmul.f32 %v1618_v13, %v1515_v57 }
 0x125   : > { %v1647_v53 = vmul.f32 %v1618_v13, %v1511_v56  ;;  %2807 = vbcast.lane.b32.xlu1 %v4403_v45, 256  ;;  %v1630_v47 = vrot.slane %v1598_v23, %v3403_v11  ;;  %v4682_v34 = vrot.slane %v1835_v61, %v3403_v11  ;;  %v1827_v16 = vcombine.high %v1819_v58, %v1819_v58 }
 0x126   : > { %2560 = vbcast.lane.b32.xlu0 %v5606_v49, 264  ;;  %v1956_v27 = vadd.f32 %v1955_v20, %v4372_v15  ;;  %v1135_v4 = vsel %vm833_vm5, %v1106_v22, 0.0  ;;  %v1677_v29 = vsel %vm833_vm5, %v1648_v43, 0.0  ;;  %v1826_v13 = vrot.slane %v1812_v41, %v3766_v62  ;;  %v5609_v20 = vld [vmem:[#allocation50_spill] sm:$0xff]  ;;  %v5611_v43 = vld [vmem:[#allocation23_spill] sm:$0xff] }
 0x127   : > { %v1662_v40 = vsel %vm833_vm5, %v1647_v53, 0.0  ;;  %v1120_v44 = vsel %vm833_vm5, %v1105_v52, 0.0  ;;  %v1678_v55 = vadd.f32 %v1677_v29, %v1676_v60  ;;  %v1526_v50 = vpop.permute.xlu1 %1525  ;;  %v1522_v23 = vpop.permute.xlu0 %1521  ;;  %v5608_v58 = vrot.slane %v5607_v14, %v3403_v11 }
 0x128   : > { %v1663_v63 = vadd.f32 %v1662_v40, %v1661_v17  ;;  %v1650_v15 = vmul.f32 %v1622_v2, %v1526_v50  ;;  %v1649_v28 = vmul.f32 %v1622_v2, %v1522_v23  ;;  %v1857_v22 = vcombine.high %v1835_v61, %v1835_v61 }
 0x129   : > { %v1961_v49 = vmul.f32 %v5608_v58, %v3586_v33  ;;  %2320 = vbcast.lane.b32.xlu1 %v5586_v8, 264  ;;  %v1136_v36 = vadd.f32 %v1135_v4, %v1134_v18  ;;  %v1849_v41 = vrot.slane %v1827_v16, %v3766_v62  ;;  %v4699_v42 = vrot.slane %v4280_v30, %v3436_v26 }
 0x12a   : > { %2811 = vbcast.lane.b32.xlu0 %v4403_v45, 264  ;;  %v1121_v60 = vadd.f32 %v1120_v44, %v1119_v35  ;;  %v1108_v17 = vmul.f32 %v4552_v3, %v4392_v9  ;;  %v1679_v57 = vsel %vm833_vm5, %v1650_v15, 0.0  ;;  %v1664_v2 = vsel %vm833_vm5, %v1649_v28, 0.0 }
 0x12b   : > { %v1962_v52 = vadd.f32 %v1961_v49, %v1956_v27  ;;  %v1680_v8 = vadd.f32 %v1679_v57, %v1678_v55  ;;  %v1665_v56 = vadd.f32 %v1664_v2, %v1663_v63  ;;  %v1537_v45 = vpop.permute.xlu1 %1536  ;;  %v1533_v61 = vpop.permute.xlu0 %1532  ;;  %v1842_v18 = vrot.slane %v1826_v13, %v3766_v62 }
 0x12c   : > { %v5610_v26 = vrot.slane %v5609_v20, %v3403_v11  ;;  %v1107_v35 = vmul.f32 %v4552_v3, %v5611_v43  ;;  %v1652_v9 = vmul.f32 %v4647_v38, %v1537_v45  ;;  %v1651_v53 = vmul.f32 %v4647_v38, %v1533_v61  ;;  %v5612_v45 = vld [vmem:[#allocation55_spill] sm:$0xff]  ;;  %v5616_v43 = vld [vmem:[#allocation21_spill] sm:$0xff] }
 0x12d   : > { %2571 = vbcast.lane.b32.xlu1 %v4426_v54, 264  ;;  %v1868_v16 = vrot.slane %v1849_v41, %v3403_v11  ;;  %v4718_v27 = vrot.slane %v1857_v22, %v3403_v11  ;;  %v1828_v4 = vcombine.high %v1826_v13, %v1826_v13  ;;  %v1137_v40 = vsel %vm833_vm5, %v1108_v17, 0.0 }
 0x12e   : > { %v1967_v30 = vmul.f32 %v5610_v26, %v3584_v32  ;;  %2567 = vbcast.lane.b32.xlu0 %v4426_v54, 256  ;;  %v1681_v44 = vsel %vm833_vm5, %v1652_v9, 0.0  ;;  %v1666_v3 = vsel %vm833_vm5, %v1651_v53, 0.0  ;;  %v1859_v55 = vcombine.high %v1849_v41, %v1849_v41  ;;  %v5615_v26 = vld [vmem:[#allocation35_spill] sm:$0xff] }
 0x12f   : > { %v1682_v63 = vadd.f32 %v1681_v44, %v1680_v8  ;;  %v1667_v38 = vadd.f32 %v1666_v3, %v1665_v56  ;;  %v1548_v50 = vpop.permute.xlu1 %1547  ;;  %v1544_v23 = vpop.permute.xlu0 %1543  ;;  %v1858_v14 = vcombine.high %v1842_v18, %v1842_v18  ;;  %v1969_v54 = vmul.f32 %v5566_v59, %v3626_v48 }
 0x130   : > { %v1968_v29 = vadd.f32 %v1967_v30, %v1962_v52  ;;  %v1122_v58 = vsel %vm833_vm5, %v1107_v35, 0.0  ;;  %v1367_v13 = vmul.f32 %v4574_v25, %v4442_v10  ;;  %v1654_v49 = vmul.f32 %v1630_v47, %v1548_v50  ;;  %v5617_v35 = vld [vmem:[#allocation46_spill] sm:$0xff]  ;;  %v5618_v50 = vld [vmem:[#allocation19_spill] sm:$0xff] }
 0x131   : > { %v1653_v15 = vmul.f32 %v1630_v47, %v1544_v23  ;;  %2822 = vbcast.lane.b32.xlu1 %v4430_v24, 264  ;;  %v1138_v28 = vadd.f32 %v1137_v40, %v1136_v36  ;;  %v4731_v22 = vrot.slane %v1842_v18, %v3403_v11  ;;  %v4734_v41 = vrot.slane %v1828_v4, %v3766_v62  ;;  %v5613_v18 = vld [vmem:[#allocation24_spill] sm:$0xff]  ;;  %v5619_v23 = vld [vmem:[#allocation53_spill] sm:$0xff] }
 0x132   : > { %2818 = vbcast.lane.b32.xlu0 %v4430_v24, 256  ;;  %v1970_v52 = vadd.f32 %v1969_v54, %v1968_v29  ;;  %v1365_v17 = vmul.f32 %v4526_v7, %v4415_v21  ;;  %v1366_v10 = vmul.f32 %v4574_v25, %v4444_v12  ;;  %v1683_v47 = vsel %vm833_vm5, %v1654_v49, 0.0  ;;  %v5614_v25 = vld [vmem:[#allocation30_spill] sm:$0xff]  ;;  %v5620_v54 = vld [vmem:[#allocation15_spill] sm:$0xff] }
 0x133   : > { %v1668_v57 = vsel %vm833_vm5, %v1653_v15, 0.0  ;;  %v4742_v2 = vadd.f32 %v1122_v58, %v1121_v60  ;;  %v4744_v24 = vadd.f32 %v1683_v47, %v1682_v63  ;;  %v1733_v8 = vpop.permute.xlu1 %1732  ;;  %v1729_v56 = vpop.permute.xlu0 %1728  ;;  %v1975_v61 = vmul.f32 %v5612_v45, %v3624_v46  ;;  %v5621_v58 = vld [vmem:[#allocation44_spill] sm:$0xff]  ;;  %v5622_v15 = vld [vmem:[#allocation27_spill] sm:$0xff] }
 0x134   : > { %v4746_v36 = vadd.f32 %v1668_v57, %v1667_v38  ;;  %v1364_v21 = vmul.f32 %v4526_v7, %v5613_v18  ;;  %v1396_v12 = vsel %vm833_vm5, %v1367_v13, 0.0  ;;  %v1876_v60 = vrot.slane %v1859_v55, %v3403_v11  ;;  %v5623_v57 = vld [vmem:[#allocation20_spill] sm:$0xff] }
 0x135   : > { %2331 = vbcast.lane.b32.xlu1 %v5614_v25, 264  ;;  %v4757_v20 = vrot.slane %v1858_v14, %v3403_v11  ;;  %v4760_v30 = vadd.f32 %v1138_v28, %v5615_v26  ;;  %v1369_v9 = vmul.f32 %v5617_v35, %v5616_v43  ;;  %v4766_v7 = vrot.slane %v4734_v41, %v3403_v11 }
 0x136   : > { %2327 = vbcast.lane.b32.xlu0 %v5614_v25, 256  ;;  %v1976_v53 = vadd.f32 %v1975_v61, %v1970_v52  ;;  %v1395_v4 = vsel %vm833_vm5, %v1365_v17, 0.0  ;;  %v1381_v29 = vsel %vm833_vm5, %v1366_v10, 0.0  ;;  %v1902_v40 = vmul.f32 %v4682_v34, %v1733_v8 }
 0x137   : > { %v1901_v44 = vmul.f32 %v4682_v34, %v1729_v56  ;;  %v1397_v3 = vadd.f32 %v1396_v12, %v1395_v4  ;;  %v1744_v55 = vpop.permute.xlu1 %1743  ;;  %v1740_v63 = vpop.permute.xlu0 %1739  ;;  %v1860_v38 = vcombine.high %v4734_v41, %v4734_v41  ;;  %v1981_v14 = vmul.f32 %v5619_v23, %v5618_v50 }
 0x138   : > { %v2215_v13 = vmul.f32 %v5621_v58, %v5620_v54  ;;  %v1380_v49 = vsel %vm833_vm5, %v1364_v21, 0.0  ;;  %v1368_v28 = vmul.f32 %v5617_v35, %v5622_v15  ;;  %v1904_v52 = vmul.f32 %v1868_v16, %v1744_v55  ;;  %v5628_v55 = vld [vmem:[#allocation62_spill] sm:$0xff] }
 0x139   : > { %v1903_v17 = vmul.f32 %v1868_v16, %v1740_v63  ;;  %2582 = vbcast.lane.b32.xlu1 %v4619_v0, 264  ;;  %v1382_v34 = vadd.f32 %v1381_v29, %v1380_v49  ;;  %v1398_v10 = vsel %vm833_vm5, %v1369_v9, 0.0  ;;  %v1982_v47 = vadd.f32 %v1981_v14, %v1976_v53  ;;  %v5626_v9 = vld [vmem:[#allocation59_spill] sm:$0xff]  ;;  %v5630_v49 = vld [vmem:[#allocation65_spill] sm:$0xff] }
 0x13a   : > { %2578 = vbcast.lane.b32.xlu0 %v4619_v0, 256  ;;  %v2216_v8 = vadd.f32 %v2215_v13, %v5623_v57  ;;  %v1932_v56 = vsel %vm833_vm5, %v1902_v40, 0.0  ;;  %v1917_v61 = vsel %vm833_vm5, %v1901_v44, 0.0  ;;  %v1933_v18 = vsel %vm833_vm5, %v1904_v52, 0.0  ;;  %v5624_v0 = vld [vmem:[#allocation57_spill] sm:$0xff]  ;;  %v5629_v13 = vld [vmem:[#allocation28_spill] sm:$0xff] }
 0x13b   : > { %v1918_v21 = vsel %vm833_vm5, %v1903_v17, 0.0  ;;  %v1934_v12 = vadd.f32 %v1933_v18, %v1932_v56  ;;  %v1755_v25 = vpop.permute.xlu1 %1754  ;;  %v1751_v26 = vpop.permute.xlu0 %1750  ;;  %v5625_v43 = vrot.slane %v5624_v0, %v3403_v11  ;;  %v5627_v53 = vrot.slane %v5626_v9, %v3403_v11  ;;  %v5631_v17 = vld [vmem:[#allocation60_spill] sm:$0xff] }
 0x13c   : > { %v1919_v16 = vadd.f32 %v1918_v21, %v1917_v61  ;;  %v1383_v29 = vsel %vm833_vm5, %v1368_v28, 0.0  ;;  %v1906_v40 = vmul.f32 %v4718_v27, %v1755_v25  ;;  %v1905_v44 = vmul.f32 %v4718_v27, %v1751_v26  ;;  %v5633_v27 = vld [vmem:[#allocation26_spill] sm:$0xff]  ;;  %v5635_v21 = vld [vmem:[#allocation52_spill] sm:$0xff] }
 0x13d   : > { %v2221_v35 = vmul.f32 %v5625_v43, %v3564_v19  ;;  %v2227_v4 = vmul.f32 %v5627_v53, %v3586_v33  ;;  %2833 = vbcast.lane.b32.xlu1 %v4627_v37, 264  ;;  %v4804_v63 = vmul.f32 %v5628_v55, %v3584_v32  ;;  %v1399_v14 = vadd.f32 %v1398_v10, %v1397_v3  ;;  %v5634_v10 = vld [vmem:[#allocation31_spill] sm:$0xff] }
 0x13e   : > { %2829 = vbcast.lane.b32.xlu0 %v4627_v37, 256  ;;  %v1371_v15 = vmul.f32 %v5630_v49, %v5629_v13  ;;  %v5632_v28 = vrot.slane %v5631_v17, %v3403_v11  ;;  %v1370_v56 = vmul.f32 %v5630_v49, %v5633_v27  ;;  %v1935_v37 = vsel %vm833_vm5, %v1906_v40, 0.0 }
 0x13f   : > { %v2222_v52 = vadd.f32 %v2221_v35, %v2216_v8  ;;  %v1920_v61 = vsel %vm833_vm5, %v1905_v44, 0.0  ;;  %v1983_v18 = vadd.f32 %v1982_v47, %v3683_v1  ;;  %v1384_v3 = vadd.f32 %v1383_v29, %v1382_v34  ;;  %v1766_v0 = vpop.permute.xlu1 %1765  ;;  %v1762_v43 = vpop.permute.xlu0 %1761  ;;  %v5636_v35 = vld [vmem:[#allocation34_spill] sm:$0xff]  ;;  %v5637_v47 = vld [vmem:[#allocation40_spill] sm:$0xff] }
 0x140   : > { %v4812_v57 = vmul.f32 %v5632_v28, %v3626_v48  ;;  %v1373_v25 = vmul.f32 %v5635_v21, %v5634_v10  ;;  %v1936_v8 = vadd.f32 %v1935_v37, %v1934_v12  ;;  %v1921_v26 = vadd.f32 %v1920_v61, %v1919_v16  ;;  %v5638_v34 = vld [vmem:[#allocation58_spill] sm:$0xff]  ;;  %v5641_v37 = vld [vmem:[#allocation63_spill] sm:$0xff] }
 0x141   : > { %v1372_v9 = vmul.f32 %v5635_v21, %v5636_v35  ;;  %v1908_v53 = vmul.f32 %v1876_v60, %v1766_v0  ;;  %v1907_v13 = vmul.f32 %v1876_v60, %v1762_v43  ;;  %2342 = vbcast.lane.b32.xlu1 %v4640_v6, 264  ;;  %v1400_v40 = vsel %vm833_vm5, %v1371_v15, 0.0  ;;  %v5639_v44 = vld [vmem:[#allocation42_spill] sm:$0xff] }
 0x142   : > { %2338 = vbcast.lane.b32.xlu0 %v4640_v6, 256  ;;  %v1375_v29 = vmul.f32 %v5638_v34, %v5637_v47  ;;  %v1374_v12 = vmul.f32 %v5638_v34, %v5639_v44  ;;  %v2228_v16 = vadd.f32 %v2227_v4, %v2222_v52  ;;  %v1385_v49 = vsel %vm833_vm5, %v1370_v56, 0.0  ;;  %v5640_v6 = vld [vmem:[#allocation43_spill] sm:$0xff]  ;;  %v5642_v4 = vld [vmem:[#allocation48_spill] sm:$0xff] }
 0x143   : > { %v1937_v17 = vsel %vm833_vm5, %v1908_v53, 0.0  ;;  %v1922_v28 = vsel %vm833_vm5, %v1907_v13, 0.0  ;;  %v4833_v60 = vmax.f32 %v1983_v18, 0.0  ;;  %v1402_v27 = vsel %vm833_vm5, %v1373_v25, 0.0  ;;  %v1777_v21 = vpop.permute.xlu1 %1776  ;;  %v1773_v0 = vpop.permute.xlu0 %1772  ;;  %v5643_v53 = vld [vmem:[#allocation47_spill] sm:$0xff]  ;;  %v5644_v13 = vld [vmem:[#allocation64_spill] sm:$0xff] }
 0x144   : > { %v1377_v15 = vmul.f32 %v5641_v37, %v5640_v6  ;;  %v1938_v61 = vadd.f32 %v1937_v17, %v1936_v8  ;;  %v1923_v10 = vadd.f32 %v1922_v28, %v1921_v26  ;;  %v1387_v43 = vsel %vm833_vm5, %v1372_v9, 0.0  ;;  %v5645_v47 = vld [vmem:[#allocation51_spill] sm:$0xff] }
 0x145   : > { %v1376_v52 = vmul.f32 %v5641_v37, %v5642_v4  ;;  %v1910_v56 = vmul.f32 %v4731_v22, %v1777_v21  ;;  %v1909_v35 = vmul.f32 %v4731_v22, %v1773_v0  ;;  %2593 = vbcast.lane.b32.xlu1 %v4658_v51, 264  ;;  %v1401_v18 = vadd.f32 %v1400_v40, %v1399_v14 }
 0x146   : > { %2589 = vbcast.lane.b32.xlu0 %v4658_v51, 256  ;;  %v1386_v25 = vadd.f32 %v1385_v49, %v1384_v3  ;;  %v1404_v8 = vsel %vm833_vm5, %v1375_v29, 0.0  ;;  %v1389_v26 = vsel %vm833_vm5, %v1374_v12, 0.0  ;;  %v1379_v9 = vmul.f32 %v5644_v13, %v5643_v53 }
 0x147   : > { %v1378_v34 = vmul.f32 %v5644_v13, %v5645_v47  ;;  %v1939_v44 = vsel %vm833_vm5, %v1910_v56, 0.0  ;;  %v1924_v22 = vsel %vm833_vm5, %v1909_v35, 0.0  ;;  %v1403_v17 = vadd.f32 %v1402_v27, %v1401_v18  ;;  %v1788_v14 = vpop.permute.xlu1 %1787  ;;  %v1784_v3 = vpop.permute.xlu0 %1783  ;;  %v5646_v18 = vld [vmem:[#allocation39_spill] sm:$0xff] }
 0x148   : > { %v1388_v28 = vadd.f32 %v1387_v43, %v1386_v25  ;;  %v1940_v6 = vadd.f32 %v1939_v44, %v1938_v61  ;;  %v1925_v51 = vadd.f32 %v1924_v22, %v1923_v10  ;;  %v1406_v40 = vsel %vm833_vm5, %v1377_v15, 0.0 }
 0x149   : > { %v1391_v29 = vsel %vm833_vm5, %v1376_v52, 0.0  ;;  %v1912_v12 = vmul.f32 %v4766_v7, %v1788_v14  ;;  %v1911_v49 = vmul.f32 %v4766_v7, %v1784_v3  ;;  %2844 = vbcast.lane.b32.xlu1 %v4664_v5, 264  ;;  %v1405_v37 = vadd.f32 %v1404_v8, %v1403_v17 }
 0x14a   : > { %2840 = vbcast.lane.b32.xlu0 %v4664_v5, 256  ;;  %v1390_v21 = vadd.f32 %v1389_v26, %v1388_v28  ;;  %v2081_v27 = vrot.slane %v4833_v60, %v3766_v62  ;;  %v2234_v61 = vadd.f32 %v4804_v63, %v2228_v16  ;;  %v1408_v10 = vsel %vm833_vm5, %v1379_v9, 0.0  ;;  %v5647_v28 = vld [vmem:[#allocation61_spill] sm:$0xff] }
 0x14b   : > { %v1393_v15 = vsel %vm833_vm5, %v1378_v34, 0.0  ;;  %v1941_v0 = vsel %vm833_vm5, %v1912_v12, 0.0  ;;  %v1926_v43 = vsel %vm833_vm5, %v1911_v49, 0.0  ;;  %v1407_v7 = vadd.f32 %v1406_v40, %v1405_v37  ;;  %v1799_v5 = vpop.permute.xlu1 %1798  ;;  %v1795_v35 = vpop.permute.xlu0 %1794  ;;  %v5649_v49 = vld [vmem:[#allocation66_spill] sm:$0xff] }
 0x14c   : > { %v1392_v4 = vadd.f32 %v1391_v29, %v1390_v21  ;;  %v1942_v52 = vadd.f32 %v1941_v0, %v1940_v6  ;;  %v1927_v56 = vadd.f32 %v1926_v43, %v1925_v51  ;;  %v1139_v25 = vadd.f32 %v4742_v2, %v5646_v18 }
 0x14d   : > { %v1914_v8 = vmul.f32 %v4757_v20, %v1799_v5  ;;  %v1913_v63 = vmul.f32 %v4757_v20, %v1795_v35  ;;  %2604 = vbcast.lane.b32.xlu1 %v4668_v31, 264  ;;  %v1409_v16 = vadd.f32 %v1408_v10, %v1407_v7  ;;  %v2089_v53 = vcombine.high %v2081_v27, %v2081_v27  ;;  %v3200_v20 = vld [vmem:[%s5337_s4 + $0x40] sm:$0xff] }
 0x14e   : > { %2600 = vbcast.lane.b32.xlu0 %v4668_v31, 256  ;;  %v1394_v26 = vadd.f32 %v1393_v15, %v1392_v4  ;;  %v2240_v13 = vadd.f32 %v4812_v57, %v2234_v61  ;;  %v1892_v2 = vrot.slane %v1860_v38, %v3403_v11  ;;  %v2860_v31 = vrot.slane %v3200_v20, %v5604_v39 }
 0x14f   : > { %v1943_v9 = vsel %vm833_vm5, %v1914_v8, 0.0  ;;  %v1928_v47 = vsel %vm833_vm5, %v1913_v63, 0.0  ;;  %v1810_v22 = vpop.permute.xlu1 %1809  ;;  %v1806_v17 = vpop.permute.xlu0 %1805  ;;  %v2074_v57 = vcombine.high %v4833_v60, %v4833_v60  ;;  %v5648_v6 = vrot.slane %v5647_v28, %v3403_v11  ;;  %v5650_v28 = vld [vmem:[#allocation8_spill] sm:$0xff] }
 0x150   : > { %v1944_v34 = vadd.f32 %v1943_v9, %v1942_v52  ;;  %v1929_v44 = vadd.f32 %v1928_v47, %v1927_v56  ;;  %v1916_v41 = vmul.f32 %v1892_v2, %v1810_v22  ;;  %v1915_v38 = vmul.f32 %v1892_v2, %v1806_v17 }
 0x151   : > { %v2245_v51 = vmul.f32 %v5648_v6, %v3624_v46  ;;  %2855 = vbcast.lane.b32.xlu1 %v4699_v42, 264  ;;  %v2097_v39 = vrot.slane %v2081_v27, %v3766_v62  ;;  %v1411_v14 = vadd.f32 %v1409_v16, %v4760_v30  ;;  %v1410_v3 = vadd.f32 %v1394_v26, %v1139_v25 }
 0x152   : > { %2851 = vbcast.lane.b32.xlu0 %v4699_v42, 256  ;;  %v2111_v40 = vrot.slane %v2089_v53, %v3766_v62  ;;  %v1945_v60 = vsel %vm833_vm5, %v1916_v41, 0.0  ;;  %v1930_v12 = vsel %vm833_vm5, %v1915_v38, 0.0  ;;  %v2251_v37 = vmul.f32 %v5649_v49, %v5618_v50 }
 0x153   : > { %v2246_v29 = vadd.f32 %v2245_v51, %v2240_v13  ;;  %v1686_v21 = vadd.f32 %v4744_v24, %v1411_v14  ;;  %v1685_v61 = vadd.f32 %v4746_v36, %v1410_v3  ;;  %v1946_v42 = vadd.f32 %v1945_v60, %v1944_v34  ;;  %v1995_v27 = vpop.permute.xlu1 %1994  ;;  %v1991_v15 = vpop.permute.xlu0 %1990  ;;  %v527_v24 = vld [vmem:[%s5338_s5 + $0x8] sm:$0xff]  ;;  %v526_v36 = vld [vmem:[%s5338_s5] sm:$0xff] }
 0x154   : > { %v1931_v10 = vadd.f32 %v1930_v12, %v1929_v44  ;;  %v2126_v30 = vrot.slane %v2097_v39, %v3403_v11  ;;  %v2119_v0 = vcombine.high %v2097_v39, %v2097_v39  ;;  %v2088_v43 = vrot.slane %v2074_v57, %v3766_v62 }
 0x155   : > { %2866 = vbcast.lane.b32.xlu1 %v2860_v31, 264  ;;  %v4902_v7 = vadd.f32 %v1946_v42, %v1686_v21  ;;  %v2121_v52 = vcombine.high %v2111_v40, %v2111_v40  ;;  %v2252_v56 = vadd.f32 %v2251_v37, %v2246_v29  ;;  %v2130_v18 = vrot.slane %v2111_v40, %v3403_v11  ;;  %v5652_v40 = vld [vmem:[#allocation11_spill] sm:$0xff]  ;;  %v5653_v29 = vld [vmem:[#allocation12_spill] sm:$0xff] }
 0x156   : > { %2862 = vbcast.lane.b32.xlu0 %v2860_v31, 256  ;;  %v4904_v4 = vadd.f32 %v1931_v10, %v1685_v61  ;;  %v2164_v5 = vmul.f32 %v2126_v30, %v1995_v27  ;;  %v2163_v35 = vmul.f32 %v2126_v30, %v1991_v15  ;;  %v4914_v26 = vrot.slane %v2088_v43, %v3766_v62 }
 0x157   : > { %v2006_v25 = vpop.permute.xlu1 %2005  ;;  %v2002_v8 = vpop.permute.xlu0 %2001  ;;  %v2134_v53 = vrot.slane %v2119_v0, %v3403_v11  ;;  %v2138_v13 = vrot.slane %v2121_v52, %v3403_v11  ;;  %v2090_v9 = vcombine.high %v2088_v43, %v2088_v43  ;;  %v4919_v47 = vadd.f32 %v2252_v56, %v3683_v1  ;;  %v5660_v43 = vld [vmem:[#allocation13_spill] sm:$0xff] }
 0x158   : > { %v2166_v63 = vmul.f32 %v2130_v18, %v2006_v25  ;;  %v2165_v16 = vmul.f32 %v2130_v18, %v2002_v8  ;;  %v2194_v2 = vsel %vm833_vm5, %v2164_v5, 0.0  ;;  %v2179_v20 = vsel %vm833_vm5, %v2163_v35, 0.0 }
 0x159   : > { %3013 = vperm.xlu1 %3199, %v527_v24   ;;  %v260_v6 = vadd.s32 8, %v5650_v28  ;;  %v261_v51 = vadd.s32 16, %v5650_v28  ;;  %v262_v39 = vadd.s32 24, %v5650_v28  ;;  %v5651_v14 = vlaneseq  ;;  %v5661_v24 = vld [vmem:[#allocation14_spill] sm:$0xff] }
 0x15a   : > { %3008 = vperm.xlu0 %3198, %v526_v36   ;;  %v2195_v31 = vsel %vm833_vm5, %v2166_v63, 0.0  ;;  %v2180_v34 = vsel %vm833_vm5, %v2165_v16, 0.0  ;;  %vm266_vm6 = vcmp.ge.s32.totalorder %v5650_v28, %v5652_v40  ;;  %vm271_vm9 = vcmp.le.s32.totalorder %v5650_v28, %v5653_v29 }
 0x15b   : > { %v2196_v44 = vadd.f32 %v2195_v31, %v2194_v2  ;;  %v2181_v22 = vadd.f32 %v2180_v34, %v2179_v20  ;;  %v2017_v17 = vpop.permute.xlu1 %2016  ;;  %v2013_v57 = vpop.permute.xlu0 %2012  ;;  %v264_v3 = vand.u32 127, %v5651_v14  ;;  %vm267_vm7 = vcmp.ge.s32.totalorder %v260_v6, %v5652_v40  ;;  %vm4944_vm12 = vmand %vm266_vm6, %vm271_vm9 }
 0x15c   : > { %v2168_v41 = vmul.f32 %v2134_v53, %v2017_v17  ;;  %v2167_v38 = vmul.f32 %v2134_v53, %v2013_v57  ;;  %vm268_vm8 = vcmp.ge.s32.totalorder %v261_v51, %v5652_v40  ;;  %vm269_vm10 = vcmp.ge.s32.totalorder %v262_v39, %v5652_v40  ;;  %v5667_v17 = vld [vmem:[#allocation37_spill] sm:$0xff] }
 0x15d   : > { %vm272_vm11 = vcmp.le.s32.totalorder %v260_v6, %v5653_v29  ;;  %vm273_vm13 = vcmp.le.s32.totalorder %v261_v51, %v5653_v29  ;;  %vm274_vm14 = vcmp.le.s32.totalorder %v262_v39, %v5653_v29  ;;  %vm280_vm15 = vcmp.ge.s32.totalorder %v264_v3, %v5660_v43 }
 0x15e   : > { %v2197_v60 = vsel %vm833_vm5, %v2168_v41, 0.0  ;;  %v2182_v12 = vsel %vm833_vm5, %v2167_v38, 0.0  ;;  %vm4950_vm0 = vmand %vm267_vm7, %vm272_vm11  ;;  %vm282_vm1 = vcmp.le.s32.totalorder %v264_v3, %v5661_v24  ;;  %v2142_v36 = vrot.slane %v4914_v26, %v3403_v11 }
 0x15f   : > { %v2198_v21 = vadd.f32 %v2197_v60, %v2196_v44  ;;  %v2183_v61 = vadd.f32 %v2182_v12, %v2181_v22  ;;  %v2028_v42 = vpop.permute.xlu1 %2027  ;;  %v2024_v10 = vpop.permute.xlu0 %2023  ;;  %vm4956_vm2 = vmand %vm268_vm8, %vm273_vm13  ;;  %v4965_v52 = vrot.slane %v2090_v9, %v3766_v62  ;;  %v2254_v18 = vmax.f32 %v4919_v47, 0.0 }
 0x160   : > { %v2170_v15 = vmul.f32 %v2138_v13, %v2028_v42  ;;  %v2169_v30 = vmul.f32 %v2138_v13, %v2024_v10  ;;  %vm4969_vm3 = vmand %vm269_vm10, %vm274_vm14  ;;  %vm306_vm6 = vcmask 261120   ;;  %v5666_v47 = vmov 0.0  }
 0x161   : > { %vm4976_vm4 = vmand %vm280_vm15, %vm282_vm1  ;;  %v2146_v20 = vrot.slane %v4965_v52, %v3403_v11  ;;  %v2120_v31 = vcombine.high %v4914_v26, %v4914_v26  ;;  %v5009_v26 = vmul.f32 %v2254_v18, %v5667_v17  ;;  %v2122_v3 = vcombine.high %v4965_v52, %v4965_v52 }
 0x162   : > { %v2199_v5 = vsel %vm833_vm5, %v2170_v15, 0.0  ;;  %v2184_v35 = vsel %vm833_vm5, %v2169_v30, 0.0  ;;  %vm294_vm7 = vmand %vm4944_vm12, %vm4976_vm4 }
 0x163   : > { %v2200_v8 = vadd.f32 %v2199_v5, %v2198_v21  ;;  %v2185_v63 = vadd.f32 %v2184_v35, %v2183_v61  ;;  %v2039_v16 = vpop.permute.xlu1 %2038  ;;  %v2035_v53 = vpop.permute.xlu0 %2034  ;;  %vm295_vm8 = vmand %vm4950_vm0, %vm4976_vm4  ;;  %v3126_v2 = vsel %vm294_vm7, 1.0, %v5666_v47 }
 0x164   : > { %v2172_v13 = vmul.f32 %v2142_v36, %v2039_v16  ;;  %v2171_v9 = vmul.f32 %v2142_v36, %v2035_v53  ;;  %vm296_vm9 = vmand %vm4956_vm2, %vm4976_vm4  ;;  %v3127_v34 = vsel %vm295_vm8, 1.0, %v5666_v47  ;;  %307 = vst.msk [vmem:[%s237_s13] sm:$0xff] %vm306_vm6, %v3126_v2 }
 0x165   : > { %vm297_vm10 = vmand %vm4969_vm3, %vm4976_vm4  ;;  %v3128_v57 = vsel %vm296_vm9, 1.0, %v5666_v47  ;;  %308 = vst.msk [vmem:[%s237_s13 + $0x8] sm:$0xff] %vm306_vm6, %v3127_v34 }
 0x166   : > { %v2201_v44 = vsel %vm833_vm5, %v2172_v13, 0.0  ;;  %v2186_v22 = vsel %vm833_vm5, %v2171_v9, 0.0  ;;  %v3129_v38 = vsel %vm297_vm10, 1.0, %v5666_v47  ;;  %309 = vst.msk [vmem:[%s237_s13 + $0x10] sm:$0xff] %vm306_vm6, %v3128_v57 }
 0x167   : > { %v2202_v28 = vadd.f32 %v2201_v44, %v2200_v8  ;;  %v2187_v6 = vadd.f32 %v2186_v22, %v2185_v63  ;;  %v2050_v51 = vpop.permute.xlu1 %2049  ;;  %v2046_v41 = vpop.permute.xlu0 %2045  ;;  %310 = vst.msk [vmem:[%s237_s13 + $0x18] sm:$0xff] %vm306_vm6, %v3129_v38 }
 0x168   : > { %v2174_v39 = vmul.f32 %v2146_v20, %v2050_v51  ;;  %v2173_v14 = vmul.f32 %v2146_v20, %v2046_v41 }
 0x169   : > { %3226 = shalt.err (!%p3223_p7)
}
 0x16a   : > { %s3227_s26 = scalar_lea.hbm %s5004_s20, 512  ;;  %s3231_s10 = scalar_lea.hbm %s5339_s6, 1024 }
 0x16b   : > { %p3228_p8 = scmp.ne.s32.totalorder %s5004_s20, %s3227_s26  ;;  %p3232_p13 = scmp.lt.s32.totalorder %s5004_s20, %s5339_s6 }
 0x16c   : > { %p3233_p0 = scmp.lt.s32.totalorder %s3231_s10, %s3227_s26 }
 0x16d   : > { %p3229_p9 = pnand %p3228_p8, %p3365_p10 }
 0x16e   : > { %p3234_p1 = por %p3233_p0, %p3232_p13 }
 0x16f   : > { %p3230_p12 = pneg %p3229_p9 }
 0x171   : > { %p3235_p2 = pnand %p3234_p1, %p3230_p12 }
 0x173   : > { %3238 = shalt.err (!%p3235_p2)
}
 0x174   : > { %s3282_s18 = smov 128   ;;  %s3283_s19 = smov 8   ;;  %v2203_v40 = vsel %vm833_vm5, %v2174_v39, 0.0  ;;  %v2188_v29 = vsel %vm833_vm5, %v2173_v14, 0.0  ;;  %v2150_v60 = vrot.slane %v2120_v31, %v3403_v11  ;;  %v2352_v12 = vrot.slane %v5009_v26, %v3766_v62  ;;  %v2061_v61 = vpop.permute.xlu1 %2060  ;;  %v2057_v42 = vpop.permute.xlu0 %2056  ;;  %v5668_v2 = vld [vmem:[#allocation17_spill] sm:$0xff]  ;;  %v5670_v51 = vld [vmem:[#allocation16_spill] sm:$0xff] }
 0x175   : > { %3153 = dma.vmem_to_hbm [thread:$0]  (%p3365_p10), %s5017_s17, 512, %s5004_s20, %s5026_s21, %s3282_s18, %s3282_s18, %s3283_s19   ;;  %v2204_v37 = vadd.f32 %v2203_v40, %v2202_v28  ;;  %v2189_v21 = vadd.f32 %v2188_v29, %v2187_v6  ;;  %v2154_v15 = vrot.slane %v2122_v3, %v3403_v11  ;;  %v5669_v20 = vld [vmem:[#allocation45_spill] sm:$0xff]  ;;  %v2345_v28 = vcombine.high %v5009_v26, %v5009_v26 }
 0x176   : > { %v2176_v10 = vmul.f32 %v2150_v60, %v2061_v61  ;;  %v2175_v27 = vmul.f32 %v2150_v60, %v2057_v42  ;;  %v2368_v43 = vrot.slane %v2352_v12, %v3766_v62  ;;  %v2360_v24 = vcombine.high %v2352_v12, %v2352_v12  ;;  %p245_p10 = scmp.lt.s32.totalorder %s3348_s9, 1 }
 0x177   : > { %v2484_v31 = vmul.f32 %v5669_v20, %v5668_v2  ;;  %v2482_v41 = vmul.f32 %v5621_v58, %v5670_v51 }
 0x178   : > { %v2205_v30 = vsel %vm833_vm5, %v2176_v10, 0.0  ;;  %v2190_v0 = vsel %vm833_vm5, %v2175_v27, 0.0  ;;  %v2072_v56 = vpop.permute.xlu1 %2071  ;;  %v2068_v5 = vpop.permute.xlu0 %2067  ;;  %v2397_v63 = vrot.slane %v2368_v43, %v3403_v11  ;;  %v2382_v16 = vrot.slane %v2360_v24, %v3766_v62  ;;  %v5671_v10 = vld [vmem:[#allocation22_spill] sm:$0xff]  ;;  %s5682_s9 = smov (!%p245_p10, %s3348_s9), 1 }
 0x179   : > { %v2206_v36 = vadd.f32 %v2205_v30, %v2204_v37  ;;  %v2191_v52 = vadd.f32 %v2190_v0, %v2189_v21  ;;  %v2178_v35 = vmul.f32 %v2154_v15, %v2072_v56  ;;  %v2177_v18 = vmul.f32 %v2154_v15, %v2068_v5  ;;  %v5672_v27 = vld [vmem:[#allocation54_spill] sm:$0xff]  ;;  %s3151_s15 = sshll.u32 %s5682_s9, 4 }
 0x17a   : > { %v2390_v57 = vcombine.high %v2368_v43, %v2368_v43  ;;  %v2401_v6 = vrot.slane %v2382_v16, %v3403_v11  ;;  %v2485_v40 = vadd.f32 %v2484_v31, %v2482_v41  ;;  %v2392_v29 = vcombine.high %v2382_v16, %v2382_v16  ;;  %v5673_v56 = vld [vmem:[#allocation18_spill] sm:$0xff]  ;;  %s249_s21 = scalar_lea.vmem %s5340_s7, %s3151_s15 }
 0x17b   : > { %v2207_v25 = vsel %vm833_vm5, %v2178_v35, 0.0  ;;  %v2192_v8 = vsel %vm833_vm5, %v2177_v18, 0.0  ;;  %v489_v15 = vmul.f32 %v5672_v27, %v5671_v10  ;;  %v2486_v30 = vmul.f32 %v5566_v59, %v5620_v54 }
 0x17c   : > { %v2208_v53 = vadd.f32 %v2207_v25, %v2206_v36  ;;  %v2193_v13 = vadd.f32 %v2192_v8, %v2191_v52  ;;  %v2266_v9 = vpop.permute.xlu1 %2265  ;;  %v2262_v47 = vpop.permute.xlu0 %2261  ;;  %v2746_v0 = vmul.f32 %v5612_v45, %v5668_v2  ;;  %v2744_v36 = vmul.f32 %v5566_v59, %v5670_v51 }
 0x17d   : > { %v2435_v34 = vmul.f32 %v2397_v63, %v2266_v9  ;;  %v2434_v44 = vmul.f32 %v2397_v63, %v2262_v47  ;;  %v490_v5 = vmul.f32 %v5672_v27, %v5673_v56  ;;  %v2487_v35 = vadd.f32 %v2486_v30, %v2485_v40  ;;  %v5676_v30 = vld [vmem:[#allocation56_spill] sm:$0xff] }
 0x17e   : > { %v5065_v22 = vadd.f32 %v2208_v53, %v4902_v7  ;;  %v5068_v17 = vadd.f32 %v2193_v13, %v4904_v4  ;;  %v2405_v7 = vrot.slane %v2390_v57, %v3403_v11  ;;  %v2359_v4 = vrot.slane %v2345_v28, %v3766_v62  ;;  %v5674_v57 = vld [vmem:[#allocation25_spill] sm:$0xff] }
 0x17f   : > { %v2465_v60 = vsel %vm833_vm5, %v2435_v34, 0.0  ;;  %v2450_v12 = vsel %vm833_vm5, %v2434_v44, 0.0  ;;  %v2409_v8 = vrot.slane %v2392_v29, %v3403_v11  ;;  %v2488_v59 = vmul.f32 %v5628_v55, %v3564_v19 }
 0x180   : > { %v2277_v38 = vpop.permute.xlu1 %2276  ;;  %v2273_v39 = vpop.permute.xlu0 %2272  ;;  %v5090_v52 = vrot.slane %v2359_v4, %v3766_v62  ;;  %v2361_v63 = vcombine.high %v2359_v4, %v2359_v4  ;;  %v2493_v9 = vrot.slane %v489_v15, %v3403_v11  ;;  %v2747_v47 = vadd.f32 %v2746_v0, %v2744_v36  ;;  %v5675_v4 = vld [vmem:[#allocation29_spill] sm:$0xff] }
 0x181   : > { %v2437_v14 = vmul.f32 %v2401_v6, %v2277_v38  ;;  %v2436_v3 = vmul.f32 %v2401_v6, %v2273_v39  ;;  %v2748_v31 = vmul.f32 %v5619_v23, %v5620_v54  ;;  %v2489_v34 = vadd.f32 %v2488_v59, %v2487_v35 }
 0x182   : > { %v2499_v44 = vrot.slane %v490_v5, %v3403_v11  ;;  %v491_v28 = vmul.f32 %v5674_v57, %v5672_v27  ;;  %v2413_v55 = vrot.slane %v5090_v52, %v3403_v11  ;;  %v5110_v41 = vrot.slane %v2361_v63, %v3766_v62 }
 0x183   : > { %v2466_v26 = vsel %vm833_vm5, %v2437_v14, 0.0  ;;  %v2451_v37 = vsel %vm833_vm5, %v2436_v3, 0.0  ;;  %v2494_v54 = vmul.f32 %v2493_v9, %v3586_v33  ;;  %v2749_v3 = vadd.f32 %v2748_v31, %v2747_v47 }
 0x184   : > { %v2467_v21 = vadd.f32 %v2466_v26, %v2465_v60  ;;  %v2452_v58 = vadd.f32 %v2451_v37, %v2450_v12  ;;  %v2288_v61 = vpop.permute.xlu1 %2287  ;;  %v2284_v42 = vpop.permute.xlu0 %2283  ;;  %v492_v60 = vmul.f32 %v5675_v4, %v5672_v27  ;;  %v2755_v12 = vrot.slane %v491_v28, %v3403_v11 }
 0x185   : > { %v2439_v43 = vmul.f32 %v2405_v7, %v2288_v61  ;;  %v2438_v24 = vmul.f32 %v2405_v7, %v2284_v42  ;;  %v2495_v29 = vadd.f32 %v2494_v54, %v2489_v34  ;;  %v496_v0 = vmul.f32 %v5676_v30, %v5671_v10 }
 0x186   : > { %v2500_v27 = vmul.f32 %v2499_v44, %v3584_v32  ;;  %v497_v35 = vmul.f32 %v5676_v30, %v5673_v56  ;;  %v499_v31 = vmul.f32 %v5675_v4, %v5676_v30 }
 0x187   : > { %v2468_v18 = vsel %vm833_vm5, %v2439_v43, 0.0  ;;  %v2453_v25 = vsel %vm833_vm5, %v2438_v24, 0.0  ;;  %v2507_v10 = vrot.slane %v496_v0, %v3403_v11 }
 0x188   : > { %v2469_v45 = vadd.f32 %v2468_v18, %v2467_v21  ;;  %v2454_v16 = vadd.f32 %v2453_v25, %v2452_v58  ;;  %v2299_v53 = vpop.permute.xlu1 %2298  ;;  %v2295_v13 = vpop.permute.xlu0 %2294  ;;  %v2417_v21 = vrot.slane %v5110_v41, %v3403_v11  ;;  %v2750_v58 = vmul.f32 %v2499_v44, %v3564_v19 }
 0x189   : > { %v2441_v2 = vmul.f32 %v2409_v8, %v2299_v53  ;;  %v2440_v20 = vmul.f32 %v2409_v8, %v2295_v13  ;;  %v2501_v5 = vadd.f32 %v2500_v27, %v2495_v29  ;;  %v2756_v19 = vmul.f32 %v2755_v12, %v3586_v33 }
 0x18a   : > { %v2751_v36 = vadd.f32 %v2750_v58, %v2749_v3  ;;  %v2761_v25 = vrot.slane %v492_v60, %v3403_v11  ;;  %v2502_v8 = vmul.f32 %v5649_v49, %v3626_v48  ;;  %v2513_v56 = vrot.slane %v497_v35, %v3403_v11 }
 0x18b   : > { %v2470_v6 = vsel %vm833_vm5, %v2441_v2, 0.0  ;;  %v2455_v51 = vsel %vm833_vm5, %v2440_v20, 0.0  ;;  %v498_v33 = vmul.f32 %v5676_v30, %v5674_v57  ;;  %v2508_v9 = vmul.f32 %v2507_v10, %v3624_v46 }
 0x18c   : > { %v2471_v38 = vadd.f32 %v2470_v6, %v2469_v45  ;;  %v2456_v39 = vadd.f32 %v2455_v51, %v2454_v16  ;;  %v2310_v14 = vpop.permute.xlu1 %2309  ;;  %v2306_v23 = vpop.permute.xlu0 %2305  ;;  %v2757_v53 = vadd.f32 %v2756_v19, %v2751_v36  ;;  %v2503_v13 = vadd.f32 %v2502_v8, %v2501_v5 }
 0x18d   : > { %v2443_v40 = vmul.f32 %v2413_v55, %v2310_v14  ;;  %v2442_v7 = vmul.f32 %v2413_v55, %v2306_v23  ;;  %v2762_v59 = vmul.f32 %v2761_v25, %v3584_v32  ;;  %v2764_v34 = vmul.f32 %v2513_v56, %v3626_v48 }
 0x18e   : > { %v2509_v20 = vadd.f32 %v2508_v9, %v2503_v13  ;;  %v2769_v44 = vrot.slane %v498_v33, %v3403_v11  ;;  %v2514_v28 = vmul.f32 %v2513_v56, %v5618_v50 }
 0x18f   : > { %v2472_v26 = vsel %vm833_vm5, %v2443_v40, 0.0  ;;  %v2457_v37 = vsel %vm833_vm5, %v2442_v7, 0.0  ;;  %v2763_v2 = vadd.f32 %v2762_v59, %v2757_v53  ;;  %v2393_v59 = vcombine.high %v5110_v41, %v5110_v41 }
 0x190   : > { %v2473_v61 = vadd.f32 %v2472_v26, %v2471_v38  ;;  %v2458_v42 = vadd.f32 %v2457_v37, %v2456_v39  ;;  %v5121_v15 = vpop.permute.xlu1 %2523  ;;  %v2317_v43 = vpop.permute.xlu0 %2316  ;;  %v2515_v51 = vadd.f32 %v2514_v28, %v2509_v20  ;;  %v2770_v55 = vmul.f32 %v2769_v44, %v3624_v46 }
 0x191   : > { %v2444_v24 = vmul.f32 %v2417_v21, %v2317_v43  ;;  %v2765_v6 = vadd.f32 %v2764_v34, %v2763_v2  ;;  %v2775_v38 = vrot.slane %v499_v31, %v3403_v11 }
 0x192   : > { %v2516_v48 = vadd.f32 %v2515_v51, %v3683_v1 }
 0x193   : > { %v2459_v18 = vsel %vm833_vm5, %v2444_v24, 0.0  ;;  %v2771_v23 = vadd.f32 %v2770_v55, %v2765_v6  ;;  %v2776_v54 = vmul.f32 %v2775_v38, %v5618_v50 }
 0x194   : > { %v5134_v63 = vadd.f32 %v2459_v18, %v2458_v42  ;;  %v5136_v45 = vpop.permute.xlu1 %2534  ;;  %v5138_v16 = vpop.permute.xlu0 %2527  ;;  %v2517_v29 = vmax.f32 %v2516_v48, 0.0 }
 0x195   : > { %v2777_v7 = vadd.f32 %v2776_v54, %v2771_v23 }
 0x196   : > { %v2614_v12 = vrot.slane %v2517_v29, %v3766_v62  ;;  %v2607_v58 = vcombine.high %v2517_v29, %v2517_v29  ;;  %v2425_v29 = vrot.slane %v2393_v59, %v3403_v11 }
 0x197   : > { %v2778_v60 = vadd.f32 %v2777_v7, %v3683_v1 }
 0x198   : > { %v5145_v49 = vpop.permute.xlu1 %2545  ;;  %v5147_v47 = vpop.permute.xlu0 %2538  ;;  %v2622_v30 = vcombine.high %v2614_v12, %v2614_v12  ;;  %v2630_v27 = vrot.slane %v2614_v12, %v3766_v62  ;;  %v2621_v36 = vrot.slane %v2607_v58, %v3766_v62 }
 0x199   : > { %v2779_v42 = vmax.f32 %v2778_v60, 0.0 }
 0x19a   : > { %v2644_v18 = vrot.slane %v2622_v30, %v3766_v62  ;;  %v2652_v19 = vcombine.high %v2630_v27, %v2630_v27  ;;  %v2637_v56 = vrot.slane %v2621_v36, %v3766_v62  ;;  %v2659_v9 = vrot.slane %v2630_v27, %v3403_v11 }
 0x19b   : > { %v2876_v1 = vrot.slane %v2779_v42, %v3766_v62  ;;  %v2869_v35 = vcombine.high %v2779_v42, %v2779_v42 }
 0x19c   : > { %v5154_v57 = vpop.permute.xlu1 %2785  ;;  %v5156_v32 = vpop.permute.xlu0 %2549  ;;  %v2654_v13 = vcombine.high %v2644_v18, %v2644_v18  ;;  %v2663_v55 = vrot.slane %v2644_v18, %v3403_v11  ;;  %v2653_v23 = vcombine.high %v2637_v56, %v2637_v56  ;;  %v2675_v48 = vrot.slane %v2637_v56, %v3403_v11 }
 0x19d   : > { %v2884_v10 = vcombine.high %v2876_v1, %v2876_v1  ;;  %v2883_v53 = vrot.slane %v2869_v35, %v3766_v62  ;;  %v2892_v2 = vrot.slane %v2876_v1, %v3766_v62 }
 0x19e   : > { %v2671_v38 = vrot.slane %v2654_v13, %v3403_v11  ;;  %v2698_v30 = vmul.f32 %v2663_v55, %v5136_v45  ;;  %v2683_v18 = vrot.slane %v2653_v23, %v3403_v11 }
 0x19f   : > { %v2906_v44 = vrot.slane %v2884_v10, %v3766_v62  ;;  %v2885_v51 = vcombine.high %v2883_v53, %v2883_v53  ;;  %v2899_v41 = vrot.slane %v2883_v53, %v3766_v62  ;;  %v2914_v60 = vcombine.high %v2892_v2, %v2892_v2 }
 0x1a0   : > { %v5160_v39 = vpop.permute.xlu1 %2796  ;;  %v5162_v14 = vpop.permute.xlu0 %2789  ;;  %v2921_v1 = vrot.slane %v2892_v2, %v3403_v11 }
 0x1a1   : > { %v2916_v27 = vcombine.high %v2906_v44, %v2906_v44  ;;  %v5228_v10 = vrot.slane %v2899_v41, %v3403_v11 }
 0x1a2   : > { %v2958_v56 = vmul.f32 %v2921_v1, %v5154_v57  ;;  %v2959_v57 = vmul.f32 %v2921_v1, %v5162_v14 }
 0x1a4   : > { %v5166_v3 = vpop.permute.xlu1 %2556  ;;  %v5168_v40 = vpop.permute.xlu0 %2800 }
 0x1a8   : > { %v5170_v4 = vpop.permute.xlu1 %2807  ;;  %v5172_v46 = vpop.permute.xlu0 %2560 }
 0x1ac   : > { %v2321_v26 = vpop.permute.xlu1 %2320  ;;  %v5176_v37 = vpop.permute.xlu0 %2811 }
 0x1ad   : > { %v2445_v50 = vmul.f32 %v2417_v21, %v2321_v26  ;;  %v2391_v21 = vcombine.high %v5090_v52, %v5090_v52  ;;  %v2667_v52 = vrot.slane %v2652_v19, %v3403_v11 }
 0x1af   : > { %v2474_v0 = vsel %vm833_vm5, %v2445_v50, 0.0  ;;  %v2421_v33 = vrot.slane %v2391_v21, %v3403_v11  ;;  %v2697_v21 = vmul.f32 %v2659_v9, %v5138_v16  ;;  %v2700_v19 = vmul.f32 %v2667_v52, %v5145_v49 }
 0x1b0   : > { %v2475_v43 = vadd.f32 %v2474_v0, %v2473_v61  ;;  %v5180_v24 = vpop.permute.xlu1 %2571  ;;  %v5183_v5 = vpop.permute.xlu0 %2567  ;;  %v2623_v61 = vcombine.high %v2621_v36, %v2621_v36  ;;  %v2699_v0 = vmul.f32 %v2663_v55, %v5147_v47  ;;  %v5214_v36 = vrot.slane %v2885_v51, %v3766_v62 }
 0x1b1   : > { %v2701_v45 = vmul.f32 %v2667_v52, %v5156_v32  ;;  %v2925_v47 = vrot.slane %v2906_v44, %v3403_v11  ;;  %v2933_v49 = vrot.slane %v2916_v27, %v3403_v11  ;;  %v2727_v2 = vsel %vm833_vm5, %v2697_v21, 0.0 }
 0x1b2   : > { %v2651_v34 = vrot.slane %v2623_v61, %v3766_v62  ;;  %v2929_v62 = vrot.slane %v2914_v60, %v3403_v11  ;;  %v2728_v16 = vsel %vm833_vm5, %v2699_v0, 0.0  ;;  %v5240_v32 = vrot.slane %v5214_v36, %v3403_v11 }
 0x1b3   : > { %v2729_v44 = vadd.f32 %v2728_v16, %v2727_v2  ;;  %v2961_v51 = vmul.f32 %v2925_v47, %v5168_v40  ;;  %v2703_v55 = vmul.f32 %v2671_v38, %v5172_v46  ;;  %v2704_v14 = vmul.f32 %v2675_v48, %v5183_v5 }
 0x1b4   : > { %v5189_v25 = vpop.permute.xlu1 %2822  ;;  %v5191_v8 = vpop.permute.xlu0 %2818  ;;  %v2655_v50 = vcombine.high %v2651_v34, %v2651_v34  ;;  %v2679_v35 = vrot.slane %v2651_v34, %v3403_v11  ;;  %v2989_v40 = vsel %vm833_vm5, %v2959_v57, 0.0  ;;  %v2962_v5 = vmul.f32 %v2929_v62, %v5170_v4 }
 0x1b6   : > { %v5233_v13 = vrot.slane %v2655_v50, %v3403_v11 }
 0x1b8   : > { %v2332_v20 = vpop.permute.xlu1 %2331  ;;  %v2328_v31 = vpop.permute.xlu0 %2327 }
 0x1b9   : > { %v2447_v28 = vmul.f32 %v2421_v33, %v2332_v20  ;;  %v2446_v6 = vmul.f32 %v2421_v33, %v2328_v31  ;;  %v2960_v33 = vmul.f32 %v2925_v47, %v5160_v39  ;;  %v2715_v20 = vsel %vm833_vm5, %v2700_v19, 0.0 }
 0x1ba   : > { %v2730_v31 = vsel %vm833_vm5, %v2701_v45, 0.0  ;;  %v2702_v39 = vmul.f32 %v2671_v38, %v5166_v3 }
 0x1bb   : > { %v2476_v54 = vsel %vm833_vm5, %v2447_v28, 0.0  ;;  %v2461_v7 = vsel %vm833_vm5, %v2446_v6, 0.0  ;;  %v2731_v60 = vadd.f32 %v2730_v31, %v2729_v44  ;;  %v2975_v50 = vsel %vm833_vm5, %v2960_v33, 0.0 }
 0x1bc   : > { %v2477_v12 = vadd.f32 %v2476_v54, %v2475_v43  ;;  %v2462_v26 = vadd.f32 %v2461_v7, %v5134_v63  ;;  %v2583_v58 = vpop.permute.xlu1 %2582  ;;  %v2579_v42 = vpop.permute.xlu0 %2578  ;;  %v2915_v43 = vcombine.high %v2899_v41, %v2899_v41  ;;  %v2696_v63 = vmul.f32 %v2659_v9, %v5121_v15 }
 0x1bd   : > { %v2713_v15 = vsel %vm833_vm5, %v2698_v30, 0.0  ;;  %v2917_v9 = vcombine.high %v5214_v36, %v5214_v36  ;;  %v2974_v7 = vsel %vm833_vm5, %v2958_v56, 0.0  ;;  %v2705_v30 = vmul.f32 %v2675_v48, %v5180_v24 }
 0x1be   : > { %v5245_v59 = vrot.slane %v2915_v43, %v3403_v11  ;;  %v2712_v52 = vsel %vm833_vm5, %v2696_v63, 0.0  ;;  %v2717_v46 = vsel %vm833_vm5, %v2702_v39, 0.0  ;;  %v2990_v43 = vsel %vm833_vm5, %v2961_v51, 0.0 }
 0x1bf   : > { %v2714_v34 = vadd.f32 %v2713_v15, %v2712_v52  ;;  %v2732_v63 = vsel %vm833_vm5, %v2703_v55, 0.0  ;;  %v2707_v21 = vmul.f32 %v2679_v35, %v2583_v58  ;;  %v2706_v24 = vmul.f32 %v2679_v35, %v2579_v42 }
 0x1c0   : > { %v5225_v61 = vpop.permute.xlu1 %2833  ;;  %v5230_v53 = vpop.permute.xlu0 %2829  ;;  %v2963_v48 = vmul.f32 %v2929_v62, %v5176_v37  ;;  %v2734_v47 = vsel %vm833_vm5, %v2705_v30, 0.0  ;;  %v2733_v56 = vadd.f32 %v2732_v63, %v2731_v60  ;;  %v2965_v33 = vmul.f32 %v2933_v49, %v5189_v25 }
 0x1c1   : > { %v2716_v54 = vadd.f32 %v2715_v20, %v2714_v34  ;;  %v2964_v58 = vmul.f32 %v2933_v49, %v5191_v8  ;;  %v2976_v35 = vadd.f32 %v2975_v50, %v2974_v7  ;;  %v2991_v37 = vadd.f32 %v2990_v43, %v2989_v40 }
 0x1c2   : > { %v2977_v62 = vsel %vm833_vm5, %v2962_v5, 0.0  ;;  %v2992_v52 = vsel %vm833_vm5, %v2963_v48, 0.0  ;;  %v2735_v2 = vadd.f32 %v2734_v47, %v2733_v56  ;;  %v2967_v20 = vmul.f32 %v5228_v10, %v5225_v61 }
 0x1c3   : > { %v2718_v16 = vadd.f32 %v2717_v46, %v2716_v54  ;;  %v2966_v25 = vmul.f32 %v5228_v10, %v5230_v53  ;;  %v2994_v31 = vsel %vm833_vm5, %v2965_v33, 0.0  ;;  %v2979_v34 = vsel %vm833_vm5, %v2964_v58, 0.0 }
 0x1c4   : > { %v2343_v28 = vpop.permute.xlu1 %2342  ;;  %v2339_v6 = vpop.permute.xlu0 %2338  ;;  %v2978_v53 = vadd.f32 %v2977_v62, %v2976_v35  ;;  %v2993_v55 = vadd.f32 %v2992_v52, %v2991_v37  ;;  %v2996_v54 = vsel %vm833_vm5, %v2967_v20, 0.0  ;;  %v2949_v5 = vrot.slane %v2917_v9, %v3403_v11 }
 0x1c5   : > { %v2449_v41 = vmul.f32 %v2425_v29, %v2343_v28  ;;  %v2448_v23 = vmul.f32 %v2425_v29, %v2339_v6  ;;  %v2981_v7 = vsel %vm833_vm5, %v2966_v25, 0.0 }
 0x1c6   : > { %v2995_v30 = vadd.f32 %v2994_v31, %v2993_v55 }
 0x1c7   : > { %v2478_v3 = vsel %vm833_vm5, %v2449_v41, 0.0  ;;  %v2463_v0 = vsel %vm833_vm5, %v2448_v23, 0.0 }
 0x1c8   : > { %v2479_v38 = vadd.f32 %v2478_v3, %v2477_v12  ;;  %v2464_v29 = vadd.f32 %v2463_v0, %v2462_v26  ;;  %v2594_v27 = vpop.permute.xlu1 %2593  ;;  %v2590_v1 = vpop.permute.xlu0 %2589  ;;  %v2719_v12 = vsel %vm833_vm5, %v2704_v14, 0.0  ;;  %v2980_v14 = vadd.f32 %v2979_v34, %v2978_v53 }
 0x1c9   : > { %v2709_v26 = vmul.f32 %v2683_v18, %v2594_v27  ;;  %v2708_v15 = vmul.f32 %v2683_v18, %v2590_v1  ;;  %v2720_v18 = vadd.f32 %v2719_v12, %v2718_v16  ;;  %v2997_v27 = vadd.f32 %v2996_v54, %v2995_v30 }
 0x1ca   : > { %v2481_v19 = vadd.f32 %v2479_v38, %v5065_v22  ;;  %v2480_v45 = vadd.f32 %v2464_v29, %v5068_v17  ;;  %v2736_v22 = vsel %vm833_vm5, %v2707_v21, 0.0  ;;  %v2721_v17 = vsel %vm833_vm5, %v2706_v24, 0.0 }
 0x1cb   : > { %v2738_v8 = vsel %vm833_vm5, %v2709_v26, 0.0  ;;  %v2723_v49 = vsel %vm833_vm5, %v2708_v15, 0.0  ;;  %v2737_v44 = vadd.f32 %v2736_v22, %v2735_v2  ;;  %v2722_v57 = vadd.f32 %v2721_v17, %v2720_v18 }
 0x1cc   : > { %v2845_v42 = vpop.permute.xlu1 %2844  ;;  %v2841_v4 = vpop.permute.xlu0 %2840  ;;  %v2982_v1 = vadd.f32 %v2981_v7, %v2980_v14 }
 0x1cd   : > { %v2969_v6 = vmul.f32 %v5240_v32, %v2845_v42  ;;  %v2968_v51 = vmul.f32 %v5240_v32, %v2841_v4  ;;  %v2739_v41 = vadd.f32 %v2738_v8, %v2737_v44  ;;  %v2724_v23 = vadd.f32 %v2723_v49, %v2722_v57 }
 0x1cf   : > { %v2983_v46 = vsel %vm833_vm5, %v2968_v51, 0.0 }
 0x1d0   : > { %v2605_v39 = vpop.permute.xlu1 %2604  ;;  %v2601_v28 = vpop.permute.xlu0 %2600  ;;  %v2984_v47 = vadd.f32 %v2983_v46, %v2982_v1 }
 0x1d1   : > { %v2711_v61 = vmul.f32 %v5233_v13, %v2605_v39  ;;  %v2710_v10 = vmul.f32 %v5233_v13, %v2601_v28  ;;  %v2998_v13 = vsel %vm833_vm5, %v2969_v6, 0.0 }
 0x1d2   : > { %v2999_v48 = vadd.f32 %v2998_v13, %v2997_v27 }
 0x1d3   : > { %v2740_v60 = vsel %vm833_vm5, %v2711_v61, 0.0  ;;  %v2725_v50 = vsel %vm833_vm5, %v2710_v10, 0.0 }
 0x1d4   : > { %v2741_v32 = vadd.f32 %v2740_v60, %v2739_v41  ;;  %v2726_v3 = vadd.f32 %v2725_v50, %v2724_v23  ;;  %v2856_v0 = vpop.permute.xlu1 %2855  ;;  %v2852_v40 = vpop.permute.xlu0 %2851 }
 0x1d5   : > { %v2971_v38 = vmul.f32 %v5245_v59, %v2856_v0  ;;  %v2970_v29 = vmul.f32 %v5245_v59, %v2852_v40 }
 0x1d6   : > { %v2743_v43 = vadd.f32 %v2741_v32, %v2481_v19  ;;  %v2742_v63 = vadd.f32 %v2726_v3, %v2480_v45 }
 0x1d7   : > { %v3000_v21 = vsel %vm833_vm5, %v2971_v38, 0.0  ;;  %v2985_v24 = vsel %vm833_vm5, %v2970_v29, 0.0 }
 0x1d8   : > { %v2867_v12 = vpop.permute.xlu1 %2866  ;;  %v2863_v59 = vpop.permute.xlu0 %2862  ;;  %v3001_v16 = vadd.f32 %v3000_v21, %v2999_v48  ;;  %v2986_v56 = vadd.f32 %v2985_v24, %v2984_v47 }
 0x1d9   : > { %v2973_v26 = vmul.f32 %v2949_v5, %v2867_v12  ;;  %v2972_v15 = vmul.f32 %v2949_v5, %v2863_v59 }
 0x1db   : > { %v3002_v19 = vsel %vm833_vm5, %v2973_v26, 0.0  ;;  %v2987_v45 = vsel %vm833_vm5, %v2972_v15, 0.0 }
 0x1dc   : > { %v3003_v33 = vadd.f32 %v3002_v19, %v3001_v16  ;;  %v2988_v58 = vadd.f32 %v2987_v45, %v2986_v56  ;;  %v3014_v11 = vpop.permute.xlu1 %3013  ;;  %v3009_v9 = vpop.permute.xlu0 %3008 }
 0x1de   : > { %v3005_v42 = vadd.f32 %v3003_v33, %v2743_v43  ;;  %v3004_v36 = vadd.f32 %v2988_v58, %v2742_v63 }
 0x1e0   : > { %v3017_v4 = vadd.f32 %v3014_v11, %v3005_v42  ;;  %v3016_v35 = vadd.f32 %v3009_v9, %v3004_v36 }
 0x1e2   : > { %v3019_v37 = vmax.f32 %v3017_v4, 0.0  ;;  %v3018_v22 = vmax.f32 %v3016_v35, 0.0 }
 0x1e4   : > { %3021 = vst.msk [vmem:[%s249_s21 + $0x8] sm:$0xff] %vm833_vm5, %v3019_v37  ;;  %3020 = vst.msk [vmem:[%s249_s21] sm:$0xff] %vm833_vm5, %v3018_v22 }
 0x1e5 PF: > { %p3159_p3 = scmp.ge.s32.totalorder %s3275_s8, 2  ;;  %s3059_s9 = sand.u32 1, %s3263_s29  }
 0x1e6   : > { %s3060_s22 = scalar_lea.sflag [#allocation5], %s3059_s9 }
 0x1e7   : > { %p3156_p4 = pnand %p3159_p3, %p3369_p11 }
 0x1e9   : > { %p3157_p5 = pneg %p3156_p4 }
 0x1eb   : > { %3258 = dma.done.wait (%p3157_p5), %s3060_s22, 512  }
 0x1ec   : > { %3260 = vsyncadd (%p3157_p5), %s3060_s22, 4294966784  ;;  %p24_p6 = scmp.ge.s32.totalorder %s3352_s11, 4   ;;  %s5677_s29 = smov %s3267_s30 }
 0x1ed   : > { %s5678_s30 = smov %s3271_s0  ;;  %s5679_s0 = smov %s3363_s14 }
 0x1ee   : > { %s5680_s8 = smov %s3352_s11  ;;  %26 = sbr.rel (!%p24_p6) target bundleno = 18 (0x12), region = 84 }
 0x1f3   :  { %3073 = vsyncpa [#allocation5], 1 }
 0x1f4   :  { %3075 = vsyncpa [#allocation5 + $0x1], 1 }

</bundles_post_ra>
